<compile_context>
chip_gen: v5e
topology: v5e:2x2
jax: 0.10.0
libtpu: 0.0.40
codegen_flags: <defaults>
</compile_context>

<pallas_src>
import functools
import math

import jax
import jax.numpy as jnp
from jax import lax
from jax.experimental import pallas as pl
from jax.experimental.pallas import tpu as pltpu


# --------------------------------------------------------------------------
# Fused Conv3d(k=3, valid, stride 1) + bias + ReLU + MaxPool3d(2, 2) kernel
# --------------------------------------------------------------------------
def _conv_relu_pool_kernel(p_ref, w_ref, b_ref, o_ref, *, group):
    """p_ref: (1, 8, tile_l, KCp) bf16 -- im2col patches, one slab per pool offset
       w_ref: (KCp, Cout)         bf16 -- conv weights, contraction zero-padded
       b_ref: (1, Cout)           f32
       o_ref: (1, tile_l, Cout)        -- pooled + ReLU'd activation tile

    `group` pool offsets are folded into the matmul M dimension per dot
    (group=8 -> one fused matmul; group=2 -> pairs with a running max).
    """
    w = w_ref[...]
    tile_l = o_ref.shape[1]
    acc = None
    for g in range(8 // group):                 # short, static -> unrolled
        # (group, tile_l, KCp) -> (group*tile_l, KCp); tile_l % 16 == 0 so this
        # leading-dim collapse is layout-preserving for bf16.
        lhs = p_ref[0, g * group:(g + 1) * group].reshape(group * tile_l, -1)
        r = jnp.dot(lhs, w, preferred_element_type=jnp.float32)
        m = r[:tile_l]
        for s in range(1, group):               # maxpool == max over offsets
            m = jnp.maximum(m, r[s * tile_l:(s + 1) * tile_l])
        acc = m if acc is None else jnp.maximum(acc, m)
    # bias is shared across offsets, so add once after the max (max(x)+b == max(x+b));
    # keep the elementwise max/bias/ReLU in f32 (v5e has no bf16 VALU path).
    o_ref[0] = jnp.maximum(acc + b_ref[...], 0.0).astype(o_ref.dtype)


def _ceil_to(a, m):
    return -(-a // m) * m


def _choose_l_tiling(lp, max_tile=512, align=16):
    """Pick a 16-aligned tile over the pooled-position axis and its padded extent.
    align=16 keeps bf16 sublane packing clean; max_tile=512 lets both stages of
    the example problem run with a single L tile (grid=(N, 1))."""
    padded = _ceil_to(lp, align)
    n_tiles = max(1, -(-padded // max_tile))
    tile = _ceil_to(-(-lp // n_tiles), align)
    return tile, tile * n_tiles


def _build_pool_patches(x, K, Dp, Hp, Wp, kc_pad):
    """Pooling-aware im2col from ONE stride-1 im2col + reshape/transpose.

    For each maxpool offset (dd,hh,ww) in {0,1}^3 and pooled position (dp,hp,wp),
    the K^3*Cin conv patch at conv-output index (2*dp+dd, 2*hp+hh, 2*wp+ww).
    Returns (N, 8, Dp*Hp*Wp, kc_pad); last axis ordered (kd, kh, kw, cin) and
    zero-padded to kc_pad (numerically exact).
    """
    N, _, _, _, Cin = x.shape
    KC = K * K * K * Cin
    Lp = Dp * Hp * Wp
    taps = []
    for kd in range(K):
        for kh in range(K):
            for kw in range(K):
                taps.append(x[:, kd:kd + 2 * Dp, kh:kh + 2 * Hp, kw:kw + 2 * Wp, :])
    full = jnp.concatenate(taps, axis=-1)                 # (N, 2Dp, 2Hp, 2Wp, KC)
    full = full.reshape(N, Dp, 2, Hp, 2, Wp, 2, KC)
    full = jnp.transpose(full, (0, 2, 4, 6, 1, 3, 5, 7))  # (N, 2,2,2, Dp,Hp,Wp, KC)
    patches = full.reshape(N, 8, Lp, KC)
    if kc_pad > KC:
        patches = jnp.pad(patches, ((0, 0), (0, 0), (0, 0), (0, kc_pad - KC)))
    return patches


def conv3d_relu_maxpool(x_ndhwc, w_dhwio, b, *, max_tile_l=512,
                        out_dtype=jnp.float32):
    """Conv3d(kernel=3, valid) + bias + ReLU + MaxPool3d(kernel=2, stride=2).

    x: (N, D, H, W, Cin); w: (3,3,3,Cin,Cout); b: (Cout,).
    Returns (N, (D-2)//2, (H-2)//2, (W-2)//2, Cout) in out_dtype.
    """
    N, D, H, W, Cin = x_ndhwc.shape
    K = w_dhwio.shape[0]
    Cout = w_dhwio.shape[-1]
    Do, Ho, Wo = D - K + 1, H - K + 1, W - K + 1
    Dp, Hp, Wp = Do // 2, Ho // 2, Wo // 2
    Lp = Dp * Hp * Wp
    KC = K * K * K * Cin
    KCp = _ceil_to(KC, 128)            # lane-dense, MXU-aligned contraction

    tile_l, l_pad = _choose_l_tiling(Lp, max_tile_l)
    n_l = l_pad // tile_l

    # Glue in bf16 (half the HBM traffic in the dominant patch-build phase).
    x_bf16 = x_ndhwc.astype(jnp.bfloat16)
    patches = _build_pool_patches(x_bf16, K, Dp, Hp, Wp, KCp)
    if l_pad != Lp:
        patches = jnp.pad(patches, ((0, 0), (0, 0), (0, l_pad - Lp), (0, 0)))

    w2d = w_dhwio.reshape(KC, Cout).astype(jnp.bfloat16)
    w2d = jnp.pad(w2d, ((0, KCp - KC), (0, 0)))           # exact zero K padding
    b2d = b.reshape(1, Cout).astype(jnp.float32)

    # Small per-dot M -> fuse all 8 offsets into one matmul (stage 2);
    # large tile_l -> pairs, keeping the live f32 dot result ~22 vregs (stage 1).
    group = 8 if 8 * tile_l <= 256 else 2

    cost = pl.CostEstimate(
        flops=2 * N * 8 * l_pad * KCp * Cout,
        transcendentals=0,
        bytes_accessed=(N * 8 * l_pad * KCp * 2 + KCp * Cout * 2 + Cout * 4
                        + N * l_pad * Cout * jnp.dtype(out_dtype).itemsize))

    out = pl.pallas_call(
        functools.partial(_conv_relu_pool_kernel, group=group),
        out_shape=jax.ShapeDtypeStruct((N, l_pad, Cout), out_dtype),
        grid=(N, n_l),
        in_specs=[
            pl.BlockSpec((1, 8, tile_l, KCp), lambda n, l: (n, 0, l, 0)),
            pl.BlockSpec((KCp, Cout), lambda n, l: (0, 0)),
            pl.BlockSpec((1, Cout), lambda n, l: (0, 0)),
        ],
        out_specs=pl.BlockSpec((1, tile_l, Cout), lambda n, l: (n, l, 0)),
        compiler_params=pltpu.CompilerParams(
            dimension_semantics=("parallel", "parallel"),
            vmem_limit_bytes=32 * 1024 * 1024),
        cost_estimate=cost,
    )(patches, w2d, b2d)

    # Drop the L padding rows and restore the (pooled) 3-D spatial shape.
    return out[:, :Lp, :].reshape(N, Dp, Hp, Wp, Cout)


# --------------------------------------------------------------------------
# Parameters + forward
# --------------------------------------------------------------------------
def init_params(key, in_channels, start_filters):
    def conv_init(k, cin, cout, ksz=3):
        fan_in = cin * ksz ** 3
        bound = 1.0 / math.sqrt(fan_in)
        kw, kb = jax.random.split(k)
        w = jax.random.uniform(kw, (ksz, ksz, ksz, cin, cout), jnp.float32,
                               -bound, bound)
        b = jax.random.uniform(kb, (cout,), jnp.float32, -bound, bound)
        return w, b

    k1, k2 = jax.random.split(key)
    w1, b1 = conv_init(k1, in_channels, start_filters)
    w2, b2 = conv_init(k2, start_filters, start_filters)
    return {"w1": w1, "b1": b1, "w2": w2, "b2": b2}


def cnn3d_forward(params, x_ncdhw):
    # NCDHW (PyTorch) -> NDHWC for the TPU kernels
    x = jnp.transpose(x_ncdhw, (0, 2, 3, 4, 1)).astype(jnp.float32)
    # Stage-1 output kept in bf16: stage 2 re-casts its MXU inputs to bf16 anyway,
    # so this is numerically identical and halves the inter-stage HBM traffic.
    x = conv3d_relu_maxpool(x, params["w1"], params["b1"],
                            out_dtype=jnp.bfloat16)       # conv1+relu1+maxpool1
    x = conv3d_relu_maxpool(x, params["w2"], params["b2"],
                            out_dtype=jnp.float32)        # conv2+relu2+maxpool2
    # TODO(synk): original forward() returns the undefined name `output` here and
    # never reaches conv3/fc1/fc2/logSoftmax; we return the maxpool2 activation.
    return jnp.transpose(x, (0, 4, 1, 2, 3))              # back to NCDHW


# pure-JAX f32 reference for correctness checking
def reference_forward(params, x_ncdhw):
    dn = ("NCDHW", "OIDHW", "NCDHW")
    w1 = jnp.transpose(params["w1"], (4, 3, 0, 1, 2))
    w2 = jnp.transpose(params["w2"], (4, 3, 0, 1, 2))
    y = lax.conv_general_dilated(x_ncdhw, w1, (1, 1, 1), "VALID",
                                 dimension_numbers=dn)
    y = jnp.maximum(y + params["b1"][None, :, None, None, None], 0.0)
    y = lax.reduce_window(y, -jnp.inf, lax.max,
                          (1, 1, 2, 2, 2), (1, 1, 2, 2, 2), "VALID")
    y = lax.conv_general_dilated(y, w2, (1, 1, 1), "VALID",
                                 dimension_numbers=dn)
    y = jnp.maximum(y + params["b2"][None, :, None, None, None], 0.0)
    y = lax.reduce_window(y, -jnp.inf, lax.max,
                          (1, 1, 2, 2, 2), (1, 1, 2, 2, 2), "VALID")
    return y


if __name__ == "__main__":
    in_channels, classes, start_filters = 4, 10, 32   # classes unused (fc never reached)
    N, D, H, W = 2, 16, 16, 16

    key = jax.random.PRNGKey(0)
    kx, kp = jax.random.split(key)
    x = jax.random.normal(kx, (N, in_channels, D, H, W), jnp.float32)
    params = init_params(kp, in_channels, start_filters)

    out = jax.block_until_ready(jax.jit(cnn3d_forward)(params, x))
    ref = jax.block_until_ready(reference_forward(params, x))

    assert out.shape == ref.shape == (N, start_filters, 2, 2, 2), (out.shape, ref.shape)
    # bf16 MXU inputs / bf16 inter-stage activation with f32 accumulation ->
    # small rounding error vs the f32 reference.
    max_err = float(jnp.max(jnp.abs(out - ref)))
    assert max_err < 5e-2, f"max abs err {max_err}"
    print("KERNEL_OK")
</pallas_src>

<mosaic_0001>
module attributes {stable_mosaic.version = 11 : i64} {
  func.func @_conv_relu_pool_kernel(%arg0: i32, %arg1: i32, %arg2: memref<1x8x352x128xbf16, #tpu.memory_space<vmem>>, %arg3: memref<128x32xbf16, #tpu.memory_space<vmem>>, %arg4: memref<1x32xf32, #tpu.memory_space<vmem>>, %arg5: memref<1x352x32xbf16, #tpu.memory_space<vmem>>) attributes {dimension_semantics = [#tpu.dimension_semantics<parallel>, #tpu.dimension_semantics<parallel>], iteration_bounds = array<i64: 2, 1>, scalar_prefetch = 0 : i64, scratch_operands = 0 : i64, tpu.core_type = #tpu.core_type<tc>, window_params = [{transform_indices = @transform_0, window_bounds = array<i64: 1, 8, 352, 128>}, {pipeline_mode = #tpu.pipeline_mode<synchronous>, transform_indices = @transform_1, window_bounds = array<i64: 128, 32>}, {pipeline_mode = #tpu.pipeline_mode<synchronous>, transform_indices = @transform_2, window_bounds = array<i64: 1, 32>}, {transform_indices = @transform_3, window_bounds = array<i64: 1, 352, 32>}]} {
    %c0 = arith.constant 0 : index
    %c0_0 = arith.constant 0 : index
    %0 = vector.load %arg3[%c0, %c0_0] : memref<128x32xbf16, #tpu.memory_space<vmem>>, vector<128x32xbf16>
    %c0_1 = arith.constant 0 : index
    %c0_2 = arith.constant 0 : index
    %c0_3 = arith.constant 0 : index
    %c0_4 = arith.constant 0 : index
    %1 = vector.load %arg2[%c0_1, %c0_2, %c0_3, %c0_4] : memref<1x8x352x128xbf16, #tpu.memory_space<vmem>>, vector<1x2x352x128xbf16>
    %2 = vector.shape_cast %1 : vector<1x2x352x128xbf16> to vector<2x352x128xbf16>
    %3 = vector.shape_cast %2 : vector<2x352x128xbf16> to vector<704x128xbf16>
    %cst = arith.constant dense<0.000000e+00> : vector<704x32xf32>
    %4 = tpu.matmul %3, %0, %cst {dimension_numbers = #tpu.dot_dimension_numbers<[1], [0], [0], [1], [0, 0, 1, 1], [], []>} : vector<704x128xbf16>, vector<128x32xbf16>, vector<704x32xf32> -> vector<704x32xf32>
    %5 = vector.extract_strided_slice %4 {offsets = [0, 0], sizes = [352, 32], strides = [1, 1]} : vector<704x32xf32> to vector<352x32xf32>
    %6 = vector.extract_strided_slice %4 {offsets = [352, 0], sizes = [352, 32], strides = [1, 1]} : vector<704x32xf32> to vector<352x32xf32>
    %7 = arith.maximumf %5, %6 : vector<352x32xf32>
    %c0_5 = arith.constant 0 : index
    %c2 = arith.constant 2 : index
    %c0_6 = arith.constant 0 : index
    %c0_7 = arith.constant 0 : index
    %8 = vector.load %arg2[%c0_5, %c2, %c0_6, %c0_7] : memref<1x8x352x128xbf16, #tpu.memory_space<vmem>>, vector<1x2x352x128xbf16>
    %9 = vector.shape_cast %8 : vector<1x2x352x128xbf16> to vector<2x352x128xbf16>
    %10 = vector.shape_cast %9 : vector<2x352x128xbf16> to vector<704x128xbf16>
    %cst_8 = arith.constant dense<0.000000e+00> : vector<704x32xf32>
    %11 = tpu.matmul %10, %0, %cst_8 {dimension_numbers = #tpu.dot_dimension_numbers<[1], [0], [0], [1], [0, 0, 1, 1], [], []>} : vector<704x128xbf16>, vector<128x32xbf16>, vector<704x32xf32> -> vector<704x32xf32>
    %12 = vector.extract_strided_slice %11 {offsets = [0, 0], sizes = [352, 32], strides = [1, 1]} : vector<704x32xf32> to vector<352x32xf32>
    %13 = vector.extract_strided_slice %11 {offsets = [352, 0], sizes = [352, 32], strides = [1, 1]} : vector<704x32xf32> to vector<352x32xf32>
    %14 = arith.maximumf %12, %13 : vector<352x32xf32>
    %15 = arith.maximumf %7, %14 : vector<352x32xf32>
    %c0_9 = arith.constant 0 : index
    %c4 = arith.constant 4 : index
    %c0_10 = arith.constant 0 : index
    %c0_11 = arith.constant 0 : index
    %16 = vector.load %arg2[%c0_9, %c4, %c0_10, %c0_11] : memref<1x8x352x128xbf16, #tpu.memory_space<vmem>>, vector<1x2x352x128xbf16>
    %17 = vector.shape_cast %16 : vector<1x2x352x128xbf16> to vector<2x352x128xbf16>
    %18 = vector.shape_cast %17 : vector<2x352x128xbf16> to vector<704x128xbf16>
    %cst_12 = arith.constant dense<0.000000e+00> : vector<704x32xf32>
    %19 = tpu.matmul %18, %0, %cst_12 {dimension_numbers = #tpu.dot_dimension_numbers<[1], [0], [0], [1], [0, 0, 1, 1], [], []>} : vector<704x128xbf16>, vector<128x32xbf16>, vector<704x32xf32> -> vector<704x32xf32>
    %20 = vector.extract_strided_slice %19 {offsets = [0, 0], sizes = [352, 32], strides = [1, 1]} : vector<704x32xf32> to vector<352x32xf32>
    %21 = vector.extract_strided_slice %19 {offsets = [352, 0], sizes = [352, 32], strides = [1, 1]} : vector<704x32xf32> to vector<352x32xf32>
    %22 = arith.maximumf %20, %21 : vector<352x32xf32>
    %23 = arith.maximumf %15, %22 : vector<352x32xf32>
    %c0_13 = arith.constant 0 : index
    %c6 = arith.constant 6 : index
    %c0_14 = arith.constant 0 : index
    %c0_15 = arith.constant 0 : index
    %24 = vector.load %arg2[%c0_13, %c6, %c0_14, %c0_15] : memref<1x8x352x128xbf16, #tpu.memory_space<vmem>>, vector<1x2x352x128xbf16>
    %25 = vector.shape_cast %24 : vector<1x2x352x128xbf16> to vector<2x352x128xbf16>
    %26 = vector.shape_cast %25 : vector<2x352x128xbf16> to vector<704x128xbf16>
    %cst_16 = arith.constant dense<0.000000e+00> : vector<704x32xf32>
    %27 = tpu.matmul %26, %0, %cst_16 {dimension_numbers = #tpu.dot_dimension_numbers<[1], [0], [0], [1], [0, 0, 1, 1], [], []>} : vector<704x128xbf16>, vector<128x32xbf16>, vector<704x32xf32> -> vector<704x32xf32>
    %28 = vector.extract_strided_slice %27 {offsets = [0, 0], sizes = [352, 32], strides = [1, 1]} : vector<704x32xf32> to vector<352x32xf32>
    %29 = vector.extract_strided_slice %27 {offsets = [352, 0], sizes = [352, 32], strides = [1, 1]} : vector<704x32xf32> to vector<352x32xf32>
    %30 = arith.maximumf %28, %29 : vector<352x32xf32>
    %31 = arith.maximumf %23, %30 : vector<352x32xf32>
    %c0_17 = arith.constant 0 : index
    %c0_18 = arith.constant 0 : index
    %32 = vector.load %arg4[%c0_17, %c0_18] : memref<1x32xf32, #tpu.memory_space<vmem>>, vector<1x32xf32>
    %33 = vector.broadcast %32 : vector<1x32xf32> to vector<352x32xf32>
    %34 = arith.addf %31, %33 : vector<352x32xf32>
    %cst_19 = arith.constant 0.000000e+00 : f32
    %35 = vector.broadcast %cst_19 : f32 to vector<352x32xf32>
    %36 = arith.maximumf %34, %35 : vector<352x32xf32>
    %37 = arith.truncf %36 : vector<352x32xf32> to vector<352x32xbf16>
    %c0_20 = arith.constant 0 : index
    %c0_21 = arith.constant 0 : index
    %c0_22 = arith.constant 0 : index
    %38 = vector.load %arg5[%c0_20, %c0_21, %c0_22] : memref<1x352x32xbf16, #tpu.memory_space<vmem>>, vector<1x352x32xbf16>
    %39 = vector.shape_cast %38 : vector<1x352x32xbf16> to vector<352x32xbf16>
    %40 = vector.shape_cast %37 : vector<352x32xbf16> to vector<1x352x32xbf16>
    tpu.vector_store %arg5[%c0_20, %c0_21, %c0_22], %40 {strides = array<i32>} : memref<1x352x32xbf16, #tpu.memory_space<vmem>>, vector<1x352x32xbf16>,
    return
  }
  func.func @transform_0(%arg0: i32, %arg1: i32) -> (i32, i32, i32, i32) {
    %c0_i32 = arith.constant 0 : i32
    %c0_i32_0 = arith.constant 0 : i32
    %c0_i32_1 = arith.constant 0 : i32
    return %arg0, %c0_i32, %arg1, %c0_i32_0 : i32, i32, i32, i32
  }
  func.func @transform_1(%arg0: i32, %arg1: i32) -> (i32, i32) {
    %c0_i32 = arith.constant 0 : i32
    %c0_i32_0 = arith.constant 0 : i32
    %c0_i32_1 = arith.constant 0 : i32
    return %c0_i32, %c0_i32_0 : i32, i32
  }
  func.func @transform_2(%arg0: i32, %arg1: i32) -> (i32, i32) {
    %c0_i32 = arith.constant 0 : i32
    %c0_i32_0 = arith.constant 0 : i32
    %c0_i32_1 = arith.constant 0 : i32
    return %c0_i32, %c0_i32_0 : i32, i32
  }
  func.func @transform_3(%arg0: i32, %arg1: i32) -> (i32, i32, i32) {
    %c0_i32 = arith.constant 0 : i32
    %c0_i32_0 = arith.constant 0 : i32
    return %arg0, %arg1, %c0_i32 : i32, i32, i32
  }
}

module attributes {stable_mosaic.version = 11 : i64} {
  func.func @_conv_relu_pool_kernel(%arg0: i32, %arg1: i32, %arg2: memref<1x8x16x896xbf16, #tpu.memory_space<vmem>>, %arg3: memref<896x32xbf16, #tpu.memory_space<vmem>>, %arg4: memref<1x32xf32, #tpu.memory_space<vmem>>, %arg5: memref<1x16x32xf32, #tpu.memory_space<vmem>>) attributes {dimension_semantics = [#tpu.dimension_semantics<parallel>, #tpu.dimension_semantics<parallel>], iteration_bounds = array<i64: 2, 1>, scalar_prefetch = 0 : i64, scratch_operands = 0 : i64, tpu.core_type = #tpu.core_type<tc>, window_params = [{transform_indices = @transform_0, window_bounds = array<i64: 1, 8, 16, 896>}, {pipeline_mode = #tpu.pipeline_mode<synchronous>, transform_indices = @transform_1, window_bounds = array<i64: 896, 32>}, {pipeline_mode = #tpu.pipeline_mode<synchronous>, transform_indices = @transform_2, window_bounds = array<i64: 1, 32>}, {transform_indices = @transform_3, window_bounds = array<i64: 1, 16, 32>}]} {
    %c0 = arith.constant 0 : index
    %c0_0 = arith.constant 0 : index
    %0 = vector.load %arg3[%c0, %c0_0] : memref<896x32xbf16, #tpu.memory_space<vmem>>, vector<896x32xbf16>
    %c0_1 = arith.constant 0 : index
    %c0_2 = arith.constant 0 : index
    %c0_3 = arith.constant 0 : index
    %c0_4 = arith.constant 0 : index
    %1 = vector.load %arg2[%c0_1, %c0_2, %c0_3, %c0_4] : memref<1x8x16x896xbf16, #tpu.memory_space<vmem>>, vector<1x8x16x896xbf16>
    %2 = vector.shape_cast %1 : vector<1x8x16x896xbf16> to vector<8x16x896xbf16>
    %3 = vector.shape_cast %2 : vector<8x16x896xbf16> to vector<128x896xbf16>
    %cst = arith.constant dense<0.000000e+00> : vector<128x32xf32>
    %4 = tpu.matmul %3, %0, %cst {dimension_numbers = #tpu.dot_dimension_numbers<[1], [0], [0], [1], [0, 0, 1, 1], [], []>} : vector<128x896xbf16>, vector<896x32xbf16>, vector<128x32xf32> -> vector<128x32xf32>
    %5 = vector.extract_strided_slice %4 {offsets = [0, 0], sizes = [16, 32], strides = [1, 1]} : vector<128x32xf32> to vector<16x32xf32>
    %6 = vector.extract_strided_slice %4 {offsets = [16, 0], sizes = [16, 32], strides = [1, 1]} : vector<128x32xf32> to vector<16x32xf32>
    %7 = arith.maximumf %5, %6 : vector<16x32xf32>
    %8 = vector.extract_strided_slice %4 {offsets = [32, 0], sizes = [16, 32], strides = [1, 1]} : vector<128x32xf32> to vector<16x32xf32>
    %9 = arith.maximumf %7, %8 : vector<16x32xf32>
    %10 = vector.extract_strided_slice %4 {offsets = [48, 0], sizes = [16, 32], strides = [1, 1]} : vector<128x32xf32> to vector<16x32xf32>
    %11 = arith.maximumf %9, %10 : vector<16x32xf32>
    %12 = vector.extract_strided_slice %4 {offsets = [64, 0], sizes = [16, 32], strides = [1, 1]} : vector<128x32xf32> to vector<16x32xf32>
    %13 = arith.maximumf %11, %12 : vector<16x32xf32>
    %14 = vector.extract_strided_slice %4 {offsets = [80, 0], sizes = [16, 32], strides = [1, 1]} : vector<128x32xf32> to vector<16x32xf32>
    %15 = arith.maximumf %13, %14 : vector<16x32xf32>
    %16 = vector.extract_strided_slice %4 {offsets = [96, 0], sizes = [16, 32], strides = [1, 1]} : vector<128x32xf32> to vector<16x32xf32>
    %17 = arith.maximumf %15, %16 : vector<16x32xf32>
    %18 = vector.extract_strided_slice %4 {offsets = [112, 0], sizes = [16, 32], strides = [1, 1]} : vector<128x32xf32> to vector<16x32xf32>
    %19 = arith.maximumf %17, %18 : vector<16x32xf32>
    %c0_5 = arith.constant 0 : index
    %c0_6 = arith.constant 0 : index
    %20 = vector.load %arg4[%c0_5, %c0_6] : memref<1x32xf32, #tpu.memory_space<vmem>>, vector<1x32xf32>
    %21 = vector.broadcast %20 : vector<1x32xf32> to vector<16x32xf32>
    %22 = arith.addf %19, %21 : vector<16x32xf32>
    %cst_7 = arith.constant 0.000000e+00 : f32
    %23 = vector.broadcast %cst_7 : f32 to vector<16x32xf32>
    %24 = arith.maximumf %22, %23 : vector<16x32xf32>
    %c0_8 = arith.constant 0 : index
    %c0_9 = arith.constant 0 : index
    %c0_10 = arith.constant 0 : index
    %25 = vector.load %arg5[%c0_8, %c0_9, %c0_10] : memref<1x16x32xf32, #tpu.memory_space<vmem>>, vector<1x16x32xf32>
    %26 = vector.shape_cast %25 : vector<1x16x32xf32> to vector<16x32xf32>
    %27 = vector.shape_cast %24 : vector<16x32xf32> to vector<1x16x32xf32>
    tpu.vector_store %arg5[%c0_8, %c0_9, %c0_10], %27 {strides = array<i32>} : memref<1x16x32xf32, #tpu.memory_space<vmem>>, vector<1x16x32xf32>,
    return
  }
  func.func @transform_0(%arg0: i32, %arg1: i32) -> (i32, i32, i32, i32) {
    %c0_i32 = arith.constant 0 : i32
    %c0_i32_0 = arith.constant 0 : i32
    %c0_i32_1 = arith.constant 0 : i32
    return %arg0, %c0_i32, %arg1, %c0_i32_0 : i32, i32, i32, i32
  }
  func.func @transform_1(%arg0: i32, %arg1: i32) -> (i32, i32) {
    %c0_i32 = arith.constant 0 : i32
    %c0_i32_0 = arith.constant 0 : i32
    %c0_i32_1 = arith.constant 0 : i32
    return %c0_i32, %c0_i32_0 : i32, i32
  }
  func.func @transform_2(%arg0: i32, %arg1: i32) -> (i32, i32) {
    %c0_i32 = arith.constant 0 : i32
    %c0_i32_0 = arith.constant 0 : i32
    %c0_i32_1 = arith.constant 0 : i32
    return %c0_i32, %c0_i32_0 : i32, i32
  }
  func.func @transform_3(%arg0: i32, %arg1: i32) -> (i32, i32, i32) {
    %c0_i32 = arith.constant 0 : i32
    %c0_i32_0 = arith.constant 0 : i32
    return %arg0, %arg1, %c0_i32 : i32, i32, i32
  }
}

</mosaic_0001>

<bundles_post_ra>
// kernel: cnn3d_forward.2
= control target key start
LH: loop header
LB: loop body
LE: loop exit
PB: predicated region body
PF: predicated region fallthrough
CT: control target
= control target key end

     0   :  { %s4442_s12 = smov 0   ;;  %s4444_s13 = smov 0   ;;  %s5357_s0 = inlined_call_operand.vmem [shape: bf16[2,8,352,128], index: 0, kind: input, shape index: {}]   ;;  %s5358_s1 = inlined_call_operand.vmem [shape: bf16[128,32], index: 1, kind: input, shape index: {}]   ;;  %s5359_s2 = inlined_call_operand.vmem [shape: f32[1,32], index: 2, kind: input, shape index: {}]   ;;  %s5360_s3 = inlined_call_operand.vmem [shape: bf16[2,352,32], index: 3, kind: output, shape index: {}]  }
   0x1   :  { %s4446_s14 = smov 0  }
   0x2 LB: > { %s25_s15 = sadd.s32 1, %s4416_s13  ;;  %p3181_p0 = scmp.ge.s32.totalorder %s4420_s14, 1  ;;  %s4420_s14 = sphi %s4446_s14, %s13_s14   ;;  %s4416_s13 = sphi %s4444_s13, %s5618_s13   ;;  %s4412_s12 = sphi %s4442_s12, %s5617_s12  }
   0x3   : > { %p27_p1 = scmp.ge.s32.totalorder %s25_s15, 2  ;;  %p158_p2 = scmp.lt.s32.totalorder %s4420_s14, 3 }
   0x5   : > { %s5620_s15 = smov (%p27_p1, %s25_s15), 0  ;;  %p159_p3 = pnand %p3181_p0, %p158_p2 }
   0x7   : > { %162 = sbr.rel (%p159_p3) target bundleno = 886 (0x376), region = 32 }
   0xc   : > { %v4193_v0 = vld [vmem:[%s5358_s1 + $0x38] sm:$0xff]  ;;  %v4192_v1 = vld [vmem:[%s5358_s1 + $0x30] sm:$0xff]  ;;  %v4191_v2 = vld [vmem:[%s5358_s1 + $0x28] sm:$0xff]  ;;  %p191_p4 = scmp.lt.s32.totalorder %s4412_s12, 1  ;;  %vm3045_vm0 = vcmask 257024  }
   0xd   : > { %626 = vmatpush.bf16.msra.mxu0 %v4193_v0  ;;  %1252 = vmatpush.bf16.msra.mxu1 %v4193_v0  ;;  %v4190_v3 = vld [vmem:[%s5358_s1 + $0x20] sm:$0xff]  ;;  %v4189_v4 = vld [vmem:[%s5358_s1 + $0x18] sm:$0xff]  ;;  %v4188_v5 = vld [vmem:[%s5358_s1 + $0x10] sm:$0xff] }
   0xe   : > { %1922 = vmatpush.bf16.msra.mxu2 %v4193_v0  ;;  %2592 = vmatpush.bf16.msra.mxu3 %v4193_v0  ;;  %s5622_s12 = smov (!%p191_p4, %s4412_s12), 1  ;;  %v4187_v6 = vld [vmem:[%s5358_s1 + $0x8] sm:$0xff]  ;;  %v4186_v7 = vld [vmem:[%s5358_s1] sm:$0xff] }
   0xf   : > { %s4370_s30 = smul.u32 1408, %s5622_s12 }
  0x10   : > { %s4371_s11 = smul.u32 176, %s5622_s12 }
  0x11   : > { %627 = vmatpush.bf16.msra.mxu0 %v4192_v1  ;;  %1253 = vmatpush.bf16.msra.mxu1 %v4192_v1  ;;  %s4494_s8 = scalar_lea.vmem %s5357_s0, %s4370_s30 }
  0x12   : > { %1923 = vmatpush.bf16.msra.mxu2 %v4192_v1  ;;  %2593 = vmatpush.bf16.msra.mxu3 %v4192_v1  ;;  %v4194_v8 = vld [vmem:[%s4494_s8] sm:$0xff]  ;;  %v4195_v12 = vld [vmem:[%s4494_s8 + $0x8] sm:$0xff]  ;;  %v4196_v16 = vld [vmem:[%s4494_s8 + $0x10] sm:$0xff]  ;;  %s4993_s18 = scalar_lea.vmem %s5360_s3, %s4371_s11 }
  0x13   : > { %v4238_v9 = vld [vmem:[%s4494_s8 + $0x160] sm:$0xff]  ;;  %v4239_v13 = vld [vmem:[%s4494_s8 + $0x168] sm:$0xff]  ;;  %v4240_v17 = vld [vmem:[%s4494_s8 + $0x170] sm:$0xff] }
  0x14   : > { %v4282_v10 = vld [vmem:[%s4494_s8 + $0x2c0] sm:$0xff]  ;;  %v4283_v14 = vld [vmem:[%s4494_s8 + $0x2c8] sm:$0xff]  ;;  %v4284_v18 = vld [vmem:[%s4494_s8 + $0x2d0] sm:$0xff] }
  0x15   : > { %628 = vmatpush.bf16.msra.mxu0 %v4191_v2  ;;  %1254 = vmatpush.bf16.msra.mxu1 %v4191_v2  ;;  %v4326_v11 = vld [vmem:[%s4494_s8 + $0x420] sm:$0xff]  ;;  %v4327_v15 = vld [vmem:[%s4494_s8 + $0x428] sm:$0xff]  ;;  %v4328_v19 = vld [vmem:[%s4494_s8 + $0x430] sm:$0xff] }
  0x16   : > { %1924 = vmatpush.bf16.msra.mxu2 %v4191_v2  ;;  %2594 = vmatpush.bf16.msra.mxu3 %v4191_v2  ;;  %v4197_v20 = vld [vmem:[%s4494_s8 + $0x18] sm:$0xff]  ;;  %v4198_v24 = vld [vmem:[%s4494_s8 + $0x20] sm:$0xff]  ;;  %v4199_v28 = vld [vmem:[%s4494_s8 + $0x28] sm:$0xff] }
  0x17   : > { %v4241_v21 = vld [vmem:[%s4494_s8 + $0x178] sm:$0xff]  ;;  %v4242_v25 = vld [vmem:[%s4494_s8 + $0x180] sm:$0xff]  ;;  %v4243_v29 = vld [vmem:[%s4494_s8 + $0x188] sm:$0xff] }
  0x18   : > { %v4285_v22 = vld [vmem:[%s4494_s8 + $0x2d8] sm:$0xff]  ;;  %v4286_v26 = vld [vmem:[%s4494_s8 + $0x2e0] sm:$0xff]  ;;  %v4287_v30 = vld [vmem:[%s4494_s8 + $0x2e8] sm:$0xff] }
  0x19   : > { %629 = vmatpush.bf16.msra.mxu0 %v4190_v3  ;;  %1255 = vmatpush.bf16.msra.mxu1 %v4190_v3  ;;  %v4329_v23 = vld [vmem:[%s4494_s8 + $0x438] sm:$0xff]  ;;  %v4330_v27 = vld [vmem:[%s4494_s8 + $0x440] sm:$0xff]  ;;  %v4331_v31 = vld [vmem:[%s4494_s8 + $0x448] sm:$0xff] }
  0x1a   : > { %1925 = vmatpush.bf16.msra.mxu2 %v4190_v3  ;;  %2595 = vmatpush.bf16.msra.mxu3 %v4190_v3  ;;  %v4200_v32 = vld [vmem:[%s4494_s8 + $0x30] sm:$0xff]  ;;  %v4201_v36 = vld [vmem:[%s4494_s8 + $0x38] sm:$0xff]  ;;  %v4202_v40 = vld [vmem:[%s4494_s8 + $0x40] sm:$0xff] }
  0x1b   : > { %v4244_v33 = vld [vmem:[%s4494_s8 + $0x190] sm:$0xff]  ;;  %v4245_v37 = vld [vmem:[%s4494_s8 + $0x198] sm:$0xff]  ;;  %v4246_v41 = vld [vmem:[%s4494_s8 + $0x1a0] sm:$0xff] }
  0x1c   : > { %v4288_v34 = vld [vmem:[%s4494_s8 + $0x2f0] sm:$0xff]  ;;  %v4289_v38 = vld [vmem:[%s4494_s8 + $0x2f8] sm:$0xff]  ;;  %v4290_v44 = vld [vmem:[%s4494_s8 + $0x300] sm:$0xff] }
  0x1d   : > { %630 = vmatpush.bf16.msra.mxu0 %v4189_v4  ;;  %1256 = vmatpush.bf16.msra.mxu1 %v4189_v4  ;;  %v4332_v35 = vld [vmem:[%s4494_s8 + $0x450] sm:$0xff]  ;;  %v4333_v39 = vld [vmem:[%s4494_s8 + $0x458] sm:$0xff]  ;;  %v4334_v45 = vld [vmem:[%s4494_s8 + $0x460] sm:$0xff] }
  0x1e   : > { %1926 = vmatpush.bf16.msra.mxu2 %v4189_v4  ;;  %2596 = vmatpush.bf16.msra.mxu3 %v4189_v4  ;;  %v4203_v52 = vld [vmem:[%s4494_s8 + $0x48] sm:$0xff]  ;;  %v4204_v0 = vld [vmem:[%s4494_s8 + $0x50] sm:$0xff] }
  0x1f   : > { %v4247_v53 = vld [vmem:[%s4494_s8 + $0x1a8] sm:$0xff]  ;;  %v4248_v1 = vld [vmem:[%s4494_s8 + $0x1b0] sm:$0xff] }
  0x20   : > { %v4291_v56 = vld [vmem:[%s4494_s8 + $0x308] sm:$0xff]  ;;  %v4292_v4 = vld [vmem:[%s4494_s8 + $0x310] sm:$0xff] }
  0x21   : > { %631 = vmatpush.bf16.msra.mxu0 %v4188_v5  ;;  %1257 = vmatpush.bf16.msra.mxu1 %v4188_v5  ;;  %v4335_v57 = vld [vmem:[%s4494_s8 + $0x468] sm:$0xff] }
  0x22   : > { %1927 = vmatpush.bf16.msra.mxu2 %v4188_v5  ;;  %2597 = vmatpush.bf16.msra.mxu3 %v4188_v5  ;;  %v4336_v5 = vld [vmem:[%s4494_s8 + $0x470] sm:$0xff] }
  0x25   : > { %632 = vmatpush.bf16.msra.mxu0 %v4187_v6  ;;  %1258 = vmatpush.bf16.msra.mxu1 %v4187_v6 }
  0x26   : > { %1928 = vmatpush.bf16.msra.mxu2 %v4187_v6  ;;  %2598 = vmatpush.bf16.msra.mxu3 %v4187_v6 }
  0x29   : > { %633 = vmatpush.bf16.msra.mxu0 %v4186_v7  ;;  %1259 = vmatpush.bf16.msra.mxu1 %v4186_v7 }
  0x2a   : > { %1929 = vmatpush.bf16.msra.mxu2 %v4186_v7  ;;  %2599 = vmatpush.bf16.msra.mxu3 %v4186_v7 }
  0x2c   : > { %634 = vmatmul.bf16.vlgmr.msra.gmra.mxu0 %v4194_v8  ;;  %1260 = vmatmul.bf16.vlgmr.msra.gmra.mxu1 %v4238_v9 }
  0x2d   : > { %1930 = vmatmul.bf16.vlgmr.msra.gmra.mxu2 %v4282_v10  ;;  %2600 = vmatmul.bf16.vlgmr.msra.gmra.mxu3 %v4326_v11 }
  0x3c   : > { %639 = vmatmul.bf16.gmra.mxu0 %v4195_v12  ;;  %1265 = vmatmul.bf16.gmra.mxu1 %v4239_v13  ;;  %v4205_v12 = vld [vmem:[%s4494_s8 + $0x58] sm:$0xff] }
  0x3d   : > { %1935 = vmatmul.bf16.gmra.mxu2 %v4283_v14  ;;  %2605 = vmatmul.bf16.gmra.mxu3 %v4327_v15  ;;  %v4249_v13 = vld [vmem:[%s4494_s8 + $0x1b8] sm:$0xff] }
  0x4c   : > { %644 = vmatmul.bf16.gmra.mxu0 %v4196_v16  ;;  %1270 = vmatmul.bf16.gmra.mxu1 %v4240_v17  ;;  %v4293_v16 = vld [vmem:[%s4494_s8 + $0x318] sm:$0xff] }
  0x4d   : > { %1940 = vmatmul.bf16.gmra.mxu2 %v4284_v18  ;;  %2610 = vmatmul.bf16.gmra.mxu3 %v4328_v19  ;;  %v4337_v17 = vld [vmem:[%s4494_s8 + $0x478] sm:$0xff] }
  0x5c   : > { %649 = vmatmul.bf16.gmra.mxu0 %v4197_v20  ;;  %1275 = vmatmul.bf16.gmra.mxu1 %v4241_v21 }
  0x5d   : > { %1945 = vmatmul.bf16.gmra.mxu2 %v4285_v22  ;;  %2615 = vmatmul.bf16.gmra.mxu3 %v4329_v23 }
  0x6c   : > { %654 = vmatmul.bf16.gmra.mxu0 %v4198_v24  ;;  %1280 = vmatmul.bf16.gmra.mxu1 %v4242_v25  ;;  %v4206_v24 = vld [vmem:[%s4494_s8 + $0x60] sm:$0xff] }
  0x6d   : > { %1950 = vmatmul.bf16.gmra.mxu2 %v4286_v26  ;;  %2620 = vmatmul.bf16.gmra.mxu3 %v4330_v27  ;;  %v4250_v25 = vld [vmem:[%s4494_s8 + $0x1c0] sm:$0xff] }
  0x7c   : > { %659 = vmatmul.bf16.gmra.mxu0 %v4199_v28  ;;  %1285 = vmatmul.bf16.gmra.mxu1 %v4243_v29  ;;  %v4294_v28 = vld [vmem:[%s4494_s8 + $0x320] sm:$0xff] }
  0x7d   : > { %1955 = vmatmul.bf16.gmra.mxu2 %v4287_v30  ;;  %2625 = vmatmul.bf16.gmra.mxu3 %v4331_v31  ;;  %v4338_v29 = vld [vmem:[%s4494_s8 + $0x480] sm:$0xff] }
  0x8c   : > { %664 = vmatmul.bf16.gmra.mxu0 %v4200_v32  ;;  %1290 = vmatmul.bf16.gmra.mxu1 %v4244_v33 }
  0x8d   : > { %1960 = vmatmul.bf16.gmra.mxu2 %v4288_v34  ;;  %2630 = vmatmul.bf16.gmra.mxu3 %v4332_v35 }
  0x9c   : > { %669 = vmatmul.bf16.gmra.mxu0 %v4201_v36  ;;  %1295 = vmatmul.bf16.gmra.mxu1 %v4245_v37  ;;  %v4207_v36 = vld [vmem:[%s4494_s8 + $0x68] sm:$0xff] }
  0x9d   : > { %1965 = vmatmul.bf16.gmra.mxu2 %v4289_v38  ;;  %2635 = vmatmul.bf16.gmra.mxu3 %v4333_v39  ;;  %v4251_v37 = vld [vmem:[%s4494_s8 + $0x1c8] sm:$0xff] }
  0xa9   : > { %v4530_v42 = vpop.f32.mrf.mxu0  ;;  %v4532_v43 = vpop.f32.mrf.mxu1 }
  0xac   : > { %674 = vmatmul.bf16.gmra.mxu0 %v4202_v40  ;;  %1300 = vmatmul.bf16.gmra.mxu1 %v4246_v41  ;;  %v4295_v40 = vld [vmem:[%s4494_s8 + $0x328] sm:$0xff] }
  0xad   : > { %1970 = vmatmul.bf16.gmra.mxu2 %v4290_v44  ;;  %2640 = vmatmul.bf16.gmra.mxu3 %v4334_v45  ;;  %v4339_v41 = vld [vmem:[%s4494_s8 + $0x488] sm:$0xff] }
  0xb0   : > { %v4536_v46 = vpop.f32.mrf.mxu2  ;;  %v4538_v47 = vpop.f32.mrf.mxu3 }
  0xb1   : > { %v4540_v48 = vpop.f32.mrf.mxu0  ;;  %v4542_v49 = vpop.f32.mrf.mxu1 }
  0xb8   : > { %v4544_v50 = vpop.f32.mrf.mxu2  ;;  %v4546_v51 = vpop.f32.mrf.mxu3 }
  0xb9   : > { %v4550_v54 = vpop.f32.mrf.mxu0  ;;  %v4552_v55 = vpop.f32.mrf.mxu1 }
  0xbc   : > { %679 = vmatmul.bf16.gmra.mxu0 %v4203_v52  ;;  %1305 = vmatmul.bf16.gmra.mxu1 %v4247_v53 }
  0xbd   : > { %1975 = vmatmul.bf16.gmra.mxu2 %v4291_v56  ;;  %2645 = vmatmul.bf16.gmra.mxu3 %v4335_v57 }
  0xc0   : > { %v4556_v58 = vpop.f32.mrf.mxu2  ;;  %v4558_v59 = vpop.f32.mrf.mxu3 }
  0xc1   : > { %v4560_v60 = vpop.f32.mrf.mxu0  ;;  %v4562_v61 = vpop.f32.mrf.mxu1 }
  0xc8   : > { %v4564_v62 = vpop.f32.mrf.mxu2  ;;  %v4566_v63 = vpop.f32.mrf.mxu3 }
  0xc9   : > { %v4570_v2 = vpop.f32.mrf.mxu0  ;;  %v4572_v3 = vpop.f32.mrf.mxu1 }
  0xcc   : > { %684 = vmatmul.bf16.gmra.mxu0 %v4204_v0  ;;  %1310 = vmatmul.bf16.gmra.mxu1 %v4248_v1  ;;  %v4208_v0 = vld [vmem:[%s4494_s8 + $0x70] sm:$0xff] }
  0xcd   : > { %1980 = vmatmul.bf16.gmra.mxu2 %v4292_v4  ;;  %2650 = vmatmul.bf16.gmra.mxu3 %v4336_v5  ;;  %v4252_v1 = vld [vmem:[%s4494_s8 + $0x1d0] sm:$0xff] }
  0xd0   : > { %v4576_v6 = vpop.f32.mrf.mxu2  ;;  %v4578_v7 = vpop.f32.mrf.mxu3 }
  0xd1   : > { %v4580_v8 = vpop.f32.mrf.mxu0  ;;  %v4582_v9 = vpop.f32.mrf.mxu1 }
  0xd8   : > { %v4584_v10 = vpop.f32.mrf.mxu2  ;;  %v4586_v11 = vpop.f32.mrf.mxu3 }
  0xd9   : > { %v4590_v14 = vpop.f32.mrf.mxu0  ;;  %v4592_v15 = vpop.f32.mrf.mxu1 }
  0xdc   : > { %689 = vmatmul.bf16.gmra.mxu0 %v4205_v12  ;;  %1315 = vmatmul.bf16.gmra.mxu1 %v4249_v13  ;;  %v4296_v12 = vld [vmem:[%s4494_s8 + $0x330] sm:$0xff] }
  0xdd   : > { %1985 = vmatmul.bf16.gmra.mxu2 %v4293_v16  ;;  %2655 = vmatmul.bf16.gmra.mxu3 %v4337_v17  ;;  %v4340_v13 = vld [vmem:[%s4494_s8 + $0x490] sm:$0xff] }
  0xe0   : > { %v4596_v18 = vpop.f32.mrf.mxu2  ;;  %v4598_v19 = vpop.f32.mrf.mxu3 }
  0xe1   : > { %v4600_v20 = vpop.f32.mrf.mxu0  ;;  %v4602_v21 = vpop.f32.mrf.mxu1 }
  0xe8   : > { %v4604_v22 = vpop.f32.mrf.mxu2  ;;  %v4606_v23 = vpop.f32.mrf.mxu3 }
  0xe9   : > { %v4610_v26 = vpop.f32.mrf.mxu0  ;;  %v4612_v27 = vpop.f32.mrf.mxu1 }
  0xec   : > { %694 = vmatmul.bf16.gmra.mxu0 %v4206_v24  ;;  %1320 = vmatmul.bf16.gmra.mxu1 %v4250_v25 }
  0xed   : > { %1990 = vmatmul.bf16.gmra.mxu2 %v4294_v28  ;;  %2660 = vmatmul.bf16.gmra.mxu3 %v4338_v29 }
  0xf0   : > { %v4616_v30 = vpop.f32.mrf.mxu2  ;;  %v4618_v31 = vpop.f32.mrf.mxu3 }
  0xf1   : > { %v4620_v32 = vpop.f32.mrf.mxu0  ;;  %v4622_v33 = vpop.f32.mrf.mxu1 }
  0xf8   : > { %v4624_v34 = vpop.f32.mrf.mxu2  ;;  %v4626_v35 = vpop.f32.mrf.mxu3 }
  0xf9   : > { %v4630_v38 = vpop.f32.mrf.mxu0  ;;  %v4632_v39 = vpop.f32.mrf.mxu1 }
  0xfc   : > { %699 = vmatmul.bf16.gmra.mxu0 %v4207_v36  ;;  %1325 = vmatmul.bf16.gmra.mxu1 %v4251_v37  ;;  %v4209_v36 = vld [vmem:[%s4494_s8 + $0x78] sm:$0xff] }
  0xfd   : > { %1995 = vmatmul.bf16.gmra.mxu2 %v4295_v40  ;;  %2665 = vmatmul.bf16.gmra.mxu3 %v4339_v41  ;;  %v4253_v37 = vld [vmem:[%s4494_s8 + $0x1d8] sm:$0xff] }
 0x100   : > { %v4636_v44 = vpop.f32.mrf.mxu2  ;;  %v4638_v45 = vpop.f32.mrf.mxu3 }
 0x101   : > { %v4640_v52 = vpop.f32.mrf.mxu0  ;;  %v4642_v53 = vpop.f32.mrf.mxu1 }
 0x108   : > { %v4644_v56 = vpop.f32.mrf.mxu2  ;;  %v4646_v57 = vpop.f32.mrf.mxu3 }
 0x109   : > { %v4650_v4 = vpop.f32.mrf.mxu0  ;;  %v4652_v5 = vpop.f32.mrf.mxu1 }
 0x10a   : > { %5361 = vst [vmem:[#allocation2_spill] sm:$0xff] %v4650_v4  ;;  %v4357_v4 = vld [vmem:[%s4494_s8 + $0x518] sm:$0xff] }
 0x10b   : > { %5362 = vst [vmem:[#allocation3_spill] sm:$0xff] %v4652_v5 }
 0x10c   : > { %704 = vmatmul.bf16.gmra.mxu0 %v4208_v0  ;;  %1330 = vmatmul.bf16.gmra.mxu1 %v4252_v1  ;;  %v4297_v0 = vld [vmem:[%s4494_s8 + $0x338] sm:$0xff] }
 0x10d   : > { %2000 = vmatmul.bf16.gmra.mxu2 %v4296_v12  ;;  %2670 = vmatmul.bf16.gmra.mxu3 %v4340_v13  ;;  %v4341_v1 = vld [vmem:[%s4494_s8 + $0x498] sm:$0xff] }
 0x110   : > { %v4656_v16 = vpop.f32.mrf.mxu2  ;;  %v4658_v17 = vpop.f32.mrf.mxu3 }
 0x111   : > { %5363 = vst [vmem:[#allocation4_spill] sm:$0xff] %v4656_v16  ;;  %v4660_v24 = vpop.f32.mrf.mxu0  ;;  %v4662_v25 = vpop.f32.mrf.mxu1 }
 0x112   : > { %5364 = vst [vmem:[#allocation5_spill] sm:$0xff] %v4658_v17 }
 0x113   : > { %5365 = vst [vmem:[#allocation6_spill] sm:$0xff] %v4660_v24  ;;  %v4254_v24 = vld [vmem:[%s4494_s8 + $0x1e0] sm:$0xff] }
 0x114   : > { %5366 = vst [vmem:[#allocation7_spill] sm:$0xff] %v4662_v25 }
 0x118   : > { %v4664_v28 = vpop.f32.mrf.mxu2  ;;  %v4666_v29 = vpop.f32.mrf.mxu3 }
 0x119   : > { %5367 = vst [vmem:[#allocation8_spill] sm:$0xff] %v4664_v28  ;;  %v4670_v40 = vpop.f32.mrf.mxu0  ;;  %v4672_v41 = vpop.f32.mrf.mxu1 }
 0x11a   : > { %5368 = vst [vmem:[#allocation9_spill] sm:$0xff] %v4666_v29 }
 0x11b   : > { %5369 = vst [vmem:[#allocation10_spill] sm:$0xff] %v4670_v40 }
 0x11c   : > { %5370 = vst [vmem:[#allocation11_spill] sm:$0xff] %v4672_v41  ;;  %709 = vmatmul.bf16.gmra.mxu0 %v4209_v36  ;;  %1335 = vmatmul.bf16.gmra.mxu1 %v4253_v37  ;;  %v4210_v41 = vld [vmem:[%s4494_s8 + $0x80] sm:$0xff] }
 0x11d   : > { %2005 = vmatmul.bf16.gmra.mxu2 %v4297_v0  ;;  %2675 = vmatmul.bf16.gmra.mxu3 %v4341_v1  ;;  %v4298_v0 = vld [vmem:[%s4494_s8 + $0x340] sm:$0xff] }
 0x11e   : > { %v4342_v1 = vld [vmem:[%s4494_s8 + $0x4a0] sm:$0xff] }
 0x120   : > { %v4676_v12 = vpop.f32.mrf.mxu2  ;;  %v4678_v13 = vpop.f32.mrf.mxu3 }
 0x121   : > { %5371 = vst [vmem:[#allocation12_spill] sm:$0xff] %v4676_v12  ;;  %v4680_v29 = vpop.f32.mrf.mxu0  ;;  %v4682_v28 = vpop.f32.mrf.mxu1  ;;  %v4255_v12 = vld [vmem:[%s4494_s8 + $0x1e8] sm:$0xff] }
 0x122   : > { %5372 = vst [vmem:[#allocation13_spill] sm:$0xff] %v4678_v13 }
 0x123   : > { %5373 = vst [vmem:[#allocation14_spill] sm:$0xff] %v4680_v29 }
 0x124   : > { %5374 = vst [vmem:[#allocation15_spill] sm:$0xff] %v4682_v28 }
 0x128   : > { %v4684_v25 = vpop.f32.mrf.mxu2  ;;  %v4686_v40 = vpop.f32.mrf.mxu3 }
 0x129   : > { %5375 = vst [vmem:[#allocation16_spill] sm:$0xff] %v4684_v25  ;;  %v4690_v36 = vpop.f32.mrf.mxu0  ;;  %v4692_v37 = vpop.f32.mrf.mxu1 }
 0x12a   : > { %5376 = vst [vmem:[#allocation17_spill] sm:$0xff] %v4686_v40 }
 0x12b   : > { %5377 = vst [vmem:[#allocation18_spill] sm:$0xff] %v4690_v36 }
 0x12c   : > { %5378 = vst [vmem:[#allocation19_spill] sm:$0xff] %v4692_v37  ;;  %714 = vmatmul.bf16.gmra.mxu0 %v4210_v41  ;;  %1340 = vmatmul.bf16.gmra.mxu1 %v4254_v24  ;;  %v4211_v37 = vld [vmem:[%s4494_s8 + $0x88] sm:$0xff] }
 0x12d   : > { %2010 = vmatmul.bf16.gmra.mxu2 %v4298_v0  ;;  %2680 = vmatmul.bf16.gmra.mxu3 %v4342_v1  ;;  %v4299_v0 = vld [vmem:[%s4494_s8 + $0x348] sm:$0xff] }
 0x12e   : > { %v4343_v1 = vld [vmem:[%s4494_s8 + $0x4a8] sm:$0xff] }
 0x130   : > { %v4696_v28 = vpop.f32.mrf.mxu2  ;;  %v4698_v25 = vpop.f32.mrf.mxu3 }
 0x131   : > { %5379 = vst [vmem:[#allocation20_spill] sm:$0xff] %v4696_v28  ;;  %v4700_v40 = vpop.f32.mrf.mxu0  ;;  %v4702_v29 = vpop.f32.mrf.mxu1  ;;  %v4256_v28 = vld [vmem:[%s4494_s8 + $0x1f0] sm:$0xff] }
 0x132   : > { %5380 = vst [vmem:[#allocation21_spill] sm:$0xff] %v4698_v25 }
 0x133   : > { %5381 = vst [vmem:[#allocation22_spill] sm:$0xff] %v4700_v40 }
 0x134   : > { %5382 = vst [vmem:[#allocation23_spill] sm:$0xff] %v4702_v29 }
 0x138   : > { %v4704_v13 = vpop.f32.mrf.mxu2  ;;  %v4706_v36 = vpop.f32.mrf.mxu3 }
 0x139   : > { %5383 = vst [vmem:[#allocation24_spill] sm:$0xff] %v4704_v13  ;;  %v4710_v41 = vpop.f32.mrf.mxu0  ;;  %v4712_v24 = vpop.f32.mrf.mxu1 }
 0x13a   : > { %5384 = vst [vmem:[#allocation25_spill] sm:$0xff] %v4706_v36 }
 0x13b   : > { %5385 = vst [vmem:[#allocation26_spill] sm:$0xff] %v4710_v41 }
 0x13c   : > { %5386 = vst [vmem:[#allocation27_spill] sm:$0xff] %v4712_v24  ;;  %719 = vmatmul.bf16.gmra.mxu0 %v4211_v37  ;;  %1345 = vmatmul.bf16.gmra.mxu1 %v4255_v12  ;;  %v4212_v24 = vld [vmem:[%s4494_s8 + $0x90] sm:$0xff] }
 0x13d   : > { %2015 = vmatmul.bf16.gmra.mxu2 %v4299_v0  ;;  %2685 = vmatmul.bf16.gmra.mxu3 %v4343_v1  ;;  %v4300_v0 = vld [vmem:[%s4494_s8 + $0x350] sm:$0xff] }
 0x13e   : > { %v4344_v1 = vld [vmem:[%s4494_s8 + $0x4b0] sm:$0xff] }
 0x140   : > { %v4716_v29 = vpop.f32.mrf.mxu2  ;;  %v4718_v13 = vpop.f32.mrf.mxu3 }
 0x141   : > { %5387 = vst [vmem:[#allocation28_spill] sm:$0xff] %v4716_v29  ;;  %v4720_v36 = vpop.f32.mrf.mxu0  ;;  %v4722_v40 = vpop.f32.mrf.mxu1  ;;  %v4257_v29 = vld [vmem:[%s4494_s8 + $0x1f8] sm:$0xff] }
 0x142   : > { %5388 = vst [vmem:[#allocation29_spill] sm:$0xff] %v4718_v13 }
 0x143   : > { %5389 = vst [vmem:[#allocation30_spill] sm:$0xff] %v4720_v36 }
 0x144   : > { %5390 = vst [vmem:[#allocation31_spill] sm:$0xff] %v4722_v40 }
 0x148   : > { %v4724_v25 = vpop.f32.mrf.mxu2  ;;  %v4726_v41 = vpop.f32.mrf.mxu3 }
 0x149   : > { %5391 = vst [vmem:[#allocation32_spill] sm:$0xff] %v4724_v25  ;;  %v4730_v37 = vpop.f32.mrf.mxu0  ;;  %v4732_v12 = vpop.f32.mrf.mxu1 }
 0x14a   : > { %5392 = vst [vmem:[#allocation33_spill] sm:$0xff] %v4726_v41 }
 0x14b   : > { %5393 = vst [vmem:[#allocation34_spill] sm:$0xff] %v4730_v37 }
 0x14c   : > { %5394 = vst [vmem:[#allocation35_spill] sm:$0xff] %v4732_v12  ;;  %724 = vmatmul.bf16.gmra.mxu0 %v4212_v24  ;;  %1350 = vmatmul.bf16.gmra.mxu1 %v4256_v28  ;;  %v4213_v12 = vld [vmem:[%s4494_s8 + $0x98] sm:$0xff] }
 0x14d   : > { %2020 = vmatmul.bf16.gmra.mxu2 %v4300_v0  ;;  %2690 = vmatmul.bf16.gmra.mxu3 %v4344_v1  ;;  %v4301_v0 = vld [vmem:[%s4494_s8 + $0x358] sm:$0xff] }
 0x14e   : > { %v4345_v1 = vld [vmem:[%s4494_s8 + $0x4b8] sm:$0xff] }
 0x150   : > { %v4736_v40 = vpop.f32.mrf.mxu2  ;;  %v4738_v25 = vpop.f32.mrf.mxu3 }
 0x151   : > { %5395 = vst [vmem:[#allocation36_spill] sm:$0xff] %v4736_v40  ;;  %v4740_v41 = vpop.f32.mrf.mxu0  ;;  %v4742_v36 = vpop.f32.mrf.mxu1  ;;  %v4258_v40 = vld [vmem:[%s4494_s8 + $0x200] sm:$0xff] }
 0x152   : > { %5396 = vst [vmem:[#allocation37_spill] sm:$0xff] %v4738_v25 }
 0x153   : > { %5397 = vst [vmem:[#allocation38_spill] sm:$0xff] %v4740_v41 }
 0x154   : > { %5398 = vst [vmem:[#allocation39_spill] sm:$0xff] %v4742_v36 }
 0x158   : > { %v4744_v13 = vpop.f32.mrf.mxu2  ;;  %v4746_v37 = vpop.f32.mrf.mxu3 }
 0x159   : > { %5399 = vst [vmem:[#allocation40_spill] sm:$0xff] %v4744_v13  ;;  %v4750_v24 = vpop.f32.mrf.mxu0  ;;  %v4752_v28 = vpop.f32.mrf.mxu1 }
 0x15a   : > { %5400 = vst [vmem:[#allocation41_spill] sm:$0xff] %v4746_v37 }
 0x15b   : > { %5401 = vst [vmem:[#allocation42_spill] sm:$0xff] %v4750_v24 }
 0x15c   : > { %5402 = vst [vmem:[#allocation43_spill] sm:$0xff] %v4752_v28  ;;  %729 = vmatmul.bf16.gmra.mxu0 %v4213_v12  ;;  %1355 = vmatmul.bf16.gmra.mxu1 %v4257_v29  ;;  %v4214_v28 = vld [vmem:[%s4494_s8 + $0xa0] sm:$0xff] }
 0x15d   : > { %2025 = vmatmul.bf16.gmra.mxu2 %v4301_v0  ;;  %2695 = vmatmul.bf16.gmra.mxu3 %v4345_v1  ;;  %v4302_v0 = vld [vmem:[%s4494_s8 + $0x360] sm:$0xff] }
 0x15e   : > { %v4346_v1 = vld [vmem:[%s4494_s8 + $0x4c0] sm:$0xff] }
 0x160   : > { %v4756_v36 = vpop.f32.mrf.mxu2  ;;  %v4758_v13 = vpop.f32.mrf.mxu3 }
 0x161   : > { %5403 = vst [vmem:[#allocation44_spill] sm:$0xff] %v4756_v36  ;;  %v4760_v37 = vpop.f32.mrf.mxu0  ;;  %v4762_v41 = vpop.f32.mrf.mxu1  ;;  %v4259_v36 = vld [vmem:[%s4494_s8 + $0x208] sm:$0xff] }
 0x162   : > { %5404 = vst [vmem:[#allocation45_spill] sm:$0xff] %v4758_v13 }
 0x163   : > { %5405 = vst [vmem:[#allocation46_spill] sm:$0xff] %v4760_v37 }
 0x164   : > { %5406 = vst [vmem:[#allocation47_spill] sm:$0xff] %v4762_v41 }
 0x168   : > { %v4764_v25 = vpop.f32.mrf.mxu2  ;;  %v4766_v24 = vpop.f32.mrf.mxu3 }
 0x169   : > { %5407 = vst [vmem:[#allocation48_spill] sm:$0xff] %v4764_v25  ;;  %v4770_v12 = vpop.f32.mrf.mxu0  ;;  %v4772_v29 = vpop.f32.mrf.mxu1 }
 0x16a   : > { %5408 = vst [vmem:[#allocation49_spill] sm:$0xff] %v4766_v24 }
 0x16b   : > { %5409 = vst [vmem:[#allocation50_spill] sm:$0xff] %v4770_v12 }
 0x16c   : > { %5410 = vst [vmem:[#allocation51_spill] sm:$0xff] %v4772_v29  ;;  %734 = vmatmul.bf16.gmra.mxu0 %v4214_v28  ;;  %1360 = vmatmul.bf16.gmra.mxu1 %v4258_v40  ;;  %v4215_v29 = vld [vmem:[%s4494_s8 + $0xa8] sm:$0xff] }
 0x16d   : > { %2030 = vmatmul.bf16.gmra.mxu2 %v4302_v0  ;;  %2700 = vmatmul.bf16.gmra.mxu3 %v4346_v1  ;;  %v4303_v0 = vld [vmem:[%s4494_s8 + $0x368] sm:$0xff] }
 0x16e   : > { %v4347_v1 = vld [vmem:[%s4494_s8 + $0x4c8] sm:$0xff] }
 0x170   : > { %v4776_v41 = vpop.f32.mrf.mxu2  ;;  %v4778_v25 = vpop.f32.mrf.mxu3 }
 0x171   : > { %5411 = vst [vmem:[#allocation52_spill] sm:$0xff] %v4776_v41  ;;  %v4780_v24 = vpop.f32.mrf.mxu0  ;;  %v4782_v37 = vpop.f32.mrf.mxu1  ;;  %v4260_v41 = vld [vmem:[%s4494_s8 + $0x210] sm:$0xff] }
 0x172   : > { %5412 = vst [vmem:[#allocation53_spill] sm:$0xff] %v4778_v25 }
 0x173   : > { %5413 = vst [vmem:[#allocation54_spill] sm:$0xff] %v4780_v24 }
 0x174   : > { %5414 = vst [vmem:[#allocation55_spill] sm:$0xff] %v4782_v37 }
 0x178   : > { %v4784_v13 = vpop.f32.mrf.mxu2  ;;  %v4786_v12 = vpop.f32.mrf.mxu3 }
 0x179   : > { %5415 = vst [vmem:[#allocation56_spill] sm:$0xff] %v4784_v13  ;;  %v4790_v28 = vpop.f32.mrf.mxu0  ;;  %v4792_v40 = vpop.f32.mrf.mxu1 }
 0x17a   : > { %5416 = vst [vmem:[#allocation57_spill] sm:$0xff] %v4786_v12 }
 0x17b   : > { %5417 = vst [vmem:[#allocation58_spill] sm:$0xff] %v4790_v28 }
 0x17c   : > { %5418 = vst [vmem:[#allocation59_spill] sm:$0xff] %v4792_v40  ;;  %739 = vmatmul.bf16.gmra.mxu0 %v4215_v29  ;;  %1365 = vmatmul.bf16.gmra.mxu1 %v4259_v36  ;;  %v4216_v40 = vld [vmem:[%s4494_s8 + $0xb0] sm:$0xff] }
 0x17d   : > { %2035 = vmatmul.bf16.gmra.mxu2 %v4303_v0  ;;  %2705 = vmatmul.bf16.gmra.mxu3 %v4347_v1  ;;  %v4304_v0 = vld [vmem:[%s4494_s8 + $0x370] sm:$0xff] }
 0x17e   : > { %v4348_v1 = vld [vmem:[%s4494_s8 + $0x4d0] sm:$0xff] }
 0x180   : > { %v4796_v37 = vpop.f32.mrf.mxu2  ;;  %v4798_v13 = vpop.f32.mrf.mxu3 }
 0x181   : > { %5419 = vst [vmem:[#allocation60_spill] sm:$0xff] %v4796_v37  ;;  %v4800_v12 = vpop.f32.mrf.mxu0  ;;  %v4802_v24 = vpop.f32.mrf.mxu1  ;;  %v4261_v37 = vld [vmem:[%s4494_s8 + $0x218] sm:$0xff] }
 0x182   : > { %5420 = vst [vmem:[#allocation61_spill] sm:$0xff] %v4798_v13 }
 0x183   : > { %5421 = vst [vmem:[#allocation62_spill] sm:$0xff] %v4800_v12 }
 0x184   : > { %5422 = vst [vmem:[#allocation63_spill] sm:$0xff] %v4802_v24 }
 0x188   : > { %v4804_v25 = vpop.f32.mrf.mxu2  ;;  %v4806_v28 = vpop.f32.mrf.mxu3 }
 0x189   : > { %5423 = vst [vmem:[#allocation64_spill] sm:$0xff] %v4804_v25  ;;  %v4810_v29 = vpop.f32.mrf.mxu0  ;;  %v4812_v36 = vpop.f32.mrf.mxu1 }
 0x18a   : > { %5424 = vst [vmem:[#allocation65_spill] sm:$0xff] %v4806_v28 }
 0x18b   : > { %5425 = vst [vmem:[#allocation66_spill] sm:$0xff] %v4810_v29 }
 0x18c   : > { %5426 = vst [vmem:[#allocation67_spill] sm:$0xff] %v4812_v36  ;;  %744 = vmatmul.bf16.gmra.mxu0 %v4216_v40  ;;  %1370 = vmatmul.bf16.gmra.mxu1 %v4260_v41  ;;  %v4217_v36 = vld [vmem:[%s4494_s8 + $0xb8] sm:$0xff] }
 0x18d   : > { %2040 = vmatmul.bf16.gmra.mxu2 %v4304_v0  ;;  %2710 = vmatmul.bf16.gmra.mxu3 %v4348_v1  ;;  %v4305_v0 = vld [vmem:[%s4494_s8 + $0x378] sm:$0xff] }
 0x18e   : > { %v4349_v1 = vld [vmem:[%s4494_s8 + $0x4d8] sm:$0xff] }
 0x190   : > { %v4816_v24 = vpop.f32.mrf.mxu2  ;;  %v4818_v25 = vpop.f32.mrf.mxu3 }
 0x191   : > { %5427 = vst [vmem:[#allocation68_spill] sm:$0xff] %v4816_v24  ;;  %v4820_v28 = vpop.f32.mrf.mxu0  ;;  %v4822_v12 = vpop.f32.mrf.mxu1  ;;  %v4262_v24 = vld [vmem:[%s4494_s8 + $0x220] sm:$0xff] }
 0x192   : > { %5428 = vst [vmem:[#allocation69_spill] sm:$0xff] %v4818_v25 }
 0x193   : > { %5429 = vst [vmem:[#allocation70_spill] sm:$0xff] %v4820_v28 }
 0x194   : > { %5430 = vst [vmem:[#allocation71_spill] sm:$0xff] %v4822_v12 }
 0x198   : > { %v4824_v13 = vpop.f32.mrf.mxu2  ;;  %v4826_v29 = vpop.f32.mrf.mxu3 }
 0x199   : > { %5431 = vst [vmem:[#allocation72_spill] sm:$0xff] %v4824_v13  ;;  %v4830_v40 = vpop.f32.mrf.mxu0  ;;  %v4832_v41 = vpop.f32.mrf.mxu1 }
 0x19a   : > { %5432 = vst [vmem:[#allocation73_spill] sm:$0xff] %v4826_v29 }
 0x19b   : > { %5433 = vst [vmem:[#allocation74_spill] sm:$0xff] %v4830_v40 }
 0x19c   : > { %5434 = vst [vmem:[#allocation75_spill] sm:$0xff] %v4832_v41  ;;  %749 = vmatmul.bf16.gmra.mxu0 %v4217_v36  ;;  %1375 = vmatmul.bf16.gmra.mxu1 %v4261_v37  ;;  %v4218_v41 = vld [vmem:[%s4494_s8 + $0xc0] sm:$0xff] }
 0x19d   : > { %2045 = vmatmul.bf16.gmra.mxu2 %v4305_v0  ;;  %2715 = vmatmul.bf16.gmra.mxu3 %v4349_v1  ;;  %v4306_v0 = vld [vmem:[%s4494_s8 + $0x380] sm:$0xff] }
 0x19e   : > { %v4350_v1 = vld [vmem:[%s4494_s8 + $0x4e0] sm:$0xff] }
 0x1a0   : > { %v4836_v12 = vpop.f32.mrf.mxu2  ;;  %v4838_v13 = vpop.f32.mrf.mxu3 }
 0x1a1   : > { %5435 = vst [vmem:[#allocation76_spill] sm:$0xff] %v4836_v12  ;;  %v4840_v29 = vpop.f32.mrf.mxu0  ;;  %v4842_v28 = vpop.f32.mrf.mxu1  ;;  %v4263_v12 = vld [vmem:[%s4494_s8 + $0x228] sm:$0xff] }
 0x1a2   : > { %5436 = vst [vmem:[#allocation77_spill] sm:$0xff] %v4838_v13 }
 0x1a3   : > { %5437 = vst [vmem:[#allocation78_spill] sm:$0xff] %v4840_v29 }
 0x1a4   : > { %5438 = vst [vmem:[#allocation79_spill] sm:$0xff] %v4842_v28 }
 0x1a8   : > { %v4844_v25 = vpop.f32.mrf.mxu2  ;;  %v4846_v40 = vpop.f32.mrf.mxu3 }
 0x1a9   : > { %5439 = vst [vmem:[#allocation80_spill] sm:$0xff] %v4844_v25  ;;  %v4850_v36 = vpop.f32.mrf.mxu0  ;;  %v4852_v37 = vpop.f32.mrf.mxu1 }
 0x1aa   : > { %5440 = vst [vmem:[#allocation81_spill] sm:$0xff] %v4846_v40 }
 0x1ab   : > { %5441 = vst [vmem:[#allocation82_spill] sm:$0xff] %v4850_v36 }
 0x1ac   : > { %5442 = vst [vmem:[#allocation83_spill] sm:$0xff] %v4852_v37  ;;  %754 = vmatmul.bf16.gmra.mxu0 %v4218_v41  ;;  %1380 = vmatmul.bf16.gmra.mxu1 %v4262_v24  ;;  %v4219_v37 = vld [vmem:[%s4494_s8 + $0xc8] sm:$0xff] }
 0x1ad   : > { %2050 = vmatmul.bf16.gmra.mxu2 %v4306_v0  ;;  %2720 = vmatmul.bf16.gmra.mxu3 %v4350_v1  ;;  %v4307_v0 = vld [vmem:[%s4494_s8 + $0x388] sm:$0xff] }
 0x1ae   : > { %v4351_v1 = vld [vmem:[%s4494_s8 + $0x4e8] sm:$0xff] }
 0x1b0   : > { %v4856_v28 = vpop.f32.mrf.mxu2  ;;  %v4858_v25 = vpop.f32.mrf.mxu3 }
 0x1b1   : > { %5443 = vst [vmem:[#allocation84_spill] sm:$0xff] %v4856_v28  ;;  %v4860_v40 = vpop.f32.mrf.mxu0  ;;  %v4862_v29 = vpop.f32.mrf.mxu1  ;;  %v4264_v28 = vld [vmem:[%s4494_s8 + $0x230] sm:$0xff] }
 0x1b2   : > { %5444 = vst [vmem:[#allocation85_spill] sm:$0xff] %v4858_v25 }
 0x1b3   : > { %5445 = vst [vmem:[#allocation86_spill] sm:$0xff] %v4860_v40 }
 0x1b4   : > { %5446 = vst [vmem:[#allocation87_spill] sm:$0xff] %v4862_v29 }
 0x1b8   : > { %v4864_v13 = vpop.f32.mrf.mxu2  ;;  %v4866_v36 = vpop.f32.mrf.mxu3 }
 0x1b9   : > { %5447 = vst [vmem:[#allocation88_spill] sm:$0xff] %v4864_v13  ;;  %v4870_v41 = vpop.f32.mrf.mxu0  ;;  %v4872_v24 = vpop.f32.mrf.mxu1 }
 0x1ba   : > { %5448 = vst [vmem:[#allocation89_spill] sm:$0xff] %v4866_v36 }
 0x1bb   : > { %5449 = vst [vmem:[#allocation90_spill] sm:$0xff] %v4870_v41 }
 0x1bc   : > { %5450 = vst [vmem:[#allocation91_spill] sm:$0xff] %v4872_v24  ;;  %759 = vmatmul.bf16.gmra.mxu0 %v4219_v37  ;;  %1385 = vmatmul.bf16.gmra.mxu1 %v4263_v12  ;;  %v4220_v24 = vld [vmem:[%s4494_s8 + $0xd0] sm:$0xff] }
 0x1bd   : > { %2055 = vmatmul.bf16.gmra.mxu2 %v4307_v0  ;;  %2725 = vmatmul.bf16.gmra.mxu3 %v4351_v1  ;;  %v4308_v0 = vld [vmem:[%s4494_s8 + $0x390] sm:$0xff] }
 0x1be   : > { %v4352_v1 = vld [vmem:[%s4494_s8 + $0x4f0] sm:$0xff] }
 0x1c0   : > { %v4876_v29 = vpop.f32.mrf.mxu2  ;;  %v4878_v13 = vpop.f32.mrf.mxu3 }
 0x1c1   : > { %5451 = vst [vmem:[#allocation92_spill] sm:$0xff] %v4876_v29  ;;  %v4880_v36 = vpop.f32.mrf.mxu0  ;;  %v4882_v40 = vpop.f32.mrf.mxu1  ;;  %v4265_v29 = vld [vmem:[%s4494_s8 + $0x238] sm:$0xff] }
 0x1c2   : > { %5452 = vst [vmem:[#allocation93_spill] sm:$0xff] %v4878_v13 }
 0x1c3   : > { %5453 = vst [vmem:[#allocation94_spill] sm:$0xff] %v4880_v36 }
 0x1c4   : > { %5454 = vst [vmem:[#allocation95_spill] sm:$0xff] %v4882_v40 }
 0x1c8   : > { %v4884_v25 = vpop.f32.mrf.mxu2  ;;  %v4886_v41 = vpop.f32.mrf.mxu3 }
 0x1c9   : > { %5455 = vst [vmem:[#allocation96_spill] sm:$0xff] %v4884_v25  ;;  %v4890_v37 = vpop.f32.mrf.mxu0  ;;  %v4892_v12 = vpop.f32.mrf.mxu1 }
 0x1ca   : > { %5456 = vst [vmem:[#allocation97_spill] sm:$0xff] %v4886_v41 }
 0x1cb   : > { %5457 = vst [vmem:[#allocation98_spill] sm:$0xff] %v4890_v37 }
 0x1cc   : > { %5458 = vst [vmem:[#allocation99_spill] sm:$0xff] %v4892_v12  ;;  %764 = vmatmul.bf16.gmra.mxu0 %v4220_v24  ;;  %1390 = vmatmul.bf16.gmra.mxu1 %v4264_v28  ;;  %v4221_v12 = vld [vmem:[%s4494_s8 + $0xd8] sm:$0xff] }
 0x1cd   : > { %2060 = vmatmul.bf16.gmra.mxu2 %v4308_v0  ;;  %2730 = vmatmul.bf16.gmra.mxu3 %v4352_v1  ;;  %v4309_v0 = vld [vmem:[%s4494_s8 + $0x398] sm:$0xff] }
 0x1ce   : > { %v4353_v1 = vld [vmem:[%s4494_s8 + $0x4f8] sm:$0xff] }
 0x1d0   : > { %v4896_v40 = vpop.f32.mrf.mxu2  ;;  %v4898_v25 = vpop.f32.mrf.mxu3 }
 0x1d1   : > { %5459 = vst [vmem:[#allocation100_spill] sm:$0xff] %v4896_v40  ;;  %v4900_v41 = vpop.f32.mrf.mxu0  ;;  %v4902_v36 = vpop.f32.mrf.mxu1  ;;  %v4266_v40 = vld [vmem:[%s4494_s8 + $0x240] sm:$0xff] }
 0x1d2   : > { %5460 = vst [vmem:[#allocation101_spill] sm:$0xff] %v4898_v25 }
 0x1d3   : > { %5461 = vst [vmem:[#allocation102_spill] sm:$0xff] %v4900_v41 }
 0x1d4   : > { %5462 = vst [vmem:[#allocation103_spill] sm:$0xff] %v4902_v36 }
 0x1d8   : > { %v4904_v13 = vpop.f32.mrf.mxu2  ;;  %v4906_v37 = vpop.f32.mrf.mxu3 }
 0x1d9   : > { %5463 = vst [vmem:[#allocation104_spill] sm:$0xff] %v4904_v13  ;;  %v4910_v24 = vpop.f32.mrf.mxu0  ;;  %v4912_v28 = vpop.f32.mrf.mxu1 }
 0x1da   : > { %5464 = vst [vmem:[#allocation105_spill] sm:$0xff] %v4906_v37 }
 0x1db   : > { %5465 = vst [vmem:[#allocation106_spill] sm:$0xff] %v4910_v24 }
 0x1dc   : > { %5466 = vst [vmem:[#allocation107_spill] sm:$0xff] %v4912_v28  ;;  %769 = vmatmul.bf16.gmra.mxu0 %v4221_v12  ;;  %1395 = vmatmul.bf16.gmra.mxu1 %v4265_v29  ;;  %v4222_v28 = vld [vmem:[%s4494_s8 + $0xe0] sm:$0xff] }
 0x1dd   : > { %2065 = vmatmul.bf16.gmra.mxu2 %v4309_v0  ;;  %2735 = vmatmul.bf16.gmra.mxu3 %v4353_v1  ;;  %v4310_v0 = vld [vmem:[%s4494_s8 + $0x3a0] sm:$0xff] }
 0x1de   : > { %v4354_v1 = vld [vmem:[%s4494_s8 + $0x500] sm:$0xff] }
 0x1e0   : > { %v4916_v36 = vpop.f32.mrf.mxu2  ;;  %v4918_v13 = vpop.f32.mrf.mxu3 }
 0x1e1   : > { %5467 = vst [vmem:[#allocation108_spill] sm:$0xff] %v4916_v36  ;;  %v4920_v37 = vpop.f32.mrf.mxu0  ;;  %v4922_v41 = vpop.f32.mrf.mxu1  ;;  %v4267_v36 = vld [vmem:[%s4494_s8 + $0x248] sm:$0xff] }
 0x1e2   : > { %5468 = vst [vmem:[#allocation109_spill] sm:$0xff] %v4918_v13 }
 0x1e3   : > { %5469 = vst [vmem:[#allocation110_spill] sm:$0xff] %v4920_v37 }
 0x1e4   : > { %5470 = vst [vmem:[#allocation111_spill] sm:$0xff] %v4922_v41 }
 0x1e8   : > { %v4924_v25 = vpop.f32.mrf.mxu2  ;;  %v4926_v24 = vpop.f32.mrf.mxu3 }
 0x1e9   : > { %5471 = vst [vmem:[#allocation112_spill] sm:$0xff] %v4924_v25  ;;  %v4930_v12 = vpop.f32.mrf.mxu0  ;;  %v4932_v29 = vpop.f32.mrf.mxu1 }
 0x1ea   : > { %5472 = vst [vmem:[#allocation113_spill] sm:$0xff] %v4926_v24 }
 0x1eb   : > { %5473 = vst [vmem:[#allocation114_spill] sm:$0xff] %v4930_v12 }
 0x1ec   : > { %5474 = vst [vmem:[#allocation115_spill] sm:$0xff] %v4932_v29  ;;  %774 = vmatmul.bf16.gmra.mxu0 %v4222_v28  ;;  %1400 = vmatmul.bf16.gmra.mxu1 %v4266_v40  ;;  %v4223_v29 = vld [vmem:[%s4494_s8 + $0xe8] sm:$0xff] }
 0x1ed   : > { %2070 = vmatmul.bf16.gmra.mxu2 %v4310_v0  ;;  %2740 = vmatmul.bf16.gmra.mxu3 %v4354_v1  ;;  %v4311_v0 = vld [vmem:[%s4494_s8 + $0x3a8] sm:$0xff] }
 0x1ee   : > { %v4355_v1 = vld [vmem:[%s4494_s8 + $0x508] sm:$0xff] }
 0x1f0   : > { %v4936_v41 = vpop.f32.mrf.mxu2  ;;  %v4938_v25 = vpop.f32.mrf.mxu3 }
 0x1f1   : > { %5475 = vst [vmem:[#allocation116_spill] sm:$0xff] %v4936_v41  ;;  %v4940_v24 = vpop.f32.mrf.mxu0  ;;  %v4942_v37 = vpop.f32.mrf.mxu1  ;;  %v4268_v41 = vld [vmem:[%s4494_s8 + $0x250] sm:$0xff] }
 0x1f2   : > { %5476 = vst [vmem:[#allocation117_spill] sm:$0xff] %v4938_v25 }
 0x1f3   : > { %5477 = vst [vmem:[#allocation118_spill] sm:$0xff] %v4940_v24 }
 0x1f4   : > { %5478 = vst [vmem:[#allocation119_spill] sm:$0xff] %v4942_v37 }
 0x1f8   : > { %v4944_v13 = vpop.f32.mrf.mxu2  ;;  %v4946_v12 = vpop.f32.mrf.mxu3 }
 0x1f9   : > { %5479 = vst [vmem:[#allocation120_spill] sm:$0xff] %v4944_v13  ;;  %v4950_v28 = vpop.f32.mrf.mxu0  ;;  %v4952_v40 = vpop.f32.mrf.mxu1 }
 0x1fa   : > { %5480 = vst [vmem:[#allocation121_spill] sm:$0xff] %v4946_v12 }
 0x1fb   : > { %5481 = vst [vmem:[#allocation122_spill] sm:$0xff] %v4950_v28 }
 0x1fc   : > { %5482 = vst [vmem:[#allocation123_spill] sm:$0xff] %v4952_v40  ;;  %779 = vmatmul.bf16.gmra.mxu0 %v4223_v29  ;;  %1405 = vmatmul.bf16.gmra.mxu1 %v4267_v36  ;;  %v4224_v40 = vld [vmem:[%s4494_s8 + $0xf0] sm:$0xff] }
 0x1fd   : > { %2075 = vmatmul.bf16.gmra.mxu2 %v4311_v0  ;;  %2745 = vmatmul.bf16.gmra.mxu3 %v4355_v1  ;;  %v4312_v29 = vld [vmem:[%s4494_s8 + $0x3b0] sm:$0xff] }
 0x1fe   : > { %v4356_v36 = vld [vmem:[%s4494_s8 + $0x510] sm:$0xff] }
 0x200   : > { %v4956_v37 = vpop.f32.mrf.mxu2  ;;  %v4958_v13 = vpop.f32.mrf.mxu3 }
 0x201   : > { %5483 = vst [vmem:[#allocation124_spill] sm:$0xff] %v4956_v37  ;;  %v4960_v12 = vpop.f32.mrf.mxu0  ;;  %v4962_v24 = vpop.f32.mrf.mxu1 }
 0x202   : > { %5484 = vst [vmem:[#allocation125_spill] sm:$0xff] %v4958_v13 }
 0x203   : > { %5485 = vst [vmem:[#allocation126_spill] sm:$0xff] %v4960_v12 }
 0x204   : > { %5486 = vst [vmem:[#allocation127_spill] sm:$0xff] %v4962_v24 }
 0x208   : > { %v4964_v25 = vpop.f32.mrf.mxu2  ;;  %v4966_v28 = vpop.f32.mrf.mxu3 }
 0x209   : > { %5487 = vst [vmem:[#allocation128_spill] sm:$0xff] %v4964_v25  ;;  %v745_v17 = vpop.f32.mrf.mxu0  ;;  %v1371_v16 = vpop.f32.mrf.mxu1 }
 0x20a   : > { %5488 = vst [vmem:[#allocation129_spill] sm:$0xff] %v4966_v28  ;;  %v855_v0 = vmax.f32 %v4530_v42, %v745_v17  ;;  %v1481_v1 = vmax.f32 %v4532_v43, %v1371_v16  ;;  %v4979_v42 = vld [vmem:[%s5359_s2] ss:$0 sm:$0xff] }
 0x20c   : > { %784 = vmatmul.bf16.gmra.mxu0 %v4224_v40  ;;  %1410 = vmatmul.bf16.gmra.mxu1 %v4268_v41  ;;  %v1525_v28 = vmax.f32 %v855_v0, %v1481_v1  ;;  %v4313_v1 = vld [vmem:[%s4494_s8 + $0x3b8] sm:$0xff] }
 0x20d   : > { %2080 = vmatmul.bf16.gmra.mxu2 %v4312_v29  ;;  %2750 = vmatmul.bf16.gmra.mxu3 %v4356_v36 }
 0x210   : > { %v2041_v24 = vpop.f32.mrf.mxu2  ;;  %v2711_v25 = vpop.f32.mrf.mxu3 }
 0x211   : > { %v2151_v12 = vmax.f32 %v4536_v46, %v2041_v24  ;;  %v747_v13 = vpop.f32.mrf.mxu0  ;;  %v1373_v37 = vpop.f32.mrf.mxu1  ;;  %v2821_v40 = vmax.f32 %v4538_v47, %v2711_v25 }
 0x212   : > { %v856_v16 = vmax.f32 %v4540_v48, %v747_v13  ;;  %v1482_v17 = vmax.f32 %v4542_v49, %v1373_v37 }
 0x213   : > { %v2195_v5 = vmax.f32 %v1525_v28, %v2151_v12  ;;  %v4225_v12 = vld [vmem:[%s4494_s8 + $0xf8] sm:$0xff] }
 0x214   : > { %v4269_v28 = vld [vmem:[%s4494_s8 + $0x258] sm:$0xff]  ;;  %v1526_v25 = vmax.f32 %v856_v16, %v1482_v17 }
 0x215   : > { %v2865_v43 = vmax.f32 %v2195_v5, %v2821_v40 }
 0x217   : > { %v2913_v46 = vadd.f32 %v4979_v42, %v2865_v43 }
 0x218   : > { %v2043_v41 = vpop.f32.mrf.mxu2  ;;  %v2713_v24 = vpop.f32.mrf.mxu3 }
 0x219   : > { %v2957_v47 = vmax.f32 %v2913_v46, 0.0  ;;  %v2152_v29 = vmax.f32 %v4544_v50, %v2043_v41  ;;  %v750_v36 = vpop.f32.mrf.mxu0  ;;  %v1376_v0 = vpop.f32.mrf.mxu1  ;;  %v2822_v5 = vmax.f32 %v4546_v51, %v2713_v24 }
 0x21a   : > { %v857_v13 = vmax.f32 %v4550_v54, %v750_v36  ;;  %v1483_v37 = vmax.f32 %v4552_v55, %v1376_v0  ;;  %v4226_v36 = vld [vmem:[%s4494_s8 + $0x100] sm:$0xff] }
 0x21b   : > { %v3001_v48 = vpack.c.bf16 %v2957_v47, %v2957_v47  ;;  %v2196_v49 = vmax.f32 %v1526_v25, %v2152_v29  ;;  %v4270_v0 = vld [vmem:[%s4494_s8 + $0x260] sm:$0xff] }
 0x21c   : > { %789 = vmatmul.bf16.gmra.mxu0 %v4225_v12  ;;  %1415 = vmatmul.bf16.gmra.mxu1 %v4269_v28  ;;  %v1527_v51 = vmax.f32 %v857_v13, %v1483_v37  ;;  %v4358_v13 = vld [vmem:[%s4494_s8 + $0x520] sm:$0xff] }
 0x21d   : > { %3046 = vst.msk [vmem:[%s4993_s18] sm:$0xf] %vm3045_vm0, %v3001_v48  ;;  %v2866_v50 = vmax.f32 %v2196_v49, %v2822_v5  ;;  %2085 = vmatmul.bf16.gmra.mxu2 %v4313_v1  ;;  %2755 = vmatmul.bf16.gmra.mxu3 %v4357_v4 }
 0x21f   : > { %v2914_v40 = vadd.f32 %v4979_v42, %v2866_v50  ;;  %v4314_v50 = vld [vmem:[%s4494_s8 + $0x3c0] sm:$0xff] }
 0x220   : > { %v2046_v43 = vpop.f32.mrf.mxu2  ;;  %v2716_v16 = vpop.f32.mrf.mxu3 }
 0x221   : > { %v2958_v17 = vmax.f32 %v2914_v40, 0.0  ;;  %v2153_v46 = vmax.f32 %v4556_v58, %v2046_v43  ;;  %v752_v41 = vpop.f32.mrf.mxu0  ;;  %v1378_v24 = vpop.f32.mrf.mxu1  ;;  %v2823_v54 = vmax.f32 %v4558_v59, %v2716_v16 }
 0x222   : > { %v858_v4 = vmax.f32 %v4560_v60, %v752_v41  ;;  %v1484_v47 = vmax.f32 %v4562_v61, %v1378_v24 }
 0x223   : > { %v3002_v12 = vpack.c.bf16 %v2958_v17, %v2958_v17  ;;  %v2197_v28 = vmax.f32 %v1527_v51, %v2153_v46 }
 0x224   : > { %v1528_v48 = vmax.f32 %v858_v4, %v1484_v47 }
 0x225   : > { %3047 = vst.msk [vmem:[%s4993_s18 + $0x4] sm:$0xf] %vm3045_vm0, %v3002_v12  ;;  %v2867_v55 = vmax.f32 %v2197_v28, %v2823_v54 }
 0x227   : > { %v2915_v25 = vadd.f32 %v4979_v42, %v2867_v55 }
 0x228   : > { %v2048_v29 = vpop.f32.mrf.mxu2  ;;  %v2718_v58 = vpop.f32.mrf.mxu3 }
 0x229   : > { %v2959_v1 = vmax.f32 %v2915_v25, 0.0  ;;  %v2154_v49 = vmax.f32 %v4564_v62, %v2048_v29  ;;  %v755_v59 = vpop.f32.mrf.mxu0  ;;  %v1381_v5 = vpop.f32.mrf.mxu1  ;;  %v2824_v60 = vmax.f32 %v4566_v63, %v2718_v58  ;;  %v4227_v29 = vld [vmem:[%s4494_s8 + $0x108] sm:$0xff] }
 0x22a   : > { %v859_v43 = vmax.f32 %v4570_v2, %v755_v59  ;;  %v1485_v16 = vmax.f32 %v4572_v3, %v1381_v5  ;;  %v4271_v58 = vld [vmem:[%s4494_s8 + $0x268] sm:$0xff] }
 0x22b   : > { %v3003_v37 = vpack.c.bf16 %v2959_v1, %v2959_v1  ;;  %v2198_v40 = vmax.f32 %v1528_v48, %v2154_v49  ;;  %v4315_v49 = vld [vmem:[%s4494_s8 + $0x3c8] sm:$0xff] }
 0x22c   : > { %794 = vmatmul.bf16.gmra.mxu0 %v4226_v36  ;;  %1420 = vmatmul.bf16.gmra.mxu1 %v4270_v0  ;;  %v1529_v63 = vmax.f32 %v859_v43, %v1485_v16  ;;  %v4359_v59 = vld [vmem:[%s4494_s8 + $0x528] sm:$0xff] }
 0x22d   : > { %3048 = vst.msk [vmem:[%s4993_s18 + $0x8] sm:$0xf] %vm3045_vm0, %v3003_v37  ;;  %v2868_v61 = vmax.f32 %v2198_v40, %v2824_v60  ;;  %2090 = vmatmul.bf16.gmra.mxu2 %v4314_v50  ;;  %2760 = vmatmul.bf16.gmra.mxu3 %v4358_v13 }
 0x22f   : > { %v2916_v62 = vadd.f32 %v4979_v42, %v2868_v61 }
 0x230   : > { %v2051_v17 = vpop.f32.mrf.mxu2  ;;  %v2721_v51 = vpop.f32.mrf.mxu3 }
 0x231   : > { %v2960_v46 = vmax.f32 %v2916_v62, 0.0  ;;  %v2155_v41 = vmax.f32 %v4576_v6, %v2051_v17  ;;  %v757_v24 = vpop.f32.mrf.mxu0  ;;  %v1383_v12 = vpop.f32.mrf.mxu1  ;;  %v2825_v2 = vmax.f32 %v4578_v7, %v2721_v51 }
 0x232   : > { %v860_v55 = vmax.f32 %v4580_v8, %v757_v24  ;;  %v1486_v4 = vmax.f32 %v4582_v9, %v1383_v12  ;;  %v4228_v12 = vld [vmem:[%s4494_s8 + $0x110] sm:$0xff] }
 0x233   : > { %v3004_v28 = vpack.c.bf16 %v2960_v46, %v2960_v46  ;;  %v2199_v54 = vmax.f32 %v1529_v63, %v2155_v41 }
 0x234   : > { %v1530_v0 = vmax.f32 %v860_v55, %v1486_v4  ;;  %v4316_v4 = vld [vmem:[%s4494_s8 + $0x3d0] sm:$0xff] }
 0x235   : > { %3049 = vst.msk [vmem:[%s4993_s18 + $0xc] sm:$0xf] %vm3045_vm0, %v3004_v28  ;;  %v2869_v3 = vmax.f32 %v2199_v54, %v2825_v2  ;;  %v4272_v28 = vld [vmem:[%s4494_s8 + $0x270] sm:$0xff] }
 0x237   : > { %v2917_v47 = vadd.f32 %v4979_v42, %v2869_v3 }
 0x238   : > { %v2053_v25 = vpop.f32.mrf.mxu2  ;;  %v2723_v6 = vpop.f32.mrf.mxu3 }
 0x239   : > { %v2961_v36 = vmax.f32 %v2917_v47, 0.0  ;;  %v2156_v1 = vmax.f32 %v4584_v10, %v2053_v25  ;;  %v760_v7 = vpop.f32.mrf.mxu0  ;;  %v1386_v48 = vpop.f32.mrf.mxu1  ;;  %v2826_v8 = vmax.f32 %v4586_v11, %v2723_v6  ;;  %v4360_v47 = vld [vmem:[%s4494_s8 + $0x530] sm:$0xff] }
 0x23a   : > { %v861_v13 = vmax.f32 %v4590_v14, %v760_v7  ;;  %v1487_v37 = vmax.f32 %v4592_v15, %v1386_v48 }
 0x23b   : > { %v3005_v5 = vpack.c.bf16 %v2961_v36, %v2961_v36  ;;  %v2200_v50 = vmax.f32 %v1530_v0, %v2156_v1 }
 0x23c   : > { %799 = vmatmul.bf16.gmra.mxu0 %v4227_v29  ;;  %1425 = vmatmul.bf16.gmra.mxu1 %v4271_v58  ;;  %v1531_v11 = vmax.f32 %v861_v13, %v1487_v37  ;;  %v4229_v37 = vld [vmem:[%s4494_s8 + $0x118] sm:$0xff] }
 0x23d   : > { %3050 = vst.msk [vmem:[%s4993_s18 + $0x10] sm:$0xf] %vm3045_vm0, %v3005_v5  ;;  %v2870_v9 = vmax.f32 %v2200_v50, %v2826_v8  ;;  %2095 = vmatmul.bf16.gmra.mxu2 %v4315_v49  ;;  %2765 = vmatmul.bf16.gmra.mxu3 %v4359_v59 }
 0x23f   : > { %v2918_v10 = vadd.f32 %v4979_v42, %v2870_v9 }
 0x240   : > { %v2056_v40 = vpop.f32.mrf.mxu2  ;;  %v2726_v60 = vpop.f32.mrf.mxu3 }
 0x241   : > { %v2962_v61 = vmax.f32 %v2918_v10, 0.0  ;;  %v2157_v43 = vmax.f32 %v4596_v18, %v2056_v40  ;;  %v762_v16 = vpop.f32.mrf.mxu0  ;;  %v1388_v62 = vpop.f32.mrf.mxu1  ;;  %v2827_v14 = vmax.f32 %v4598_v19, %v2726_v60  ;;  %v4273_v10 = vld [vmem:[%s4494_s8 + $0x278] sm:$0xff] }
 0x242   : > { %v862_v46 = vmax.f32 %v4600_v20, %v762_v16  ;;  %v1488_v63 = vmax.f32 %v4602_v21, %v1388_v62  ;;  %v4361_v16 = vld [vmem:[%s4494_s8 + $0x538] sm:$0xff] }
 0x243   : > { %v3006_v17 = vpack.c.bf16 %v2962_v61, %v2962_v61  ;;  %v2201_v51 = vmax.f32 %v1531_v11, %v2157_v43  ;;  %v4317_v43 = vld [vmem:[%s4494_s8 + $0x3d8] sm:$0xff] }
 0x244   : > { %v1532_v2 = vmax.f32 %v862_v46, %v1488_v63 }
 0x245   : > { %3051 = vst.msk [vmem:[%s4993_s18 + $0x14] sm:$0xf] %vm3045_vm0, %v3006_v17  ;;  %v2871_v15 = vmax.f32 %v2201_v51, %v2827_v14 }
 0x247   : > { %v2919_v41 = vadd.f32 %v4979_v42, %v2871_v15 }
 0x248   : > { %v2058_v24 = vpop.f32.mrf.mxu2  ;;  %v2728_v18 = vpop.f32.mrf.mxu3 }
 0x249   : > { %v2963_v54 = vmax.f32 %v2919_v41, 0.0  ;;  %v2158_v3 = vmax.f32 %v4604_v22, %v2058_v24  ;;  %v765_v19 = vpop.f32.mrf.mxu0  ;;  %v1391_v55 = vpop.f32.mrf.mxu1  ;;  %v2828_v20 = vmax.f32 %v4606_v23, %v2728_v18 }
 0x24a   : > { %v863_v29 = vmax.f32 %v4610_v26, %v765_v19  ;;  %v1489_v58 = vmax.f32 %v4612_v27, %v1391_v55  ;;  %v4230_v55 = vld [vmem:[%s4494_s8 + $0x120] sm:$0xff] }
 0x24b   : > { %v3007_v25 = vpack.c.bf16 %v2963_v54, %v2963_v54  ;;  %v2202_v6 = vmax.f32 %v1532_v2, %v2158_v3 }
 0x24c   : > { %804 = vmatmul.bf16.gmra.mxu0 %v4228_v12  ;;  %1430 = vmatmul.bf16.gmra.mxu1 %v4272_v28  ;;  %v1533_v23 = vmax.f32 %v863_v29, %v1489_v58  ;;  %v4362_v29 = vld [vmem:[%s4494_s8 + $0x540] sm:$0xff] }
 0x24d   : > { %3052 = vst.msk [vmem:[%s4993_s18 + $0x18] sm:$0xf] %vm3045_vm0, %v3007_v25  ;;  %v2872_v21 = vmax.f32 %v2202_v6, %v2828_v20  ;;  %2100 = vmatmul.bf16.gmra.mxu2 %v4316_v4  ;;  %2770 = vmatmul.bf16.gmra.mxu3 %v4360_v47  ;;  %v4274_v4 = vld [vmem:[%s4494_s8 + $0x280] sm:$0xff] }
 0x24f   : > { %v2920_v22 = vadd.f32 %v4979_v42, %v2872_v21  ;;  %v4318_v21 = vld [vmem:[%s4494_s8 + $0x3e0] sm:$0xff] }
 0x250   : > { %v2061_v36 = vpop.f32.mrf.mxu2  ;;  %v2731_v0 = vpop.f32.mrf.mxu3 }
 0x251   : > { %v2964_v1 = vmax.f32 %v2920_v22, 0.0  ;;  %v2159_v7 = vmax.f32 %v4616_v30, %v2061_v36  ;;  %v767_v48 = vpop.f32.mrf.mxu0  ;;  %v1393_v49 = vpop.f32.mrf.mxu1  ;;  %v2829_v26 = vmax.f32 %v4618_v31, %v2731_v0  ;;  %v5489_v36 = vld [vmem:[#allocation2_spill] sm:$0xff] }
 0x252   : > { %v864_v50 = vmax.f32 %v4620_v32, %v767_v48  ;;  %v1490_v8 = vmax.f32 %v4622_v33, %v1393_v49 }
 0x253   : > { %v3008_v59 = vpack.c.bf16 %v2964_v1, %v2964_v1  ;;  %v2203_v5 = vmax.f32 %v1533_v23, %v2159_v7  ;;  %v5490_v1 = vld [vmem:[#allocation3_spill] sm:$0xff] }
 0x254   : > { %v1534_v60 = vmax.f32 %v864_v50, %v1490_v8 }
 0x255   : > { %3053 = vst.msk [vmem:[%s4993_s18 + $0x1c] sm:$0xf] %vm3045_vm0, %v3008_v59  ;;  %v2873_v27 = vmax.f32 %v2203_v5, %v2829_v26  ;;  %v5491_v59 = vld [vmem:[#allocation4_spill] sm:$0xff] }
 0x257   : > { %v2921_v9 = vadd.f32 %v4979_v42, %v2873_v27 }
 0x258   : > { %v2063_v13 = vpop.f32.mrf.mxu2  ;;  %v2733_v30 = vpop.f32.mrf.mxu3 }
 0x259   : > { %v2965_v40 = vmax.f32 %v2921_v9, 0.0  ;;  %v2160_v61 = vmax.f32 %v4624_v34, %v2063_v13  ;;  %v770_v31 = vpop.f32.mrf.mxu0  ;;  %v1396_v11 = vpop.f32.mrf.mxu1  ;;  %v2830_v32 = vmax.f32 %v4626_v35, %v2733_v30  ;;  %v5492_v9 = vld [vmem:[#allocation5_spill] sm:$0xff] }
 0x25a   : > { %v865_v51 = vmax.f32 %v4630_v38, %v770_v31  ;;  %v1491_v14 = vmax.f32 %v4632_v39, %v1396_v11 }
 0x25b   : > { %v3009_v62 = vpack.c.bf16 %v2965_v40, %v2965_v40  ;;  %v2204_v17 = vmax.f32 %v1534_v60, %v2160_v61  ;;  %v5494_v40 = vld [vmem:[#allocation7_spill] sm:$0xff] }
 0x25c   : > { %809 = vmatmul.bf16.gmra.mxu0 %v4229_v37  ;;  %1435 = vmatmul.bf16.gmra.mxu1 %v4273_v10  ;;  %v1535_v35 = vmax.f32 %v865_v51, %v1491_v14  ;;  %v5493_v37 = vld [vmem:[#allocation6_spill] sm:$0xff] }
 0x25d   : > { %3054 = vst.msk [vmem:[%s4993_s18 + $0x20] sm:$0xf] %vm3045_vm0, %v3009_v62  ;;  %v2874_v33 = vmax.f32 %v2204_v17, %v2830_v32  ;;  %2105 = vmatmul.bf16.gmra.mxu2 %v4317_v43  ;;  %2775 = vmatmul.bf16.gmra.mxu3 %v4361_v16  ;;  %v4231_v43 = vld [vmem:[%s4494_s8 + $0x128] sm:$0xff]  ;;  %v5495_v32 = vld [vmem:[#allocation8_spill] sm:$0xff] }
 0x25e   : > { %v4275_v16 = vld [vmem:[%s4494_s8 + $0x288] sm:$0xff] }
 0x25f   : > { %v2922_v34 = vadd.f32 %v4979_v42, %v2874_v33 }
 0x260   : > { %v2066_v15 = vpop.f32.mrf.mxu2  ;;  %v2736_v46 = vpop.f32.mrf.mxu3 }
 0x261   : > { %v2966_v63 = vmax.f32 %v2922_v34, 0.0  ;;  %v2161_v41 = vmax.f32 %v4636_v44, %v2066_v15  ;;  %v772_v24 = vpop.f32.mrf.mxu0  ;;  %v1398_v18 = vpop.f32.mrf.mxu1  ;;  %v2831_v38 = vmax.f32 %v4638_v45, %v2736_v46  ;;  %v4319_v34 = vld [vmem:[%s4494_s8 + $0x3e8] sm:$0xff] }
 0x262   : > { %v866_v54 = vmax.f32 %v4640_v52, %v772_v24  ;;  %v1492_v2 = vmax.f32 %v4642_v53, %v1398_v18  ;;  %v4363_v15 = vld [vmem:[%s4494_s8 + $0x548] sm:$0xff]  ;;  %v5497_v18 = vld [vmem:[#allocation10_spill] sm:$0xff] }
 0x263   : > { %v3010_v12 = vpack.c.bf16 %v2966_v63, %v2966_v63  ;;  %v2205_v28 = vmax.f32 %v1535_v35, %v2161_v41  ;;  %v5496_v35 = vld [vmem:[#allocation9_spill] sm:$0xff] }
 0x264   : > { %v1536_v25 = vmax.f32 %v866_v54, %v1492_v2 }
 0x265   : > { %3055 = vst.msk [vmem:[%s4993_s18 + $0x24] sm:$0xf] %vm3045_vm0, %v3010_v12  ;;  %v2875_v39 = vmax.f32 %v2205_v28, %v2831_v38  ;;  %v5498_v28 = vld [vmem:[#allocation11_spill] sm:$0xff] }
 0x267   : > { %v2923_v3 = vadd.f32 %v4979_v42, %v2875_v39 }
 0x268   : > { %v2068_v19 = vpop.f32.mrf.mxu2  ;;  %v2738_v44 = vpop.f32.mrf.mxu3 }
 0x269   : > { %v2967_v47 = vmax.f32 %v2923_v3, 0.0  ;;  %v2162_v6 = vmax.f32 %v4644_v56, %v2068_v19  ;;  %v775_v45 = vpop.f32.mrf.mxu0  ;;  %v1401_v20 = vpop.f32.mrf.mxu1  ;;  %v2832_v52 = vmax.f32 %v4646_v57, %v2738_v44  ;;  %v5499_v44 = vld [vmem:[#allocation12_spill] sm:$0xff] }
 0x26a   : > { %v867_v0 = vmax.f32 %v5489_v36, %v775_v45  ;;  %v1493_v23 = vmax.f32 %v5490_v1, %v1401_v20  ;;  %v5500_v45 = vld [vmem:[#allocation13_spill] sm:$0xff]  ;;  %v4232_v1 = vld [vmem:[%s4494_s8 + $0x130] sm:$0xff] }
 0x26b   : > { %v3011_v58 = vpack.c.bf16 %v2967_v47, %v2967_v47  ;;  %v2206_v22 = vmax.f32 %v1536_v25, %v2162_v6 }
 0x26c   : > { %814 = vmatmul.bf16.gmra.mxu0 %v4230_v55  ;;  %1440 = vmatmul.bf16.gmra.mxu1 %v4274_v4  ;;  %v1537_v57 = vmax.f32 %v867_v0, %v1493_v23  ;;  %v4276_v23 = vld [vmem:[%s4494_s8 + $0x290] sm:$0xff] }
 0x26d   : > { %3056 = vst.msk [vmem:[%s4993_s18 + $0x28] sm:$0xf] %vm3045_vm0, %v3011_v58  ;;  %v2876_v53 = vmax.f32 %v2206_v22, %v2832_v52  ;;  %2110 = vmatmul.bf16.gmra.mxu2 %v4318_v21  ;;  %2780 = vmatmul.bf16.gmra.mxu3 %v4362_v29  ;;  %v5501_v29 = vld [vmem:[#allocation14_spill] sm:$0xff]  ;;  %v5502_v22 = vld [vmem:[#allocation15_spill] sm:$0xff] }
 0x26f   : > { %v2924_v56 = vadd.f32 %v4979_v42, %v2876_v53 }
 0x270   : > { %v2071_v7 = vpop.f32.mrf.mxu2  ;;  %v2741_v48 = vpop.f32.mrf.mxu3 }
 0x271   : > { %v2968_v49 = vmax.f32 %v2924_v56, 0.0  ;;  %v2163_v5 = vmax.f32 %v5491_v59, %v2071_v7  ;;  %v777_v26 = vpop.f32.mrf.mxu0  ;;  %v1403_v27 = vpop.f32.mrf.mxu1  ;;  %v2833_v13 = vmax.f32 %v5492_v9, %v2741_v48  ;;  %v5503_v48 = vld [vmem:[#allocation16_spill] sm:$0xff] }
 0x272   : > { %v868_v10 = vmax.f32 %v5493_v37, %v777_v26  ;;  %v1494_v60 = vmax.f32 %v5494_v40, %v1403_v27  ;;  %v4364_v26 = vld [vmem:[%s4494_s8 + $0x550] sm:$0xff] }
 0x273   : > { %v3012_v50 = vpack.c.bf16 %v2968_v49, %v2968_v49  ;;  %v2207_v8 = vmax.f32 %v1537_v57, %v2163_v5  ;;  %v4320_v5 = vld [vmem:[%s4494_s8 + $0x3f0] sm:$0xff] }
 0x274   : > { %v1538_v17 = vmax.f32 %v868_v10, %v1494_v60  ;;  %v5506_v10 = vld [vmem:[#allocation19_spill] sm:$0xff] }
 0x275   : > { %3057 = vst.msk [vmem:[%s4993_s18 + $0x2c] sm:$0xf] %vm3045_vm0, %v3012_v50  ;;  %v2877_v30 = vmax.f32 %v2207_v8, %v2833_v13  ;;  %v5504_v8 = vld [vmem:[#allocation17_spill] sm:$0xff] }
 0x277   : > { %v2925_v61 = vadd.f32 %v4979_v42, %v2877_v30  ;;  %v5505_v30 = vld [vmem:[#allocation18_spill] sm:$0xff] }
 0x278   : > { %v2073_v31 = vpop.f32.mrf.mxu2  ;;  %v2743_v11 = vpop.f32.mrf.mxu3 }
 0x279   : > { %v2969_v62 = vmax.f32 %v2925_v61, 0.0  ;;  %v2164_v33 = vmax.f32 %v5495_v32, %v2073_v31  ;;  %v780_v51 = vpop.f32.mrf.mxu0  ;;  %v1406_v14 = vpop.f32.mrf.mxu1  ;;  %v2834_v41 = vmax.f32 %v5496_v35, %v2743_v11  ;;  %v5510_v35 = vld [vmem:[#allocation23_spill] sm:$0xff] }
 0x27a   : > { %v869_v12 = vmax.f32 %v5497_v18, %v780_v51  ;;  %v1495_v38 = vmax.f32 %v5498_v28, %v1406_v14  ;;  %v5508_v14 = vld [vmem:[#allocation21_spill] sm:$0xff] }
 0x27b   : > { %v3013_v46 = vpack.c.bf16 %v2969_v62, %v2969_v62  ;;  %v2208_v63 = vmax.f32 %v1538_v17, %v2164_v33  ;;  %v4233_v28 = vld [vmem:[%s4494_s8 + $0x138] sm:$0xff] }
 0x27c   : > { %819 = vmatmul.bf16.gmra.mxu0 %v4231_v43  ;;  %1445 = vmatmul.bf16.gmra.mxu1 %v4275_v16  ;;  %v1539_v19 = vmax.f32 %v869_v12, %v1495_v38  ;;  %v5507_v16 = vld [vmem:[#allocation20_spill] sm:$0xff]  ;;  %v4277_v38 = vld [vmem:[%s4494_s8 + $0x298] sm:$0xff] }
 0x27d   : > { %3058 = vst.msk [vmem:[%s4993_s18 + $0x30] sm:$0xf] %vm3045_vm0, %v3013_v46  ;;  %v2878_v24 = vmax.f32 %v2208_v63, %v2834_v41  ;;  %2115 = vmatmul.bf16.gmra.mxu2 %v4319_v34  ;;  %2785 = vmatmul.bf16.gmra.mxu3 %v4363_v15  ;;  %v5509_v46 = vld [vmem:[#allocation22_spill] sm:$0xff] }
 0x27f   : > { %v2926_v39 = vadd.f32 %v4979_v42, %v2878_v24 }
 0x280   : > { %v2076_v54 = vpop.f32.mrf.mxu2  ;;  %v2746_v2 = vpop.f32.mrf.mxu3 }
 0x281   : > { %v2970_v3 = vmax.f32 %v2926_v39, 0.0  ;;  %v2165_v55 = vmax.f32 %v5499_v44, %v2076_v54  ;;  %v782_v4 = vpop.f32.mrf.mxu0  ;;  %v1408_v47 = vpop.f32.mrf.mxu1  ;;  %v2835_v20 = vmax.f32 %v5500_v45, %v2746_v2  ;;  %v5511_v2 = vld [vmem:[#allocation24_spill] sm:$0xff] }
 0x282   : > { %v870_v58 = vmax.f32 %v5501_v29, %v782_v4  ;;  %v1496_v52 = vmax.f32 %v5502_v22, %v1408_v47  ;;  %v4365_v4 = vld [vmem:[%s4494_s8 + $0x558] sm:$0xff] }
 0x283   : > { %v3014_v25 = vpack.c.bf16 %v2970_v3, %v2970_v3  ;;  %v2209_v6 = vmax.f32 %v1539_v19, %v2165_v55  ;;  %v4321_v55 = vld [vmem:[%s4494_s8 + $0x3f8] sm:$0xff] }
 0x284   : > { %v1540_v7 = vmax.f32 %v870_v58, %v1496_v52  ;;  %v5514_v58 = vld [vmem:[#allocation27_spill] sm:$0xff] }
 0x285   : > { %3059 = vst.msk [vmem:[%s4993_s18 + $0x34] sm:$0xf] %vm3045_vm0, %v3014_v25  ;;  %v2879_v21 = vmax.f32 %v2209_v6, %v2835_v20  ;;  %v5512_v6 = vld [vmem:[#allocation25_spill] sm:$0xff] }
 0x287   : > { %v2927_v53 = vadd.f32 %v4979_v42, %v2879_v21  ;;  %v5513_v21 = vld [vmem:[#allocation26_spill] sm:$0xff] }
 0x288   : > { %v2078_v36 = vpop.f32.mrf.mxu2  ;;  %v2748_v0 = vpop.f32.mrf.mxu3 }
 0x289   : > { %v2971_v56 = vmax.f32 %v2927_v53, 0.0  ;;  %v2166_v49 = vmax.f32 %v5503_v48, %v2078_v36  ;;  %v785_v57 = vpop.f32.mrf.mxu0  ;;  %v1411_v59 = vpop.f32.mrf.mxu1  ;;  %v2836_v9 = vmax.f32 %v5504_v8, %v2748_v0  ;;  %v5518_v8 = vld [vmem:[#allocation31_spill] sm:$0xff] }
 0x28a   : > { %v871_v37 = vmax.f32 %v5505_v30, %v785_v57  ;;  %v1497_v40 = vmax.f32 %v5506_v10, %v1411_v59  ;;  %v5516_v59 = vld [vmem:[#allocation29_spill] sm:$0xff]  ;;  %v4234_v10 = vld [vmem:[%s4494_s8 + $0x140] sm:$0xff] }
 0x28b   : > { %v3015_v27 = vpack.c.bf16 %v2971_v56, %v2971_v56  ;;  %v2210_v50 = vmax.f32 %v1540_v7, %v2166_v49 }
 0x28c   : > { %824 = vmatmul.bf16.gmra.mxu0 %v4232_v1  ;;  %1450 = vmatmul.bf16.gmra.mxu1 %v4276_v23  ;;  %v1541_v43 = vmax.f32 %v871_v37, %v1497_v40  ;;  %v5515_v23 = vld [vmem:[#allocation28_spill] sm:$0xff]  ;;  %v4278_v40 = vld [vmem:[%s4494_s8 + $0x2a0] sm:$0xff] }
 0x28d   : > { %3060 = vst.msk [vmem:[%s4993_s18 + $0x38] sm:$0xf] %vm3045_vm0, %v3015_v27  ;;  %v2880_v13 = vmax.f32 %v2210_v50, %v2836_v9  ;;  %2120 = vmatmul.bf16.gmra.mxu2 %v4320_v5  ;;  %2790 = vmatmul.bf16.gmra.mxu3 %v4364_v26  ;;  %v5517_v27 = vld [vmem:[#allocation30_spill] sm:$0xff] }
 0x28f   : > { %v2928_v60 = vadd.f32 %v4979_v42, %v2880_v13 }
 0x290   : > { %v2081_v61 = vpop.f32.mrf.mxu2  ;;  %v2751_v31 = vpop.f32.mrf.mxu3 }
 0x291   : > { %v2972_v11 = vmax.f32 %v2928_v60, 0.0  ;;  %v2167_v62 = vmax.f32 %v5507_v16, %v2081_v61  ;;  %v787_v17 = vpop.f32.mrf.mxu0  ;;  %v1413_v32 = vpop.f32.mrf.mxu1  ;;  %v2837_v34 = vmax.f32 %v5508_v14, %v2751_v31  ;;  %v5519_v31 = vld [vmem:[#allocation32_spill] sm:$0xff] }
 0x292   : > { %v872_v63 = vmax.f32 %v5509_v46, %v787_v17  ;;  %v1498_v41 = vmax.f32 %v5510_v35, %v1413_v32  ;;  %v4366_v17 = vld [vmem:[%s4494_s8 + $0x560] sm:$0xff] }
 0x293   : > { %v3016_v33 = vpack.c.bf16 %v2972_v11, %v2972_v11  ;;  %v2211_v51 = vmax.f32 %v1541_v43, %v2167_v62  ;;  %v4322_v62 = vld [vmem:[%s4494_s8 + $0x400] sm:$0xff] }
 0x294   : > { %v1542_v54 = vmax.f32 %v872_v63, %v1498_v41  ;;  %v5522_v63 = vld [vmem:[#allocation35_spill] sm:$0xff] }
 0x295   : > { %3061 = vst.msk [vmem:[%s4993_s18 + $0x3c] sm:$0xf] %vm3045_vm0, %v3016_v33  ;;  %v2881_v15 = vmax.f32 %v2211_v51, %v2837_v34  ;;  %v5520_v51 = vld [vmem:[#allocation33_spill] sm:$0xff] }
 0x297   : > { %v2929_v24 = vadd.f32 %v4979_v42, %v2881_v15  ;;  %v5521_v15 = vld [vmem:[#allocation34_spill] sm:$0xff] }
 0x298   : > { %v2083_v18 = vpop.f32.mrf.mxu2  ;;  %v2753_v12 = vpop.f32.mrf.mxu3 }
 0x299   : > { %v2973_v39 = vmax.f32 %v2929_v24, 0.0  ;;  %v2168_v3 = vmax.f32 %v5511_v2, %v2083_v18  ;;  %v790_v19 = vpop.f32.mrf.mxu0  ;;  %v1416_v44 = vpop.f32.mrf.mxu1  ;;  %v2838_v45 = vmax.f32 %v5512_v6, %v2753_v12  ;;  %v5526_v6 = vld [vmem:[#allocation39_spill] sm:$0xff] }
 0x29a   : > { %v873_v29 = vmax.f32 %v5513_v21, %v790_v19  ;;  %v1499_v22 = vmax.f32 %v5514_v58, %v1416_v44  ;;  %v5524_v44 = vld [vmem:[#allocation37_spill] sm:$0xff]  ;;  %v4235_v58 = vld [vmem:[%s4494_s8 + $0x148] sm:$0xff] }
 0x29b   : > { %v3017_v47 = vpack.c.bf16 %v2973_v39, %v2973_v39  ;;  %v2212_v25 = vmax.f32 %v1542_v54, %v2168_v3 }
 0x29c   : > { %829 = vmatmul.bf16.gmra.mxu0 %v4233_v28  ;;  %1455 = vmatmul.bf16.gmra.mxu1 %v4277_v38  ;;  %v1543_v1 = vmax.f32 %v873_v29, %v1499_v22  ;;  %v5523_v38 = vld [vmem:[#allocation36_spill] sm:$0xff]  ;;  %v4279_v22 = vld [vmem:[%s4494_s8 + $0x2a8] sm:$0xff] }
 0x29d   : > { %3062 = vst.msk [vmem:[%s4993_s18 + $0x40] sm:$0xf] %vm3045_vm0, %v3017_v47  ;;  %v2882_v20 = vmax.f32 %v2212_v25, %v2838_v45  ;;  %2125 = vmatmul.bf16.gmra.mxu2 %v4321_v55  ;;  %2795 = vmatmul.bf16.gmra.mxu3 %v4365_v4  ;;  %v5525_v47 = vld [vmem:[#allocation38_spill] sm:$0xff] }
 0x29f   : > { %v2930_v52 = vadd.f32 %v4979_v42, %v2882_v20 }
 0x2a0   : > { %v2086_v53 = vpop.f32.mrf.mxu2  ;;  %v2756_v36 = vpop.f32.mrf.mxu3 }
 0x2a1   : > { %v2974_v0 = vmax.f32 %v2930_v52, 0.0  ;;  %v2169_v56 = vmax.f32 %v5515_v23, %v2086_v53  ;;  %v792_v7 = vpop.f32.mrf.mxu0  ;;  %v1418_v48 = vpop.f32.mrf.mxu1  ;;  %v2839_v5 = vmax.f32 %v5516_v59, %v2756_v36  ;;  %v5527_v36 = vld [vmem:[#allocation40_spill] sm:$0xff] }
 0x2a2   : > { %v874_v50 = vmax.f32 %v5517_v27, %v792_v7  ;;  %v1500_v9 = vmax.f32 %v5518_v8, %v1418_v48  ;;  %v4367_v7 = vld [vmem:[%s4494_s8 + $0x568] sm:$0xff] }
 0x2a3   : > { %v3018_v49 = vpack.c.bf16 %v2974_v0, %v2974_v0  ;;  %v2213_v57 = vmax.f32 %v1543_v1, %v2169_v56  ;;  %v4323_v56 = vld [vmem:[%s4494_s8 + $0x408] sm:$0xff] }
 0x2a4   : > { %v1544_v61 = vmax.f32 %v874_v50, %v1500_v9  ;;  %v5530_v50 = vld [vmem:[#allocation43_spill] sm:$0xff] }
 0x2a5   : > { %3063 = vst.msk [vmem:[%s4993_s18 + $0x44] sm:$0xf] %vm3045_vm0, %v3018_v49  ;;  %v2883_v26 = vmax.f32 %v2213_v57, %v2839_v5  ;;  %v5528_v57 = vld [vmem:[#allocation41_spill] sm:$0xff] }
 0x2a7   : > { %v2931_v13 = vadd.f32 %v4979_v42, %v2883_v26  ;;  %v5529_v26 = vld [vmem:[#allocation42_spill] sm:$0xff] }
 0x2a8   : > { %v2088_v30 = vpop.f32.mrf.mxu2  ;;  %v2758_v37 = vpop.f32.mrf.mxu3 }
 0x2a9   : > { %v2975_v60 = vmax.f32 %v2931_v13, 0.0  ;;  %v2170_v11 = vmax.f32 %v5519_v31, %v2088_v30  ;;  %v795_v43 = vpop.f32.mrf.mxu0  ;;  %v1421_v16 = vpop.f32.mrf.mxu1  ;;  %v2840_v14 = vmax.f32 %v5520_v51, %v2758_v37  ;;  %v5534_v51 = vld [vmem:[#allocation47_spill] sm:$0xff] }
 0x2aa   : > { %v875_v46 = vmax.f32 %v5521_v15, %v795_v43  ;;  %v1501_v35 = vmax.f32 %v5522_v63, %v1421_v16  ;;  %v5532_v16 = vld [vmem:[#allocation45_spill] sm:$0xff]  ;;  %v4236_v63 = vld [vmem:[%s4494_s8 + $0x150] sm:$0xff] }
 0x2ab   : > { %v3019_v32 = vpack.c.bf16 %v2975_v60, %v2975_v60  ;;  %v2214_v33 = vmax.f32 %v1544_v61, %v2170_v11 }
 0x2ac   : > { %834 = vmatmul.bf16.gmra.mxu0 %v4234_v10  ;;  %1460 = vmatmul.bf16.gmra.mxu1 %v4278_v40  ;;  %v1545_v28 = vmax.f32 %v875_v46, %v1501_v35  ;;  %v5531_v40 = vld [vmem:[#allocation44_spill] sm:$0xff] }
 0x2ad   : > { %3064 = vst.msk [vmem:[%s4993_s18 + $0x48] sm:$0xf] %vm3045_vm0, %v3019_v32  ;;  %v2884_v34 = vmax.f32 %v2214_v33, %v2840_v14  ;;  %2130 = vmatmul.bf16.gmra.mxu2 %v4322_v62  ;;  %2800 = vmatmul.bf16.gmra.mxu3 %v4366_v17  ;;  %v5533_v32 = vld [vmem:[#allocation46_spill] sm:$0xff]  ;;  %v4280_v35 = vld [vmem:[%s4494_s8 + $0x2b0] sm:$0xff] }
 0x2af   : > { %v2932_v41 = vadd.f32 %v4979_v42, %v2884_v34 }
 0x2b0   : > { %v2091_v24 = vpop.f32.mrf.mxu2  ;;  %v2761_v18 = vpop.f32.mrf.mxu3 }
 0x2b1   : > { %v2976_v12 = vmax.f32 %v2932_v41, 0.0  ;;  %v2171_v39 = vmax.f32 %v5523_v38, %v2091_v24  ;;  %v797_v54 = vpop.f32.mrf.mxu0  ;;  %v1423_v2 = vpop.f32.mrf.mxu1  ;;  %v2841_v55 = vmax.f32 %v5524_v44, %v2761_v18  ;;  %v5535_v18 = vld [vmem:[#allocation48_spill] sm:$0xff] }
 0x2b2   : > { %v876_v25 = vmax.f32 %v5525_v47, %v797_v54  ;;  %v1502_v45 = vmax.f32 %v5526_v6, %v1423_v2  ;;  %v4368_v54 = vld [vmem:[%s4494_s8 + $0x570] sm:$0xff] }
 0x2b3   : > { %v3020_v3 = vpack.c.bf16 %v2976_v12, %v2976_v12  ;;  %v2215_v19 = vmax.f32 %v1545_v28, %v2171_v39  ;;  %v4324_v39 = vld [vmem:[%s4494_s8 + $0x410] sm:$0xff] }
 0x2b4   : > { %v1546_v53 = vmax.f32 %v876_v25, %v1502_v45  ;;  %v5538_v25 = vld [vmem:[#allocation51_spill] sm:$0xff] }
 0x2b5   : > { %3065 = vst.msk [vmem:[%s4993_s18 + $0x4c] sm:$0xf] %vm3045_vm0, %v3020_v3  ;;  %v2885_v4 = vmax.f32 %v2215_v19, %v2841_v55  ;;  %v5536_v19 = vld [vmem:[#allocation49_spill] sm:$0xff] }
 0x2b7   : > { %v2933_v20 = vadd.f32 %v4979_v42, %v2885_v4  ;;  %v5537_v4 = vld [vmem:[#allocation50_spill] sm:$0xff] }
 0x2b8   : > { %v2093_v21 = vpop.f32.mrf.mxu2  ;;  %v2763_v29 = vpop.f32.mrf.mxu3 }
 0x2b9   : > { %v2977_v52 = vmax.f32 %v2933_v20, 0.0  ;;  %v2172_v0 = vmax.f32 %v5527_v36, %v2093_v21  ;;  %v800_v1 = vpop.f32.mrf.mxu0  ;;  %v1426_v23 = vpop.f32.mrf.mxu1  ;;  %v2842_v59 = vmax.f32 %v5528_v57, %v2763_v29  ;;  %v5542_v57 = vld [vmem:[#allocation55_spill] sm:$0xff] }
 0x2ba   : > { %v877_v27 = vmax.f32 %v5529_v26, %v800_v1  ;;  %v1503_v8 = vmax.f32 %v5530_v50, %v1426_v23  ;;  %v5540_v23 = vld [vmem:[#allocation53_spill] sm:$0xff] }
 0x2bb   : > { %v3021_v48 = vpack.c.bf16 %v2977_v52, %v2977_v52  ;;  %v2216_v49 = vmax.f32 %v1546_v53, %v2172_v0  ;;  %v4237_v50 = vld [vmem:[%s4494_s8 + $0x158] sm:$0xff] }
 0x2bc   : > { %839 = vmatmul.bf16.gmra.mxu0 %v4235_v58  ;;  %1465 = vmatmul.bf16.gmra.mxu1 %v4279_v22  ;;  %v1547_v10 = vmax.f32 %v877_v27, %v1503_v8  ;;  %v5539_v22 = vld [vmem:[#allocation52_spill] sm:$0xff]  ;;  %v4281_v8 = vld [vmem:[%s4494_s8 + $0x2b8] sm:$0xff] }
 0x2bd   : > { %3066 = vst.msk [vmem:[%s4993_s18 + $0x50] sm:$0xf] %vm3045_vm0, %v3021_v48  ;;  %v2886_v5 = vmax.f32 %v2216_v49, %v2842_v59  ;;  %2135 = vmatmul.bf16.gmra.mxu2 %v4323_v56  ;;  %2805 = vmatmul.bf16.gmra.mxu3 %v4367_v7  ;;  %v5541_v48 = vld [vmem:[#allocation54_spill] sm:$0xff] }
 0x2bf   : > { %v2934_v9 = vadd.f32 %v4979_v42, %v2886_v5 }
 0x2c0   : > { %v2096_v13 = vpop.f32.mrf.mxu2  ;;  %v2766_v30 = vpop.f32.mrf.mxu3 }
 0x2c1   : > { %v2978_v37 = vmax.f32 %v2934_v9, 0.0  ;;  %v2173_v60 = vmax.f32 %v5531_v40, %v2096_v13  ;;  %v802_v61 = vpop.f32.mrf.mxu0  ;;  %v1428_v31 = vpop.f32.mrf.mxu1  ;;  %v2843_v62 = vmax.f32 %v5532_v16, %v2766_v30  ;;  %v5543_v30 = vld [vmem:[#allocation56_spill] sm:$0xff] }
 0x2c2   : > { %v878_v33 = vmax.f32 %v5533_v32, %v802_v61  ;;  %v1504_v14 = vmax.f32 %v5534_v51, %v1428_v31  ;;  %v4369_v61 = vld [vmem:[%s4494_s8 + $0x578] sm:$0xff] }
 0x2c3   : > { %v3022_v11 = vpack.c.bf16 %v2978_v37, %v2978_v37  ;;  %v2217_v43 = vmax.f32 %v1547_v10, %v2173_v60  ;;  %v4325_v60 = vld [vmem:[%s4494_s8 + $0x418] sm:$0xff] }
 0x2c4   : > { %v1548_v24 = vmax.f32 %v878_v33, %v1504_v14  ;;  %v5546_v33 = vld [vmem:[#allocation59_spill] sm:$0xff] }
 0x2c5   : > { %3067 = vst.msk [vmem:[%s4993_s18 + $0x54] sm:$0xf] %vm3045_vm0, %v3022_v11  ;;  %v2887_v17 = vmax.f32 %v2217_v43, %v2843_v62  ;;  %v5544_v43 = vld [vmem:[#allocation57_spill] sm:$0xff] }
 0x2c7   : > { %v2935_v34 = vadd.f32 %v4979_v42, %v2887_v17  ;;  %v5545_v17 = vld [vmem:[#allocation58_spill] sm:$0xff] }
 0x2c8   : > { %v2098_v15 = vpop.f32.mrf.mxu2  ;;  %v2768_v46 = vpop.f32.mrf.mxu3 }
 0x2c9   : > { %v2979_v41 = vmax.f32 %v2935_v34, 0.0  ;;  %v2174_v12 = vmax.f32 %v5535_v18, %v2098_v15  ;;  %v805_v28 = vpop.f32.mrf.mxu0  ;;  %v1431_v38 = vpop.f32.mrf.mxu1  ;;  %v2844_v44 = vmax.f32 %v5536_v19, %v2768_v46  ;;  %v5550_v19 = vld [vmem:[#allocation63_spill] sm:$0xff] }
 0x2ca   : > { %v879_v47 = vmax.f32 %v5537_v4, %v805_v28  ;;  %v1505_v6 = vmax.f32 %v5538_v25, %v1431_v38  ;;  %v5548_v38 = vld [vmem:[#allocation61_spill] sm:$0xff] }
 0x2cb   : > { %v3023_v2 = vpack.c.bf16 %v2979_v41, %v2979_v41  ;;  %v2218_v3 = vmax.f32 %v1548_v24, %v2174_v12 }
 0x2cc   : > { %844 = vmatmul.bf16.gmra.mxu0 %v4236_v63  ;;  %1470 = vmatmul.bf16.gmra.mxu1 %v4280_v35  ;;  %v1549_v58 = vmax.f32 %v879_v47, %v1505_v6  ;;  %v5547_v35 = vld [vmem:[#allocation60_spill] sm:$0xff] }
 0x2cd   : > { %3068 = vst.msk [vmem:[%s4993_s18 + $0x58] sm:$0xf] %vm3045_vm0, %v3023_v2  ;;  %v2888_v55 = vmax.f32 %v2218_v3, %v2844_v44  ;;  %2140 = vmatmul.bf16.gmra.mxu2 %v4324_v39  ;;  %2810 = vmatmul.bf16.gmra.mxu3 %v4368_v54  ;;  %v5549_v2 = vld [vmem:[#allocation62_spill] sm:$0xff] }
 0x2cf   : > { %v2936_v45 = vadd.f32 %v4979_v42, %v2888_v55 }
 0x2d0   : > { %v2101_v20 = vpop.f32.mrf.mxu2  ;;  %v2771_v21 = vpop.f32.mrf.mxu3 }
 0x2d1   : > { %v2980_v29 = vmax.f32 %v2936_v45, 0.0  ;;  %v2175_v52 = vmax.f32 %v5539_v22, %v2101_v20  ;;  %v807_v53 = vpop.f32.mrf.mxu0  ;;  %v1433_v36 = vpop.f32.mrf.mxu1  ;;  %v2845_v56 = vmax.f32 %v5540_v23, %v2771_v21  ;;  %v5551_v45 = vld [vmem:[#allocation64_spill] sm:$0xff]  ;;  %v5554_v23 = vld [vmem:[#allocation67_spill] sm:$0xff] }
 0x2d2   : > { %v880_v49 = vmax.f32 %v5541_v48, %v807_v53  ;;  %v1506_v59 = vmax.f32 %v5542_v57, %v1433_v36 }
 0x2d3   : > { %v3024_v0 = vpack.c.bf16 %v2980_v29, %v2980_v29  ;;  %v2219_v1 = vmax.f32 %v1549_v58, %v2175_v52  ;;  %v5552_v52 = vld [vmem:[#allocation65_spill] sm:$0xff] }
 0x2d4   : > { %v1550_v13 = vmax.f32 %v880_v49, %v1506_v59 }
 0x2d5   : > { %3069 = vst.msk [vmem:[%s4993_s18 + $0x5c] sm:$0xf] %vm3045_vm0, %v3024_v0  ;;  %v2889_v7 = vmax.f32 %v2219_v1, %v2845_v56  ;;  %v5553_v0 = vld [vmem:[#allocation66_spill] sm:$0xff] }
 0x2d6   : > { %v5233_v56 = vld [vmem:[%s5359_s2] ss:$0 sm:$0xff] }
 0x2d7   : > { %v2937_v5 = vadd.f32 %v4979_v42, %v2889_v7 }
 0x2d8   : > { %v2103_v26 = vpop.f32.mrf.mxu2  ;;  %v2773_v27 = vpop.f32.mrf.mxu3 }
 0x2d9   : > { %v2981_v9 = vmax.f32 %v2937_v5, 0.0  ;;  %v2176_v37 = vmax.f32 %v5543_v30, %v2103_v26  ;;  %v810_v10 = vpop.f32.mrf.mxu0  ;;  %v1436_v40 = vpop.f32.mrf.mxu1  ;;  %v2846_v16 = vmax.f32 %v5544_v43, %v2773_v27  ;;  %v5555_v5 = vld [vmem:[#allocation68_spill] sm:$0xff] }
 0x2da   : > { %v881_v32 = vmax.f32 %v5545_v17, %v810_v10  ;;  %v1507_v51 = vmax.f32 %v5546_v33, %v1436_v40  ;;  %v5557_v10 = vld [vmem:[#allocation70_spill] sm:$0xff]  ;;  %v5559_v17 = vld [vmem:[#allocation72_spill] sm:$0xff] }
 0x2db   : > { %v3025_v31 = vpack.c.bf16 %v2981_v9, %v2981_v9  ;;  %v2220_v11 = vmax.f32 %v1550_v13, %v2176_v37  ;;  %v5556_v13 = vld [vmem:[#allocation69_spill] sm:$0xff] }
 0x2dc   : > { %849 = vmatmul.bf16.gmra.mxu0 %v4237_v50  ;;  %1475 = vmatmul.bf16.gmra.mxu1 %v4281_v8  ;;  %v1551_v63 = vmax.f32 %v881_v32, %v1507_v51 }
 0x2dd   : > { %3070 = vst.msk [vmem:[%s4993_s18 + $0x60] sm:$0xf] %vm3045_vm0, %v3025_v31  ;;  %v2890_v62 = vmax.f32 %v2220_v11, %v2846_v16  ;;  %2145 = vmatmul.bf16.gmra.mxu2 %v4325_v60  ;;  %2815 = vmatmul.bf16.gmra.mxu3 %v4369_v61  ;;  %v5558_v60 = vld [vmem:[#allocation71_spill] sm:$0xff] }
 0x2df   : > { %v2938_v14 = vadd.f32 %v4979_v42, %v2890_v62 }
 0x2e0   : > { %v2106_v34 = vpop.f32.mrf.mxu2  ;;  %v2776_v15 = vpop.f32.mrf.mxu3 }
 0x2e1   : > { %v2982_v46 = vmax.f32 %v2938_v14, 0.0  ;;  %v2177_v41 = vmax.f32 %v5547_v35, %v2106_v34  ;;  %v812_v24 = vpop.f32.mrf.mxu0  ;;  %v1438_v18 = vpop.f32.mrf.mxu1  ;;  %v2847_v39 = vmax.f32 %v5548_v38, %v2776_v15  ;;  %v5560_v15 = vld [vmem:[#allocation73_spill] sm:$0xff]  ;;  %v5561_v35 = vld [vmem:[#allocation74_spill] sm:$0xff] }
 0x2e2   : > { %v882_v3 = vmax.f32 %v5549_v2, %v812_v24  ;;  %v1508_v44 = vmax.f32 %v5550_v19, %v1438_v18  ;;  %v5562_v24 = vld [vmem:[#allocation75_spill] sm:$0xff]  ;;  %v5563_v2 = vld [vmem:[#allocation76_spill] sm:$0xff] }
 0x2e3   : > { %v3026_v12 = vpack.c.bf16 %v2982_v46, %v2982_v46  ;;  %v2221_v28 = vmax.f32 %v1551_v63, %v2177_v41 }
 0x2e4   : > { %v1552_v6 = vmax.f32 %v882_v3, %v1508_v44 }
 0x2e5   : > { %3071 = vst.msk [vmem:[%s4993_s18 + $0x64] sm:$0xf] %vm3045_vm0, %v3026_v12  ;;  %v2891_v54 = vmax.f32 %v2221_v28, %v2847_v39 }
 0x2e7   : > { %v2939_v55 = vadd.f32 %v4979_v42, %v2891_v54 }
 0x2e8   : > { %v2108_v4 = vpop.f32.mrf.mxu2  ;;  %v2778_v47 = vpop.f32.mrf.mxu3 }
 0x2e9   : > { %v2983_v25 = vmax.f32 %v2939_v55, 0.0  ;;  %v2178_v20 = vmax.f32 %v5551_v45, %v2108_v4  ;;  %v815_v21 = vpop.f32.mrf.mxu0  ;;  %v1441_v29 = vpop.f32.mrf.mxu1  ;;  %v2848_v53 = vmax.f32 %v5552_v52, %v2778_v47  ;;  %v5564_v47 = vld [vmem:[#allocation77_spill] sm:$0xff]  ;;  %v5565_v45 = vld [vmem:[#allocation78_spill] sm:$0xff] }
 0x2ea   : > { %v883_v1 = vmax.f32 %v5553_v0, %v815_v21  ;;  %v1509_v42 = vmax.f32 %v5554_v23, %v1441_v29  ;;  %v5566_v21 = vld [vmem:[#allocation79_spill] sm:$0xff]  ;;  %v5567_v0 = vld [vmem:[#allocation80_spill] sm:$0xff] }
 0x2eb   : > { %v3027_v58 = vpack.c.bf16 %v2983_v25, %v2983_v25  ;;  %v2222_v22 = vmax.f32 %v1552_v6, %v2178_v20 }
 0x2ec   : > { %v1553_v59 = vmax.f32 %v883_v1, %v1509_v42 }
 0x2ed   : > { %3072 = vst.msk [vmem:[%s4993_s18 + $0x68] sm:$0xf] %vm3045_vm0, %v3027_v58  ;;  %v2892_v36 = vmax.f32 %v2222_v22, %v2848_v53 }
 0x2ef   : > { %v2940_v7 = vadd.f32 %v5233_v56, %v2892_v36 }
 0x2f0   : > { %v2111_v48 = vpop.f32.mrf.mxu2  ;;  %v2781_v49 = vpop.f32.mrf.mxu3 }
 0x2f1   : > { %v2984_v57 = vmax.f32 %v2940_v7, 0.0  ;;  %v2179_v26 = vmax.f32 %v5555_v5, %v2111_v48  ;;  %v817_v27 = vpop.f32.mrf.mxu0  ;;  %v1443_v50 = vpop.f32.mrf.mxu1  ;;  %v2849_v30 = vmax.f32 %v5556_v13, %v2781_v49  ;;  %v5568_v49 = vld [vmem:[#allocation81_spill] sm:$0xff]  ;;  %v5569_v5 = vld [vmem:[#allocation82_spill] sm:$0xff] }
 0x2f2   : > { %v884_v40 = vmax.f32 %v5557_v10, %v817_v27  ;;  %v1510_v61 = vmax.f32 %v5558_v60, %v1443_v50  ;;  %v5570_v27 = vld [vmem:[#allocation83_spill] sm:$0xff]  ;;  %v5571_v10 = vld [vmem:[#allocation84_spill] sm:$0xff] }
 0x2f3   : > { %v3028_v8 = vpack.c.bf16 %v2984_v57, %v2984_v57  ;;  %v2223_v9 = vmax.f32 %v1553_v59, %v2179_v26 }
 0x2f4   : > { %v1554_v62 = vmax.f32 %v884_v40, %v1510_v61 }
 0x2f5   : > { %3073 = vst.msk [vmem:[%s4993_s18 + $0x6c] sm:$0xf] %vm3045_vm0, %v3028_v8  ;;  %v2893_v37 = vmax.f32 %v2223_v9, %v2849_v30 }
 0x2f7   : > { %v2941_v31 = vadd.f32 %v5233_v56, %v2893_v37 }
 0x2f8   : > { %v2113_v11 = vpop.f32.mrf.mxu2  ;;  %v2783_v43 = vpop.f32.mrf.mxu3 }
 0x2f9   : > { %v2985_v16 = vmax.f32 %v2941_v31, 0.0  ;;  %v2180_v32 = vmax.f32 %v5559_v17, %v2113_v11  ;;  %v820_v33 = vpop.f32.mrf.mxu0  ;;  %v1446_v51 = vpop.f32.mrf.mxu1  ;;  %v2850_v46 = vmax.f32 %v5560_v15, %v2783_v43  ;;  %v5572_v43 = vld [vmem:[#allocation85_spill] sm:$0xff]  ;;  %v5573_v17 = vld [vmem:[#allocation86_spill] sm:$0xff] }
 0x2fa   : > { %v885_v41 = vmax.f32 %v5561_v35, %v820_v33  ;;  %v1511_v18 = vmax.f32 %v5562_v24, %v1446_v51  ;;  %v5574_v33 = vld [vmem:[#allocation87_spill] sm:$0xff]  ;;  %v5575_v35 = vld [vmem:[#allocation88_spill] sm:$0xff] }
 0x2fb   : > { %v3029_v14 = vpack.c.bf16 %v2985_v16, %v2985_v16  ;;  %v2224_v34 = vmax.f32 %v1554_v62, %v2180_v32 }
 0x2fc   : > { %v1555_v54 = vmax.f32 %v885_v41, %v1511_v18 }
 0x2fd   : > { %3074 = vst.msk [vmem:[%s4993_s18 + $0x70] sm:$0xf] %vm3045_vm0, %v3029_v14  ;;  %v2894_v63 = vmax.f32 %v2224_v34, %v2850_v46 }
 0x2ff   : > { %v2942_v12 = vadd.f32 %v5233_v56, %v2894_v63 }
 0x300   : > { %v2116_v28 = vpop.f32.mrf.mxu2  ;;  %v2786_v38 = vpop.f32.mrf.mxu3 }
 0x301   : > { %v2986_v39 = vmax.f32 %v2942_v12, 0.0  ;;  %v2181_v3 = vmax.f32 %v5563_v2, %v2116_v28  ;;  %v822_v19 = vpop.f32.mrf.mxu0  ;;  %v1448_v44 = vpop.f32.mrf.mxu1  ;;  %v2851_v25 = vmax.f32 %v5564_v47, %v2786_v38  ;;  %v5576_v38 = vld [vmem:[#allocation89_spill] sm:$0xff]  ;;  %v5577_v2 = vld [vmem:[#allocation90_spill] sm:$0xff] }
 0x302   : > { %v886_v20 = vmax.f32 %v5565_v45, %v822_v19  ;;  %v1512_v29 = vmax.f32 %v5566_v21, %v1448_v44  ;;  %v5578_v19 = vld [vmem:[#allocation91_spill] sm:$0xff]  ;;  %v5579_v45 = vld [vmem:[#allocation92_spill] sm:$0xff] }
 0x303   : > { %v3030_v55 = vpack.c.bf16 %v2986_v39, %v2986_v39  ;;  %v2225_v4 = vmax.f32 %v1555_v54, %v2181_v3 }
 0x304   : > { %v1556_v36 = vmax.f32 %v886_v20, %v1512_v29 }
 0x305   : > { %3075 = vst.msk [vmem:[%s4993_s18 + $0x74] sm:$0xf] %vm3045_vm0, %v3030_v55  ;;  %v2895_v6 = vmax.f32 %v2225_v4, %v2851_v25 }
 0x307   : > { %v2943_v58 = vadd.f32 %v5233_v56, %v2895_v6 }
 0x308   : > { %v2118_v22 = vpop.f32.mrf.mxu2  ;;  %v2788_v52 = vpop.f32.mrf.mxu3 }
 0x309   : > { %v2987_v53 = vmax.f32 %v2943_v58, 0.0  ;;  %v2182_v1 = vmax.f32 %v5567_v0, %v2118_v22  ;;  %v825_v23 = vpop.f32.mrf.mxu0  ;;  %v1451_v42 = vpop.f32.mrf.mxu1  ;;  %v2852_v57 = vmax.f32 %v5568_v49, %v2788_v52  ;;  %v5580_v52 = vld [vmem:[#allocation93_spill] sm:$0xff]  ;;  %v5581_v0 = vld [vmem:[#allocation94_spill] sm:$0xff] }
 0x30a   : > { %v887_v26 = vmax.f32 %v5569_v5, %v825_v23  ;;  %v1513_v50 = vmax.f32 %v5570_v27, %v1451_v42  ;;  %v5582_v23 = vld [vmem:[#allocation95_spill] sm:$0xff]  ;;  %v5583_v5 = vld [vmem:[#allocation96_spill] sm:$0xff] }
 0x30b   : > { %v3031_v7 = vpack.c.bf16 %v2987_v53, %v2987_v53  ;;  %v2226_v48 = vmax.f32 %v1556_v36, %v2182_v1 }
 0x30c   : > { %v1557_v37 = vmax.f32 %v887_v26, %v1513_v50 }
 0x30d   : > { %3076 = vst.msk [vmem:[%s4993_s18 + $0x78] sm:$0xf] %vm3045_vm0, %v3031_v7  ;;  %v2896_v59 = vmax.f32 %v2226_v48, %v2852_v57 }
 0x30f   : > { %v2944_v8 = vadd.f32 %v5233_v56, %v2896_v59 }
 0x310   : > { %v2121_v9 = vpop.f32.mrf.mxu2  ;;  %v2791_v13 = vpop.f32.mrf.mxu3 }
 0x311   : > { %v2988_v30 = vmax.f32 %v2944_v8, 0.0  ;;  %v2183_v40 = vmax.f32 %v5571_v10, %v2121_v9  ;;  %v827_v60 = vpop.f32.mrf.mxu0  ;;  %v1453_v61 = vpop.f32.mrf.mxu1  ;;  %v2853_v16 = vmax.f32 %v5572_v43, %v2791_v13  ;;  %v5584_v13 = vld [vmem:[#allocation97_spill] sm:$0xff]  ;;  %v5585_v10 = vld [vmem:[#allocation98_spill] sm:$0xff] }
 0x312   : > { %v888_v32 = vmax.f32 %v5573_v17, %v827_v60  ;;  %v1514_v51 = vmax.f32 %v5574_v33, %v1453_v61  ;;  %v5586_v60 = vld [vmem:[#allocation99_spill] sm:$0xff]  ;;  %v5587_v17 = vld [vmem:[#allocation100_spill] sm:$0xff] }
 0x313   : > { %v3032_v31 = vpack.c.bf16 %v2988_v30, %v2988_v30  ;;  %v2227_v11 = vmax.f32 %v1557_v37, %v2183_v40 }
 0x314   : > { %v1558_v63 = vmax.f32 %v888_v32, %v1514_v51 }
 0x315   : > { %3077 = vst.msk [vmem:[%s4993_s18 + $0x7c] sm:$0xf] %vm3045_vm0, %v3032_v31  ;;  %v2897_v62 = vmax.f32 %v2227_v11, %v2853_v16 }
 0x317   : > { %v2945_v14 = vadd.f32 %v5233_v56, %v2897_v62 }
 0x318   : > { %v2123_v34 = vpop.f32.mrf.mxu2  ;;  %v2793_v15 = vpop.f32.mrf.mxu3 }
 0x319   : > { %v2989_v46 = vmax.f32 %v2945_v14, 0.0  ;;  %v2184_v41 = vmax.f32 %v5575_v35, %v2123_v34  ;;  %v830_v24 = vpop.f32.mrf.mxu0  ;;  %v1456_v18 = vpop.f32.mrf.mxu1  ;;  %v2854_v39 = vmax.f32 %v5576_v38, %v2793_v15  ;;  %v5588_v15 = vld [vmem:[#allocation101_spill] sm:$0xff]  ;;  %v5589_v35 = vld [vmem:[#allocation102_spill] sm:$0xff] }
 0x31a   : > { %v889_v3 = vmax.f32 %v5577_v2, %v830_v24  ;;  %v1515_v44 = vmax.f32 %v5578_v19, %v1456_v18  ;;  %v5590_v24 = vld [vmem:[#allocation103_spill] sm:$0xff]  ;;  %v5591_v2 = vld [vmem:[#allocation104_spill] sm:$0xff] }
 0x31b   : > { %v3033_v12 = vpack.c.bf16 %v2989_v46, %v2989_v46  ;;  %v2228_v28 = vmax.f32 %v1558_v63, %v2184_v41 }
 0x31c   : > { %v1559_v6 = vmax.f32 %v889_v3, %v1515_v44 }
 0x31d   : > { %3078 = vst.msk [vmem:[%s4993_s18 + $0x80] sm:$0xf] %vm3045_vm0, %v3033_v12  ;;  %v2898_v54 = vmax.f32 %v2228_v28, %v2854_v39 }
 0x31f   : > { %v2946_v55 = vadd.f32 %v5233_v56, %v2898_v54 }
 0x320   : > { %v2126_v4 = vpop.f32.mrf.mxu2  ;;  %v2796_v47 = vpop.f32.mrf.mxu3 }
 0x321   : > { %v2990_v25 = vmax.f32 %v2946_v55, 0.0  ;;  %v2185_v20 = vmax.f32 %v5579_v45, %v2126_v4  ;;  %v832_v21 = vpop.f32.mrf.mxu0  ;;  %v1458_v29 = vpop.f32.mrf.mxu1  ;;  %v2855_v53 = vmax.f32 %v5580_v52, %v2796_v47  ;;  %v5592_v47 = vld [vmem:[#allocation105_spill] sm:$0xff]  ;;  %v5593_v45 = vld [vmem:[#allocation106_spill] sm:$0xff] }
 0x322   : > { %v890_v1 = vmax.f32 %v5581_v0, %v832_v21  ;;  %v1516_v42 = vmax.f32 %v5582_v23, %v1458_v29  ;;  %v5594_v21 = vld [vmem:[#allocation107_spill] sm:$0xff]  ;;  %v5595_v0 = vld [vmem:[#allocation108_spill] sm:$0xff] }
 0x323   : > { %v3034_v58 = vpack.c.bf16 %v2990_v25, %v2990_v25  ;;  %v2229_v22 = vmax.f32 %v1559_v6, %v2185_v20 }
 0x324   : > { %v1560_v59 = vmax.f32 %v890_v1, %v1516_v42 }
 0x325   : > { %3079 = vst.msk [vmem:[%s4993_s18 + $0x84] sm:$0xf] %vm3045_vm0, %v3034_v58  ;;  %v2899_v36 = vmax.f32 %v2229_v22, %v2855_v53 }
 0x327   : > { %v2947_v7 = vadd.f32 %v5233_v56, %v2899_v36 }
 0x328   : > { %v2128_v48 = vpop.f32.mrf.mxu2  ;;  %v2798_v49 = vpop.f32.mrf.mxu3 }
 0x329   : > { %v2991_v57 = vmax.f32 %v2947_v7, 0.0  ;;  %v2186_v26 = vmax.f32 %v5583_v5, %v2128_v48  ;;  %v835_v27 = vpop.f32.mrf.mxu0  ;;  %v1461_v50 = vpop.f32.mrf.mxu1  ;;  %v2856_v30 = vmax.f32 %v5584_v13, %v2798_v49  ;;  %v5596_v49 = vld [vmem:[#allocation109_spill] sm:$0xff]  ;;  %v5597_v5 = vld [vmem:[#allocation110_spill] sm:$0xff] }
 0x32a   : > { %v891_v40 = vmax.f32 %v5585_v10, %v835_v27  ;;  %v1517_v61 = vmax.f32 %v5586_v60, %v1461_v50  ;;  %v5598_v27 = vld [vmem:[#allocation111_spill] sm:$0xff]  ;;  %v5599_v10 = vld [vmem:[#allocation112_spill] sm:$0xff] }
 0x32b   : > { %v3035_v8 = vpack.c.bf16 %v2991_v57, %v2991_v57  ;;  %v2230_v9 = vmax.f32 %v1560_v59, %v2186_v26 }
 0x32c   : > { %v1561_v62 = vmax.f32 %v891_v40, %v1517_v61 }
 0x32d   : > { %3080 = vst.msk [vmem:[%s4993_s18 + $0x88] sm:$0xf] %vm3045_vm0, %v3035_v8  ;;  %v2900_v37 = vmax.f32 %v2230_v9, %v2856_v30 }
 0x32f   : > { %v2948_v31 = vadd.f32 %v5233_v56, %v2900_v37 }
 0x330   : > { %v2131_v11 = vpop.f32.mrf.mxu2  ;;  %v2801_v43 = vpop.f32.mrf.mxu3 }
 0x331   : > { %v2992_v16 = vmax.f32 %v2948_v31, 0.0  ;;  %v2187_v32 = vmax.f32 %v5587_v17, %v2131_v11  ;;  %v837_v33 = vpop.f32.mrf.mxu0  ;;  %v1463_v51 = vpop.f32.mrf.mxu1  ;;  %v2857_v46 = vmax.f32 %v5588_v15, %v2801_v43  ;;  %v5600_v43 = vld [vmem:[#allocation113_spill] sm:$0xff]  ;;  %v5601_v17 = vld [vmem:[#allocation114_spill] sm:$0xff] }
 0x332   : > { %v892_v41 = vmax.f32 %v5589_v35, %v837_v33  ;;  %v1518_v18 = vmax.f32 %v5590_v24, %v1463_v51  ;;  %v5602_v33 = vld [vmem:[#allocation115_spill] sm:$0xff]  ;;  %v5603_v35 = vld [vmem:[#allocation116_spill] sm:$0xff] }
 0x333   : > { %v3036_v14 = vpack.c.bf16 %v2992_v16, %v2992_v16  ;;  %v2231_v34 = vmax.f32 %v1561_v62, %v2187_v32 }
 0x334   : > { %v1562_v54 = vmax.f32 %v892_v41, %v1518_v18 }
 0x335   : > { %3081 = vst.msk [vmem:[%s4993_s18 + $0x8c] sm:$0xf] %vm3045_vm0, %v3036_v14  ;;  %v2901_v63 = vmax.f32 %v2231_v34, %v2857_v46 }
 0x337   : > { %v2949_v12 = vadd.f32 %v5233_v56, %v2901_v63 }
 0x338   : > { %v2133_v28 = vpop.f32.mrf.mxu2  ;;  %v2803_v38 = vpop.f32.mrf.mxu3 }
 0x339   : > { %v2993_v39 = vmax.f32 %v2949_v12, 0.0  ;;  %v2188_v3 = vmax.f32 %v5591_v2, %v2133_v28  ;;  %v840_v19 = vpop.f32.mrf.mxu0  ;;  %v1466_v44 = vpop.f32.mrf.mxu1  ;;  %v2858_v25 = vmax.f32 %v5592_v47, %v2803_v38  ;;  %v5604_v38 = vld [vmem:[#allocation117_spill] sm:$0xff]  ;;  %v5605_v2 = vld [vmem:[#allocation118_spill] sm:$0xff] }
 0x33a   : > { %v893_v20 = vmax.f32 %v5593_v45, %v840_v19  ;;  %v1519_v29 = vmax.f32 %v5594_v21, %v1466_v44  ;;  %v5606_v19 = vld [vmem:[#allocation119_spill] sm:$0xff]  ;;  %v5607_v45 = vld [vmem:[#allocation120_spill] sm:$0xff] }
 0x33b   : > { %v3037_v55 = vpack.c.bf16 %v2993_v39, %v2993_v39  ;;  %v2232_v4 = vmax.f32 %v1562_v54, %v2188_v3 }
 0x33c   : > { %v1563_v36 = vmax.f32 %v893_v20, %v1519_v29 }
 0x33d   : > { %3082 = vst.msk [vmem:[%s4993_s18 + $0x90] sm:$0xf] %vm3045_vm0, %v3037_v55  ;;  %v2902_v6 = vmax.f32 %v2232_v4, %v2858_v25 }
 0x33f   : > { %v2950_v58 = vadd.f32 %v5233_v56, %v2902_v6 }
 0x340   : > { %v2136_v22 = vpop.f32.mrf.mxu2  ;;  %v2806_v52 = vpop.f32.mrf.mxu3 }
 0x341   : > { %v2994_v53 = vmax.f32 %v2950_v58, 0.0  ;;  %v2189_v1 = vmax.f32 %v5595_v0, %v2136_v22  ;;  %v842_v23 = vpop.f32.mrf.mxu0  ;;  %v1468_v42 = vpop.f32.mrf.mxu1  ;;  %v2859_v57 = vmax.f32 %v5596_v49, %v2806_v52  ;;  %v5608_v52 = vld [vmem:[#allocation121_spill] sm:$0xff]  ;;  %v5609_v0 = vld [vmem:[#allocation122_spill] sm:$0xff] }
 0x342   : > { %v894_v26 = vmax.f32 %v5597_v5, %v842_v23  ;;  %v1520_v50 = vmax.f32 %v5598_v27, %v1468_v42  ;;  %v5610_v23 = vld [vmem:[#allocation123_spill] sm:$0xff]  ;;  %v5611_v5 = vld [vmem:[#allocation124_spill] sm:$0xff] }
 0x343   : > { %v3038_v7 = vpack.c.bf16 %v2994_v53, %v2994_v53  ;;  %v2233_v48 = vmax.f32 %v1563_v36, %v2189_v1 }
 0x344   : > { %v1564_v37 = vmax.f32 %v894_v26, %v1520_v50 }
 0x345   : > { %3083 = vst.msk [vmem:[%s4993_s18 + $0x94] sm:$0xf] %vm3045_vm0, %v3038_v7  ;;  %v2903_v59 = vmax.f32 %v2233_v48, %v2859_v57 }
 0x347   : > { %v2951_v8 = vadd.f32 %v5233_v56, %v2903_v59 }
 0x348   : > { %v2138_v9 = vpop.f32.mrf.mxu2  ;;  %v2808_v13 = vpop.f32.mrf.mxu3 }
 0x349   : > { %v2995_v30 = vmax.f32 %v2951_v8, 0.0  ;;  %v2190_v40 = vmax.f32 %v5599_v10, %v2138_v9  ;;  %v845_v60 = vpop.f32.mrf.mxu0  ;;  %v1471_v61 = vpop.f32.mrf.mxu1  ;;  %v2860_v16 = vmax.f32 %v5600_v43, %v2808_v13  ;;  %v5612_v13 = vld [vmem:[#allocation125_spill] sm:$0xff]  ;;  %v5613_v10 = vld [vmem:[#allocation126_spill] sm:$0xff] }
 0x34a   : > { %v895_v32 = vmax.f32 %v5601_v17, %v845_v60  ;;  %v1521_v51 = vmax.f32 %v5602_v33, %v1471_v61  ;;  %v5614_v60 = vld [vmem:[#allocation127_spill] sm:$0xff]  ;;  %v5615_v17 = vld [vmem:[#allocation128_spill] sm:$0xff] }
 0x34b   : > { %v3039_v31 = vpack.c.bf16 %v2995_v30, %v2995_v30  ;;  %v2234_v11 = vmax.f32 %v1564_v37, %v2190_v40 }
 0x34c   : > { %v1565_v63 = vmax.f32 %v895_v32, %v1521_v51 }
 0x34d   : > { %3084 = vst.msk [vmem:[%s4993_s18 + $0x98] sm:$0xf] %vm3045_vm0, %v3039_v31  ;;  %v2904_v62 = vmax.f32 %v2234_v11, %v2860_v16 }
 0x34f   : > { %v2952_v14 = vadd.f32 %v5233_v56, %v2904_v62 }
 0x350   : > { %v2141_v34 = vpop.f32.mrf.mxu2  ;;  %v2811_v15 = vpop.f32.mrf.mxu3 }
 0x351   : > { %v2996_v46 = vmax.f32 %v2952_v14, 0.0  ;;  %v2191_v41 = vmax.f32 %v5603_v35, %v2141_v34  ;;  %v847_v24 = vpop.f32.mrf.mxu0  ;;  %v1473_v18 = vpop.f32.mrf.mxu1  ;;  %v2861_v39 = vmax.f32 %v5604_v38, %v2811_v15  ;;  %v5616_v14 = vld [vmem:[#allocation129_spill] sm:$0xff] }
 0x352   : > { %v896_v3 = vmax.f32 %v5605_v2, %v847_v24  ;;  %v1522_v44 = vmax.f32 %v5606_v19, %v1473_v18 }
 0x353   : > { %v3040_v12 = vpack.c.bf16 %v2996_v46, %v2996_v46  ;;  %v2235_v28 = vmax.f32 %v1565_v63, %v2191_v41 }
 0x354   : > { %v1566_v6 = vmax.f32 %v896_v3, %v1522_v44 }
 0x355   : > { %3085 = vst.msk [vmem:[%s4993_s18 + $0x9c] sm:$0xf] %vm3045_vm0, %v3040_v12  ;;  %v2905_v54 = vmax.f32 %v2235_v28, %v2861_v39 }
 0x357   : > { %v2953_v55 = vadd.f32 %v5233_v56, %v2905_v54 }
 0x358   : > { %v2143_v4 = vpop.f32.mrf.mxu2  ;;  %v2813_v47 = vpop.f32.mrf.mxu3 }
 0x359   : > { %v2997_v25 = vmax.f32 %v2953_v55, 0.0  ;;  %v2192_v20 = vmax.f32 %v5607_v45, %v2143_v4  ;;  %v850_v21 = vpop.f32.mrf.mxu0  ;;  %v1476_v29 = vpop.f32.mrf.mxu1  ;;  %v2862_v53 = vmax.f32 %v5608_v52, %v2813_v47 }
 0x35a   : > { %v897_v1 = vmax.f32 %v5609_v0, %v850_v21  ;;  %v1523_v42 = vmax.f32 %v5610_v23, %v1476_v29 }
 0x35b   : > { %v3041_v58 = vpack.c.bf16 %v2997_v25, %v2997_v25  ;;  %v2236_v22 = vmax.f32 %v1566_v6, %v2192_v20 }
 0x35c   : > { %v1567_v59 = vmax.f32 %v897_v1, %v1523_v42 }
 0x35d   : > { %3086 = vst.msk [vmem:[%s4993_s18 + $0xa0] sm:$0xf] %vm3045_vm0, %v3041_v58  ;;  %v2906_v36 = vmax.f32 %v2236_v22, %v2862_v53 }
 0x35f   : > { %v2954_v7 = vadd.f32 %v5233_v56, %v2906_v36 }
 0x360   : > { %v2146_v48 = vpop.f32.mrf.mxu2  ;;  %v2816_v49 = vpop.f32.mrf.mxu3 }
 0x361   : > { %v2998_v57 = vmax.f32 %v2954_v7, 0.0  ;;  %v2193_v26 = vmax.f32 %v5611_v5, %v2146_v48  ;;  %v852_v27 = vpop.f32.mrf.mxu0  ;;  %v1478_v50 = vpop.f32.mrf.mxu1  ;;  %v2863_v30 = vmax.f32 %v5612_v13, %v2816_v49 }
 0x362   : > { %v898_v40 = vmax.f32 %v5613_v10, %v852_v27  ;;  %v1524_v61 = vmax.f32 %v5614_v60, %v1478_v50 }
 0x363   : > { %v3042_v8 = vpack.c.bf16 %v2998_v57, %v2998_v57  ;;  %v2237_v9 = vmax.f32 %v1567_v59, %v2193_v26 }
 0x364   : > { %v1568_v62 = vmax.f32 %v898_v40, %v1524_v61 }
 0x365   : > { %3087 = vst.msk [vmem:[%s4993_s18 + $0xa4] sm:$0xf] %vm3045_vm0, %v3042_v8  ;;  %v2907_v37 = vmax.f32 %v2237_v9, %v2863_v30 }
 0x367   : > { %v2955_v31 = vadd.f32 %v5233_v56, %v2907_v37 }
 0x368   : > { %v2148_v11 = vpop.f32.mrf.mxu2  ;;  %v2818_v43 = vpop.f32.mrf.mxu3 }
 0x369   : > { %v2999_v16 = vmax.f32 %v2955_v31, 0.0  ;;  %v2194_v32 = vmax.f32 %v5615_v17, %v2148_v11  ;;  %v2864_v34 = vmax.f32 %v5616_v14, %v2818_v43 }
 0x36b   : > { %v3043_v33 = vpack.c.bf16 %v2999_v16, %v2999_v16  ;;  %v2238_v51 = vmax.f32 %v1568_v62, %v2194_v32 }
 0x36d   : > { %3088 = vst.msk [vmem:[%s4993_s18 + $0xa8] sm:$0xf] %vm3045_vm0, %v3043_v33  ;;  %v2908_v15 = vmax.f32 %v2238_v51, %v2864_v34 }
 0x36f   : > { %v2956_v46 = vadd.f32 %v5233_v56, %v2908_v15 }
 0x371   : > { %v3000_v63 = vmax.f32 %v2956_v46, 0.0 }
 0x373   : > { %v3044_v35 = vpack.c.bf16 %v3000_v63, %v3000_v63 }
 0x375   : > { %3089 = vst.msk [vmem:[%s4993_s18 + $0xac] sm:$0xf] %vm3045_vm0, %v3044_v35 }
 0x376 PF: > { %s13_s14 = sadd.s32 1, %s4420_s14   ;;  %s5617_s12 = smov %s4416_s13 }
 0x377   : > { %p10_p5 = scmp.ge.s32.totalorder %s13_s14, 4   ;;  %s5618_s13 = smov %s5620_s15 }
 0x379   :  { %12 = sbr.rel (!%p10_p5) target bundleno = 2 (0x2), region = 65 }

// kernel: cnn3d_forward.3
= control target key start
LH: loop header
LB: loop body
LE: loop exit
PB: predicated region body
PF: predicated region fallthrough
CT: control target
= control target key end

     0   :  { %s2136_s12 = smov 0   ;;  %s2138_s13 = smov 0   ;;  %s2562_s0 = inlined_call_operand.vmem [shape: bf16[2,8,16,896], index: 0, kind: input, shape index: {}]   ;;  %s2563_s1 = inlined_call_operand.vmem [shape: bf16[896,32], index: 1, kind: input, shape index: {}]   ;;  %s2564_s2 = inlined_call_operand.vmem [shape: f32[1,32], index: 2, kind: input, shape index: {}]   ;;  %s2565_s3 = inlined_call_operand.vmem [shape: f32[2,16,32], index: 3, kind: output, shape index: {}]  }
   0x1   :  { %s2140_s14 = smov 0  }
   0x2 LB: > { %s25_s15 = sadd.s32 1, %s2110_s13  ;;  %p1475_p0 = scmp.ge.s32.totalorder %s2114_s14, 1  ;;  %s2114_s14 = sphi %s2140_s14, %s13_s14   ;;  %s2110_s13 = sphi %s2138_s13, %s2567_s13   ;;  %s2106_s12 = sphi %s2136_s12, %s2566_s12  }
   0x3   : > { %p27_p1 = scmp.ge.s32.totalorder %s25_s15, 2  ;;  %p159_p2 = scmp.lt.s32.totalorder %s2114_s14, 3 }
   0x5   : > { %s2569_s15 = smov (%p27_p1, %s25_s15), 0  ;;  %p160_p3 = pnand %p1475_p0, %p159_p2 }
   0x6   : > { %p193_p4 = scmp.lt.s32.totalorder (!%p160_p3), %s2106_s12, 1 }
   0x7   : > { %163 = sbr.rel (%p160_p3) target bundleno = 407 (0x197), region = 32 }
   0xc   : > { %v1937_v0 = vld [vmem:[%s2563_s1 + $0x38] sm:$0xff]  ;;  %v1936_v3 = vld [vmem:[%s2563_s1 + $0x30] sm:$0xff]  ;;  %v1935_v6 = vld [vmem:[%s2563_s1 + $0x28] sm:$0xff]  ;;  %s2571_s12 = smov (!%p193_p4, %s2106_s12), 1  ;;  %vm1378_vm0 = vcmask 261120  }
   0xd   : > { %v2162_v1 = vld [vmem:[%s2563_s1 + $0xb8] sm:$0xff]  ;;  %1013 = vmatpush.bf16.msra.mxu0 %v1937_v0  ;;  %2042 = vmatpush.bf16.msra.mxu3 %v1937_v0  ;;  %v2177_v4 = vld [vmem:[%s2563_s1 + $0xb0] sm:$0xff]  ;;  %v2192_v7 = vld [vmem:[%s2563_s1 + $0xa8] sm:$0xff]  ;;  %s2066_s25 = smul.u32 448, %s2571_s12  ;;  %s1929_s21 = sshll.u32 %s2571_s12, 4 }
   0xe   : > { %v2167_v2 = vld [vmem:[%s2563_s1 + $0x78] sm:$0xff]  ;;  %2058 = vmatpush.bf16.msra.mxu2 %v2162_v1  ;;  %v2182_v5 = vld [vmem:[%s2563_s1 + $0x70] sm:$0xff]  ;;  %v2197_v8 = vld [vmem:[%s2563_s1 + $0x68] sm:$0xff]  ;;  %s211_s24 = scalar_lea.vmem %s2565_s3, %s1929_s21 }
   0xf   : > { %2050 = vmatpush.bf16.msra.mxu1 %v2167_v2  ;;  %v1934_v9 = vld [vmem:[%s2563_s1 + $0x20] sm:$0xff]  ;;  %v1933_v12 = vld [vmem:[%s2563_s1 + $0x18] sm:$0xff]  ;;  %v1932_v15 = vld [vmem:[%s2563_s1 + $0x10] sm:$0xff]  ;;  %s2255_s7 = scalar_lea.vmem %s2562_s0, %s2066_s25 }
  0x10   : > { %v2208_v10 = vld [vmem:[%s2563_s1 + $0xa0] sm:$0xff]  ;;  %v2226_v13 = vld [vmem:[%s2563_s1 + $0x98] sm:$0xff]  ;;  %v2242_v16 = vld [vmem:[%s2563_s1 + $0x90] sm:$0xff] }
  0x11   : > { %1014 = vmatpush.bf16.msra.mxu0 %v1936_v3  ;;  %2043 = vmatpush.bf16.msra.mxu3 %v1936_v3  ;;  %v2213_v11 = vld [vmem:[%s2563_s1 + $0x60] sm:$0xff]  ;;  %v2231_v14 = vld [vmem:[%s2563_s1 + $0x58] sm:$0xff]  ;;  %v2247_v17 = vld [vmem:[%s2563_s1 + $0x50] sm:$0xff] }
  0x12   : > { %2059 = vmatpush.bf16.msra.mxu2 %v2177_v4  ;;  %v1931_v18 = vld [vmem:[%s2563_s1 + $0x8] sm:$0xff]  ;;  %v1930_v21 = vld [vmem:[%s2563_s1] sm:$0xff]  ;;  %v1989_v25 = vld [vmem:[%s2255_s7 + $0x18] sm:$0xf0] }
  0x13   : > { %2051 = vmatpush.bf16.msra.mxu1 %v2182_v5  ;;  %v2262_v19 = vld [vmem:[%s2563_s1 + $0x88] sm:$0xff]  ;;  %v2275_v22 = vld [vmem:[%s2563_s1 + $0x80] sm:$0xff]  ;;  %v1537_v26 = vld [vmem:[%s2255_s7 + $0x70] sm:$0xf] }
  0x14   : > { %v2267_v20 = vld [vmem:[%s2563_s1 + $0x48] sm:$0xff]  ;;  %v2280_v23 = vld [vmem:[%s2563_s1 + $0x40] sm:$0xff]  ;;  %v1545_v28 = vld [vmem:[%s2255_s7 + $0x78] sm:$0xf] }
  0x15   : > { %1015 = vmatpush.bf16.msra.mxu0 %v1935_v6  ;;  %2044 = vmatpush.bf16.msra.mxu3 %v1935_v6  ;;  %v1481_v24 = vld [vmem:[%s2255_s7] sm:$0xf]  ;;  %v2003_v27 = vld [vmem:[%s2255_s7 + $0x88] sm:$0xf0]  ;;  %v2004_v29 = vld [vmem:[%s2255_s7 + $0x90] sm:$0xf0] }
  0x16   : > { %2060 = vmatpush.bf16.msra.mxu2 %v2192_v7  ;;  %v2000_v30 = vld [vmem:[%s2255_s7 + $0x74] sm:$0xf]  ;;  %v1539_v31 = vld [vmem:[%s2255_s7 + $0x8c] sm:$0xf0]  ;;  %v1961_v32 = vld [vmem:[%s2563_s1 + $0xf8] sm:$0xff]  ;;  %v1482_v33 = vor.u32 %v1989_v25, %v1481_v24  ;;  %v1538_v34 = vor.u32 %v2003_v27, %v1537_v26  ;;  %v1546_v35 = vor.u32 %v2004_v29, %v1545_v28 }
  0x17   : > { %2052 = vmatpush.bf16.msra.mxu1 %v2197_v8  ;;  %v1542_v36 = vor.u32 %v2000_v30, %v1539_v31  ;;  %v1985_v37 = vld [vmem:[%s2563_s1 + $0x1b8] sm:$0xff]  ;;  %v1960_v39 = vld [vmem:[%s2563_s1 + $0xf0] sm:$0xff]  ;;  %v1959_v42 = vld [vmem:[%s2563_s1 + $0xe8] sm:$0xff] }
  0x18   : > { %v1977_v38 = vld [vmem:[%s2563_s1 + $0x178] sm:$0xff]  ;;  %v1984_v40 = vld [vmem:[%s2563_s1 + $0x1b0] sm:$0xff]  ;;  %v1983_v43 = vld [vmem:[%s2563_s1 + $0x1a8] sm:$0xff] }
  0x19   : > { %1016 = vmatpush.bf16.msra.mxu0 %v1934_v9  ;;  %2045 = vmatpush.bf16.msra.mxu3 %v1934_v9  ;;  %v1976_v41 = vld [vmem:[%s2563_s1 + $0x170] sm:$0xff]  ;;  %v1975_v44 = vld [vmem:[%s2563_s1 + $0x168] sm:$0xff]  ;;  %v1509_v45 = vld [vmem:[%s2255_s7 + $0x38] sm:$0xf] }
  0x1a   : > { %2061 = vmatpush.bf16.msra.mxu2 %v2208_v10  ;;  %v1958_v46 = vld [vmem:[%s2563_s1 + $0xe0] sm:$0xff]  ;;  %v1996_v47 = vld [vmem:[%s2255_s7 + $0x50] sm:$0xf0]  ;;  %v1565_v48 = vld [vmem:[%s2255_s7 + $0xa8] sm:$0xf] }
  0x1b   : > { %2053 = vmatpush.bf16.msra.mxu1 %v2213_v11  ;;  %v2010_v49 = vld [vmem:[%s2255_s7 + $0xc0] sm:$0xf0]  ;;  %v1573_v50 = vld [vmem:[%s2255_s7 + $0xb0] sm:$0xf]  ;;  %v2011_v51 = vld [vmem:[%s2255_s7 + $0xc8] sm:$0xf0]  ;;  %v1510_v56 = vor.u32 %v1996_v47, %v1509_v45 }
  0x1c   : > { %v2007_v52 = vld [vmem:[%s2255_s7 + $0xac] sm:$0xf]  ;;  %v1567_v53 = vld [vmem:[%s2255_s7 + $0xc4] sm:$0xf0]  ;;  %v1982_v54 = vld [vmem:[%s2563_s1 + $0x1a0] sm:$0xff]  ;;  %v1566_v57 = vor.u32 %v2010_v49, %v1565_v48  ;;  %v1574_v58 = vor.u32 %v2011_v51, %v1573_v50 }
  0x1d   : > { %1017 = vmatpush.bf16.msra.mxu0 %v1933_v12  ;;  %2046 = vmatpush.bf16.msra.mxu3 %v1933_v12  ;;  %v1974_v55 = vld [vmem:[%s2563_s1 + $0x160] sm:$0xff]  ;;  %v1570_v59 = vor.u32 %v2007_v52, %v1567_v53  ;;  %v1957_v60 = vld [vmem:[%s2563_s1 + $0xd8] sm:$0xff]  ;;  %v1956_v63 = vld [vmem:[%s2563_s1 + $0xd0] sm:$0xff] }
  0x1e   : > { %2062 = vmatpush.bf16.msra.mxu2 %v2226_v13  ;;  %v1981_v61 = vld [vmem:[%s2563_s1 + $0x198] sm:$0xff]  ;;  %v1593_v0 = vld [vmem:[%s2255_s7 + $0xe0] sm:$0xf]  ;;  %v1986_v3 = vld [vmem:[%s2255_s7 + $0x4] sm:$0xf] }
  0x1f   : > { %2054 = vmatpush.bf16.msra.mxu1 %v2231_v14  ;;  %v1973_v62 = vld [vmem:[%s2563_s1 + $0x158] sm:$0xff]  ;;  %v1601_v6 = vld [vmem:[%s2255_s7 + $0xe8] sm:$0xf]  ;;  %v2014_v9 = vld [vmem:[%s2255_s7 + $0xe4] sm:$0xf] }
  0x20   : > { %v2024_v24 = vld [vmem:[%s2255_s7 + $0x130] sm:$0xf0]  ;;  %v1993_v25 = vld [vmem:[%s2255_s7 + $0x3c] sm:$0xf]  ;;  %v1511_v26 = vld [vmem:[%s2255_s7 + $0x54] sm:$0xf0] }
  0x21   : > { %1018 = vmatpush.bf16.msra.mxu0 %v1932_v15  ;;  %2047 = vmatpush.bf16.msra.mxu3 %v1932_v15  ;;  %v1629_v27 = vld [vmem:[%s2255_s7 + $0x120] sm:$0xf]  ;;  %v2021_v28 = vld [vmem:[%s2255_s7 + $0x11c] sm:$0xf]  ;;  %v1623_v29 = vld [vmem:[%s2255_s7 + $0x134] sm:$0xf0]  ;;  %v1514_v31 = vor.u32 %v1993_v25, %v1511_v26 }
  0x22   : > { %2063 = vmatpush.bf16.msra.mxu2 %v2242_v16  ;;  %v1966_v47 = vld [vmem:[%s2563_s1 + $0x120] sm:$0xff]  ;;  %v1965_v48 = vld [vmem:[%s2563_s1 + $0x118] sm:$0xff]  ;;  %v1677_v49 = vld [vmem:[%s2255_s7 + $0x188] sm:$0xf] }
  0x23   : > { %2055 = vmatpush.bf16.msra.mxu1 %v2247_v17  ;;  %v2038_v50 = vld [vmem:[%s2255_s7 + $0x1a0] sm:$0xf0]  ;;  %v1517_v51 = vld [vmem:[%s2255_s7 + $0x40] sm:$0xf]  ;;  %v1997_v52 = vld [vmem:[%s2255_s7 + $0x58] sm:$0xf0] }
  0x24   : > { %v1685_v53 = vld [vmem:[%s2255_s7 + $0x190] sm:$0xf]  ;;  %v1995_v25 = vld [vmem:[%s2255_s7 + $0x4c] sm:$0xf]  ;;  %v1527_v26 = vld [vmem:[%s2255_s7 + $0x64] sm:$0xf0] }
  0x25   : > { %1019 = vmatpush.bf16.msra.mxu0 %v1931_v18  ;;  %2048 = vmatpush.bf16.msra.mxu3 %v1931_v18  ;;  %v1980_v18 = vld [vmem:[%s2563_s1 + $0x190] sm:$0xff] }
  0x26   : > { %2064 = vmatpush.bf16.msra.mxu2 %v2262_v19 }
  0x27   : > { %2056 = vmatpush.bf16.msra.mxu1 %v2267_v20 }
  0x29   : > { %1020 = vmatpush.bf16.msra.mxu0 %v1930_v21  ;;  %2049 = vmatpush.bf16.msra.mxu3 %v1930_v21  ;;  %v1979_v21 = vld [vmem:[%s2563_s1 + $0x188] sm:$0xff] }
  0x2a   : > { %2065 = vmatpush.bf16.msra.mxu2 %v2275_v22 }
  0x2b   : > { %2057 = vmatpush.bf16.msra.mxu1 %v2280_v23 }
  0x2c   : > { %1021 = vmatmul.bf16.vlgmr.msra.gmra.mxu0 %v1482_v33  ;;  %1031 = vmatmul.bf16.vlgmr.msra.gmra.mxu3 %v1538_v34  ;;  %v1626_v33 = vor.u32 %v2021_v28, %v1623_v29  ;;  %v1969_v34 = vld [vmem:[%s2563_s1 + $0x138] sm:$0xff]  ;;  %v1530_v29 = vor.u32 %v1995_v25, %v1527_v26 }
  0x2d   : > { %1160 = vmatpush.bf16.msrb.mxu3 %v1961_v32  ;;  %1062 = vmatpush.bf16.msrb.mxu0 %v2167_v2  ;;  %v2017_v2 = vld [vmem:[%s2255_s7 + $0xf8] sm:$0xf0] }
  0x2e   : > { %1129 = vmatmul.bf16.vlgmr.msra.gmra.mxu2 %v1546_v35  ;;  %1080 = vmatmul.bf16.vlgmr.msra.gmra.mxu1 %v1542_v36  ;;  %v1594_v12 = vor.u32 %v2017_v2, %v1593_v0  ;;  %v1970_v35 = vld [vmem:[%s2563_s1 + $0x140] sm:$0xff]  ;;  %v2031_v36 = vld [vmem:[%s2255_s7 + $0x168] sm:$0xf0]  ;;  %v1491_v2 = vld [vmem:[%s2255_s7 + $0x24] sm:$0xf0] }
  0x2f   : > { %1307 = vmatpush.bf16.msrb.mxu2 %v1985_v37  ;;  %1258 = vmatpush.bf16.msrb.mxu1 %v1977_v38  ;;  %v1489_v37 = vld [vmem:[%s2255_s7 + $0x8] sm:$0xf]  ;;  %v1990_v38 = vld [vmem:[%s2255_s7 + $0x20] sm:$0xf0]  ;;  %v1987_v0 = vld [vmem:[%s2255_s7 + $0xc] sm:$0xf] }
  0x31   : > { %1063 = vmatpush.bf16.msrb.mxu0 %v2182_v5  ;;  %1161 = vmatpush.bf16.msrb.mxu3 %v1960_v39  ;;  %v1483_v5 = vld [vmem:[%s2255_s7 + $0x1c] sm:$0xf0]  ;;  %v1657_v39 = vld [vmem:[%s2255_s7 + $0x158] sm:$0xf] }
  0x33   : > { %1308 = vmatpush.bf16.msrb.mxu2 %v1984_v40  ;;  %1259 = vmatpush.bf16.msrb.mxu1 %v1976_v41  ;;  %v2032_v40 = vld [vmem:[%s2255_s7 + $0x170] sm:$0xf0] }
  0x34   : > { %v2028_v41 = vld [vmem:[%s2255_s7 + $0x154] sm:$0xf]  ;;  %v1658_v45 = vor.u32 %v2032_v40, %v1657_v39 }
  0x35   : > { %1064 = vmatpush.bf16.msrb.mxu0 %v2197_v8  ;;  %1162 = vmatpush.bf16.msrb.mxu3 %v1959_v42  ;;  %v2018_v8 = vld [vmem:[%s2255_s7 + $0x100] sm:$0xf0]  ;;  %v1651_v42 = vld [vmem:[%s2255_s7 + $0x16c] sm:$0xf0] }
  0x36   : > { %v1602_v15 = vor.u32 %v2018_v8, %v1601_v6  ;;  %v1505_v6 = vld [vmem:[%s2255_s7 + $0x18] sm:$0xf]  ;;  %v1992_v8 = vld [vmem:[%s2255_s7 + $0x30] sm:$0xf0] }
  0x37   : > { %1309 = vmatpush.bf16.msrb.mxu2 %v1983_v43  ;;  %1260 = vmatpush.bf16.msrb.mxu1 %v1975_v44  ;;  %v1490_v44 = vor.u32 %v1990_v38, %v1489_v37 }
  0x39   : > { %1065 = vmatpush.bf16.msrb.mxu0 %v2213_v11  ;;  %1163 = vmatpush.bf16.msrb.mxu3 %v1958_v46  ;;  %v1595_v11 = vld [vmem:[%s2255_s7 + $0xfc] sm:$0xf0]  ;;  %v1654_v46 = vor.u32 %v2028_v41, %v1651_v42 }
  0x3b   : > { %1310 = vmatpush.bf16.msrb.mxu2 %v1982_v54  ;;  %1261 = vmatpush.bf16.msrb.mxu1 %v1974_v55  ;;  %v2039_v54 = vld [vmem:[%s2255_s7 + $0x1a8] sm:$0xf0] }
  0x3c   : > { %1026 = vmatmul.bf16.gmra.mxu0 %v1510_v56  ;;  %1036 = vmatmul.bf16.gmra.mxu3 %v1566_v57  ;;  %v2035_v55 = vld [vmem:[%s2255_s7 + $0x18c] sm:$0xf]  ;;  %v1679_v56 = vld [vmem:[%s2255_s7 + $0x1a4] sm:$0xf0]  ;;  %v1964_v57 = vld [vmem:[%s2563_s1 + $0x110] sm:$0xff] }
  0x3d   : > { %1066 = vmatpush.bf16.msrb.mxu0 %v2231_v14  ;;  %1164 = vmatpush.bf16.msrb.mxu3 %v1957_v60  ;;  %v1486_v14 = vor.u32 %v1986_v3, %v1483_v5  ;;  %v1686_v60 = vor.u32 %v2039_v54, %v1685_v53  ;;  %v1497_v3 = vld [vmem:[%s2255_s7 + $0x10] sm:$0xf]  ;;  %v1991_v5 = vld [vmem:[%s2255_s7 + $0x28] sm:$0xf0] }
  0x3e   : > { %1134 = vmatmul.bf16.gmra.mxu2 %v1574_v58  ;;  %1085 = vmatmul.bf16.gmra.mxu1 %v1570_v59  ;;  %v1678_v58 = vor.u32 %v2038_v50, %v1677_v49  ;;  %v1518_v59 = vor.u32 %v1997_v52, %v1517_v51  ;;  %v2013_v49 = vld [vmem:[%s2255_s7 + $0xd8] sm:$0xf0]  ;;  %v1583_v51 = vld [vmem:[%s2255_s7 + $0xd4] sm:$0xf0] }
  0x3f   : > { %1311 = vmatpush.bf16.msrb.mxu2 %v1981_v61  ;;  %1262 = vmatpush.bf16.msrb.mxu1 %v1973_v62  ;;  %v1682_v61 = vor.u32 %v2035_v55, %v1679_v56  ;;  %v1963_v62 = vld [vmem:[%s2563_s1 + $0x108] sm:$0xff]  ;;  %v2009_v50 = vld [vmem:[%s2255_s7 + $0xbc] sm:$0xf] }
  0x41   : > { %1067 = vmatpush.bf16.msrb.mxu0 %v2247_v17  ;;  %1165 = vmatpush.bf16.msrb.mxu3 %v1956_v63  ;;  %v1598_v17 = vor.u32 %v2014_v9, %v1595_v11  ;;  %v1962_v63 = vld [vmem:[%s2563_s1 + $0x100] sm:$0xff]  ;;  %v1988_v9 = vld [vmem:[%s2255_s7 + $0x14] sm:$0xf]  ;;  %v1499_v11 = vld [vmem:[%s2255_s7 + $0x2c] sm:$0xf0] }
  0x43   : > { %1312 = vmatpush.bf16.msrb.mxu2 %v1980_v18  ;;  %v1994_v18 = vld [vmem:[%s2255_s7 + $0x44] sm:$0xf] }
  0x45   : > { %1068 = vmatpush.bf16.msrb.mxu0 %v2267_v20  ;;  %v1955_v20 = vld [vmem:[%s2563_s1 + $0xc8] sm:$0xff] }
  0x46   : > { %1166 = vmatpush.bf16.msrb.mxu3 %v1955_v20  ;;  %v1525_v20 = vld [vmem:[%s2255_s7 + $0x48] sm:$0xf] }
  0x47   : > { %1313 = vmatpush.bf16.msrb.mxu2 %v1979_v21  ;;  %v1998_v21 = vld [vmem:[%s2255_s7 + $0x60] sm:$0xf0] }
  0x49   : > { %1069 = vmatpush.bf16.msrb.mxu0 %v2280_v23  ;;  %v1621_v23 = vld [vmem:[%s2255_s7 + $0x118] sm:$0xf] }
  0x4a   : > { %v1622_v30 = vor.u32 %v2024_v24, %v1621_v23  ;;  %v1533_v23 = vld [vmem:[%s2255_s7 + $0x50] sm:$0xf]  ;;  %v1999_v24 = vld [vmem:[%s2255_s7 + $0x68] sm:$0xf0] }
  0x4b   : > { %v1534_v28 = vor.u32 %v1999_v24, %v1533_v23 }
  0x4c   : > { %1041 = vmatmul.bf16.gmra.mxu3 %v1594_v12  ;;  %1070 = vmatmul.bf16.vlgmr.msrb.gmra.mxu0 %v1486_v14  ;;  %v1494_v12 = vor.u32 %v1987_v0, %v1491_v2  ;;  %v1498_v14 = vor.u32 %v1991_v5, %v1497_v3 }
  0x4d   : > { %1111 = vmatpush.bf16.msra.mxu0 %v2162_v1  ;;  %v1972_v1 = vld [vmem:[%s2563_s1 + $0x150] sm:$0xff] }
  0x4e   : > { %1139 = vmatmul.bf16.gmra.mxu2 %v1602_v15  ;;  %1090 = vmatmul.bf16.gmra.mxu1 %v1598_v17  ;;  %v1506_v15 = vor.u32 %v1992_v8, %v1505_v6  ;;  %v1502_v17 = vor.u32 %v1988_v9, %v1499_v11  ;;  %v2015_v6 = vld [vmem:[%s2255_s7 + $0xec] sm:$0xf]  ;;  %v1603_v8 = vld [vmem:[%s2255_s7 + $0x104] sm:$0xf0]  ;;  %v1609_v9 = vld [vmem:[%s2255_s7 + $0xf0] sm:$0xf] }
  0x4f   : > { %1263 = vmatpush.bf16.msrb.mxu1 %v1972_v1  ;;  %v1519_v1 = vld [vmem:[%s2255_s7 + $0x5c] sm:$0xf0]  ;;  %v2019_v11 = vld [vmem:[%s2255_s7 + $0x108] sm:$0xf0] }
  0x50   : > { %v1610_v23 = vor.u32 %v2019_v11, %v1609_v9 }
  0x51   : > { %1112 = vmatpush.bf16.msra.mxu0 %v2177_v4  ;;  %v2025_v4 = vld [vmem:[%s2255_s7 + $0x138] sm:$0xf0] }
  0x52   : > { %v1630_v32 = vor.u32 %v2025_v4, %v1629_v27  ;;  %v1522_v27 = vor.u32 %v1994_v18, %v1519_v1  ;;  %v1526_v4 = vor.u32 %v1998_v21, %v1525_v20  ;;  %v1606_v21 = vor.u32 %v2015_v6, %v1603_v8 }
  0x55   : > { %1113 = vmatpush.bf16.msra.mxu0 %v2192_v7  ;;  %v1971_v7 = vld [vmem:[%s2563_s1 + $0x148] sm:$0xff] }
  0x56   : > { %1264 = vmatpush.bf16.msrb.mxu1 %v1971_v7  ;;  %v1561_v7 = vld [vmem:[%s2255_s7 + $0x88] sm:$0xf] }
  0x59   : > { %1114 = vmatpush.bf16.msra.mxu0 %v2208_v10  ;;  %v1954_v10 = vld [vmem:[%s2563_s1 + $0xc0] sm:$0xff] }
  0x5a   : > { %1167 = vmatpush.bf16.msrb.mxu3 %v1954_v10  ;;  %1265 = vmatpush.bf16.msrb.mxu1 %v1970_v35  ;;  %v2006_v10 = vld [vmem:[%s2255_s7 + $0xa0] sm:$0xf0] }
  0x5b   : > { %v1562_v37 = vor.u32 %v2006_v10, %v1561_v7 }
  0x5c   : > { %1046 = vmatmul.bf16.gmra.mxu3 %v1622_v30  ;;  %1075 = vmatmul.bf16.gmra.mxu0 %v1514_v31  ;;  %v2001_v30 = vld [vmem:[%s2255_s7 + $0x7c] sm:$0xf]  ;;  %v1547_v31 = vld [vmem:[%s2255_s7 + $0x94] sm:$0xf0] }
  0x5d   : > { %1115 = vmatpush.bf16.msra.mxu0 %v2226_v13  ;;  %v1978_v13 = vld [vmem:[%s2563_s1 + $0x180] sm:$0xff]  ;;  %v1550_v35 = vor.u32 %v2001_v30, %v1547_v31 }
  0x5e   : > { %1144 = vmatmul.bf16.gmra.mxu2 %v1630_v32  ;;  %1095 = vmatmul.bf16.gmra.mxu1 %v1626_v33  ;;  %v1553_v32 = vld [vmem:[%s2255_s7 + $0x80] sm:$0xf]  ;;  %v2005_v33 = vld [vmem:[%s2255_s7 + $0x98] sm:$0xf0] }
  0x5f   : > { %1314 = vmatpush.bf16.msrb.mxu2 %v1978_v13  ;;  %v2002_v13 = vld [vmem:[%s2255_s7 + $0x84] sm:$0xf] }
  0x61   : > { %1116 = vmatpush.bf16.msra.mxu0 %v2242_v16  ;;  %v1649_v16 = vld [vmem:[%s2255_s7 + $0x150] sm:$0xf] }
  0x62   : > { %v1650_v43 = vor.u32 %v2031_v36, %v1649_v16  ;;  %v1554_v16 = vor.u32 %v2005_v33, %v1553_v32 }
  0x65   : > { %1117 = vmatpush.bf16.msra.mxu0 %v2262_v19  ;;  %v1968_v19 = vld [vmem:[%s2563_s1 + $0x130] sm:$0xff] }
  0x69   : > { %1118 = vmatpush.bf16.msra.mxu0 %v2275_v22  ;;  %v1967_v22 = vld [vmem:[%s2563_s1 + $0x128] sm:$0xff] }
  0x6c   : > { %1051 = vmatmul.bf16.gmra.mxu3 %v1650_v43  ;;  %1119 = vmatmul.bf16.vlgmr.msra.gmra.mxu0 %v1490_v44 }
  0x6d   : > { %1209 = vmatpush.bf16.msrb.mxu0 %v1969_v34  ;;  %v1555_v34 = vld [vmem:[%s2255_s7 + $0x9c] sm:$0xf0] }
  0x6e   : > { %1149 = vmatmul.bf16.gmra.mxu2 %v1658_v45  ;;  %1100 = vmatmul.bf16.gmra.mxu1 %v1654_v46  ;;  %v1558_v38 = vor.u32 %v2002_v13, %v1555_v34  ;;  %v2008_v45 = vld [vmem:[%s2255_s7 + $0xb4] sm:$0xf]  ;;  %v1575_v46 = vld [vmem:[%s2255_s7 + $0xcc] sm:$0xf0]  ;;  %v2022_v13 = vld [vmem:[%s2255_s7 + $0x124] sm:$0xf] }
  0x6f   : > { %v1578_v55 = vor.u32 %v2008_v45, %v1575_v46  ;;  %v1631_v34 = vld [vmem:[%s2255_s7 + $0x13c] sm:$0xf0] }
  0x71   : > { %1210 = vmatpush.bf16.msrb.mxu0 %v1968_v19 }
  0x75   : > { %1211 = vmatpush.bf16.msrb.mxu0 %v1967_v22  ;;  %v1581_v22 = vld [vmem:[%s2255_s7 + $0xb8] sm:$0xf] }
  0x79   : > { %1212 = vmatpush.bf16.msrb.mxu0 %v1966_v47  ;;  %v2012_v47 = vld [vmem:[%s2255_s7 + $0xd0] sm:$0xf0] }
  0x7a   : > { %v1582_v56 = vor.u32 %v2012_v47, %v1581_v22 }
  0x7c   : > { %1056 = vmatmul.bf16.gmra.mxu3 %v1678_v58  ;;  %1124 = vmatmul.bf16.gmra.mxu0 %v1518_v59  ;;  %v1586_v59 = vor.u32 %v2009_v50, %v1583_v51 }
  0x7d   : > { %1213 = vmatpush.bf16.msrb.mxu0 %v1965_v48  ;;  %v1589_v48 = vld [vmem:[%s2255_s7 + $0xc0] sm:$0xf] }
  0x7e   : > { %1154 = vmatmul.bf16.gmra.mxu2 %v1686_v60  ;;  %1105 = vmatmul.bf16.gmra.mxu1 %v1682_v61  ;;  %v1590_v58 = vor.u32 %v2013_v49, %v1589_v48 }
  0x81   : > { %1214 = vmatpush.bf16.msrb.mxu0 %v1964_v57 }
  0x85   : > { %1215 = vmatpush.bf16.msrb.mxu0 %v1963_v62 }
  0x89   : > { %1216 = vmatpush.bf16.msrb.mxu0 %v1962_v63 }
  0x8c   : > { %1168 = vmatmul.bf16.vlgmr.msrb.gmra.mxu3 %v1494_v12  ;;  %1217 = vmatmul.bf16.vlgmr.msrb.gmra.mxu0 %v1498_v14  ;;  %v1617_v12 = vld [vmem:[%s2255_s7 + $0xf8] sm:$0xf]  ;;  %v2020_v14 = vld [vmem:[%s2255_s7 + $0x110] sm:$0xf0] }
  0x8d   : > { %v1618_v25 = vor.u32 %v2020_v14, %v1617_v12 }
  0x8e   : > { %1315 = vmatmul.bf16.vlgmr.msrb.gmra.mxu2 %v1506_v15  ;;  %1266 = vmatmul.bf16.vlgmr.msrb.gmra.mxu1 %v1502_v17  ;;  %v2016_v15 = vld [vmem:[%s2255_s7 + $0xf4] sm:$0xf]  ;;  %v1611_v17 = vld [vmem:[%s2255_s7 + $0x10c] sm:$0xf0] }
  0x8f   : > { %v1614_v26 = vor.u32 %v2016_v15, %v1611_v17 }
  0x9c   : > { %1173 = vmatmul.bf16.gmra.mxu3 %v1522_v27  ;;  %1222 = vmatmul.bf16.gmra.mxu0 %v1526_v4 }
  0x9e   : > { %1320 = vmatmul.bf16.gmra.mxu2 %v1534_v28  ;;  %1271 = vmatmul.bf16.gmra.mxu1 %v1530_v29 }
  0xa9   : > { %v1022_v36 = vpop.f32.mrf.mxu0 }
  0xab   : > { %v1081_v39 = vpop.f32.mrf.mxu1 }
  0xac   : > { %1178 = vmatmul.bf16.gmra.mxu3 %v1550_v35  ;;  %1227 = vmatmul.bf16.gmra.mxu0 %v1554_v16  ;;  %v1637_v35 = vld [vmem:[%s2255_s7 + $0x128] sm:$0xf]  ;;  %v2026_v16 = vld [vmem:[%s2255_s7 + $0x140] sm:$0xf0] }
  0xad   : > { %v1638_v45 = vor.u32 %v2026_v16, %v1637_v35 }
  0xae   : > { %1325 = vmatmul.bf16.gmra.mxu2 %v1562_v37  ;;  %1276 = vmatmul.bf16.gmra.mxu1 %v1558_v38  ;;  %v2027_v37 = vld [vmem:[%s2255_s7 + $0x148] sm:$0xf0] }
  0xaf   : > { %v1032_v40 = vpop.f32.mrf.mxu3  ;;  %v2023_v38 = vld [vmem:[%s2255_s7 + $0x12c] sm:$0xf] }
  0xb0   : > { %v1082_v41 = vadd.f32 %v1081_v39, %v1032_v40  ;;  %v1639_v39 = vld [vmem:[%s2255_s7 + $0x144] sm:$0xf0] }
  0xb1   : > { %v1130_v42 = vpop.f32.mrf.mxu2  ;;  %v1024_v19 = vpop.f32.mrf.mxu0  ;;  %v1642_v47 = vor.u32 %v2023_v38, %v1639_v39 }
  0xb2   : > { %v2470_v43 = vadd.f32 %v1130_v42, %v1082_v41 }
  0xb3   : > { %v1083_v44 = vpop.f32.mrf.mxu1 }
  0xb7   : > { %v1034_v52 = vpop.f32.mrf.mxu3 }
  0xb8   : > { %v1084_v53 = vadd.f32 %v1083_v44, %v1034_v52  ;;  %v1634_v44 = vor.u32 %v2022_v13, %v1631_v34  ;;  %v2037_v13 = vld [vmem:[%s2255_s7 + $0x19c] sm:$0xf]  ;;  %v1695_v34 = vld [vmem:[%s2255_s7 + $0x1b4] sm:$0xf0] }
  0xb9   : > { %v1132_v54 = vpop.f32.mrf.mxu2  ;;  %v1027_v57 = vpop.f32.mrf.mxu0 }
  0xba   : > { %v2480_v60 = vadd.f32 %v1132_v54, %v1084_v53 }
  0xbb   : > { %v1086_v61 = vpop.f32.mrf.mxu1 }
  0xbc   : > { %1183 = vmatmul.bf16.gmra.mxu3 %v1578_v55  ;;  %1232 = vmatmul.bf16.gmra.mxu0 %v1582_v56 }
  0xbe   : > { %1330 = vmatmul.bf16.gmra.mxu2 %v1590_v58  ;;  %1281 = vmatmul.bf16.gmra.mxu1 %v1586_v59  ;;  %v2029_v58 = vld [vmem:[%s2255_s7 + $0x15c] sm:$0xf]  ;;  %v1665_v59 = vld [vmem:[%s2255_s7 + $0x160] sm:$0xf] }
  0xbf   : > { %v1037_v62 = vpop.f32.mrf.mxu3 }
  0xc0   : > { %v1087_v63 = vadd.f32 %v1086_v61, %v1037_v62  ;;  %v2033_v61 = vld [vmem:[%s2255_s7 + $0x178] sm:$0xf0]  ;;  %v1673_v62 = vld [vmem:[%s2255_s7 + $0x168] sm:$0xf] }
  0xc1   : > { %v1135_v0 = vpop.f32.mrf.mxu2  ;;  %v1029_v2 = vpop.f32.mrf.mxu0  ;;  %v1666_v12 = vor.u32 %v2033_v61, %v1665_v59 }
  0xc2   : > { %v2482_v3 = vadd.f32 %v1135_v0, %v1087_v63  ;;  %v2034_v63 = vld [vmem:[%s2255_s7 + $0x180] sm:$0xf0] }
  0xc3   : > { %v1088_v5 = vpop.f32.mrf.mxu1  ;;  %v2030_v0 = vld [vmem:[%s2255_s7 + $0x164] sm:$0xf]  ;;  %v1674_v15 = vor.u32 %v2034_v63, %v1673_v62 }
  0xc7   : > { %v1039_v18 = vpop.f32.mrf.mxu3 }
  0xc8   : > { %v1089_v1 = vadd.f32 %v1088_v5, %v1039_v18  ;;  %v1667_v5 = vld [vmem:[%s2255_s7 + $0x17c] sm:$0xf0] }
  0xc9   : > { %v1137_v20 = vpop.f32.mrf.mxu2  ;;  %v1071_v24 = vpop.f32.mrf.mxu0  ;;  %v1670_v17 = vor.u32 %v2030_v0, %v1667_v5 }
  0xca   : > { %v2492_v27 = vadd.f32 %v1137_v20, %v1089_v1  ;;  %v1072_v4 = vadd.f32 %v1071_v24, %v1022_v36  ;;  %v1645_v36 = vld [vmem:[%s2255_s7 + $0x130] sm:$0xf] }
  0xcb   : > { %v1091_v28 = vpop.f32.mrf.mxu1  ;;  %v1646_v22 = vor.u32 %v2027_v37, %v1645_v36 }
  0xcc   : > { %1188 = vmatmul.bf16.gmra.mxu3 %v1606_v21  ;;  %1237 = vmatmul.bf16.gmra.mxu0 %v1610_v23 }
  0xce   : > { %1335 = vmatmul.bf16.gmra.mxu2 %v1618_v25  ;;  %1286 = vmatmul.bf16.gmra.mxu1 %v1614_v26 }
  0xcf   : > { %v1042_v29 = vpop.f32.mrf.mxu3 }
  0xd0   : > { %v1092_v30 = vadd.f32 %v1091_v28, %v1042_v29  ;;  %v2036_v29 = vld [vmem:[%s2255_s7 + $0x194] sm:$0xf] }
  0xd1   : > { %v1140_v31 = vpop.f32.mrf.mxu2  ;;  %v1073_v32 = vpop.f32.mrf.mxu0 }
  0xd2   : > { %v2494_v33 = vadd.f32 %v1140_v31, %v1092_v30  ;;  %v1074_v7 = vadd.f32 %v1073_v32, %v1024_v19  ;;  %v1693_v30 = vld [vmem:[%s2255_s7 + $0x198] sm:$0xf]  ;;  %v2040_v31 = vld [vmem:[%s2255_s7 + $0x1b0] sm:$0xf0]  ;;  %v1701_v32 = vld [vmem:[%s2255_s7 + $0x1a0] sm:$0xf] }
  0xd3   : > { %v1093_v10 = vpop.f32.mrf.mxu1  ;;  %v1694_v38 = vor.u32 %v2040_v31, %v1693_v30 }
  0xd7   : > { %v1044_v40 = vpop.f32.mrf.mxu3 }
  0xd8   : > { %v1094_v41 = vadd.f32 %v1093_v10, %v1044_v40  ;;  %v2041_v10 = vld [vmem:[%s2255_s7 + $0x1b8] sm:$0xf0] }
  0xd9   : > { %v1142_v42 = vpop.f32.mrf.mxu2  ;;  %v1076_v46 = vpop.f32.mrf.mxu0  ;;  %v1702_v40 = vor.u32 %v2041_v10, %v1701_v32 }
  0xda   : > { %v2504_v19 = vadd.f32 %v1142_v42, %v1094_v41  ;;  %v1077_v48 = vadd.f32 %v1076_v46, %v1027_v57  ;;  %v1659_v57 = vld [vmem:[%s2255_s7 + $0x174] sm:$0xf0]  ;;  %v1698_v41 = vor.u32 %v2037_v13, %v1695_v34 }
  0xdb   : > { %v1096_v49 = vpop.f32.mrf.mxu1  ;;  %v1662_v11 = vor.u32 %v2029_v58, %v1659_v57 }
  0xdc   : > { %1193 = vmatmul.bf16.gmra.mxu3 %v1634_v44  ;;  %1242 = vmatmul.bf16.gmra.mxu0 %v1638_v45 }
  0xde   : > { %1340 = vmatmul.bf16.gmra.mxu2 %v1646_v22  ;;  %1291 = vmatmul.bf16.gmra.mxu1 %v1642_v47 }
  0xdf   : > { %v1047_v50 = vpop.f32.mrf.mxu3 }
  0xe0   : > { %v1097_v51 = vadd.f32 %v1096_v49, %v1047_v50 }
  0xe1   : > { %v1145_v52 = vpop.f32.mrf.mxu2  ;;  %v1078_v53 = vpop.f32.mrf.mxu0 }
  0xe2   : > { %v2506_v54 = vadd.f32 %v1145_v52, %v1097_v51  ;;  %v1079_v55 = vadd.f32 %v1078_v53, %v1029_v2 }
  0xe3   : > { %v1098_v56 = vpop.f32.mrf.mxu1 }
  0xe7   : > { %v1049_v6 = vpop.f32.mrf.mxu3 }
  0xe8   : > { %v1099_v8 = vadd.f32 %v1098_v56, %v1049_v6 }
  0xe9   : > { %v1147_v9 = vpop.f32.mrf.mxu2  ;;  %v1120_v14 = vpop.f32.mrf.mxu0 }
  0xea   : > { %v2516_v2 = vadd.f32 %v1147_v9, %v1099_v8  ;;  %v1121_v18 = vadd.f32 %v1120_v14, %v1072_v4  ;;  %v1687_v4 = vld [vmem:[%s2255_s7 + $0x1ac] sm:$0xf0] }
  0xeb   : > { %v1101_v1 = vpop.f32.mrf.mxu1  ;;  %v1690_v37 = vor.u32 %v2036_v29, %v1687_v4 }
  0xec   : > { %1198 = vmatmul.bf16.gmra.mxu3 %v1662_v11  ;;  %1247 = vmatmul.bf16.gmra.mxu0 %v1666_v12 }
  0xee   : > { %1345 = vmatmul.bf16.gmra.mxu2 %v1674_v15  ;;  %1296 = vmatmul.bf16.gmra.mxu1 %v1670_v17 }
  0xef   : > { %v1052_v20 = vpop.f32.mrf.mxu3 }
  0xf0   : > { %v1102_v21 = vadd.f32 %v1101_v1, %v1052_v20 }
  0xf1   : > { %v1150_v23 = vpop.f32.mrf.mxu2  ;;  %v1122_v24 = vpop.f32.mrf.mxu0 }
  0xf2   : > { %v2518_v25 = vadd.f32 %v1150_v23, %v1102_v21  ;;  %v1123_v26 = vadd.f32 %v1122_v24, %v1074_v7 }
  0xf3   : > { %v1103_v28 = vpop.f32.mrf.mxu1 }
  0xf7   : > { %v1054_v35 = vpop.f32.mrf.mxu3 }
  0xf8   : > { %v1104_v16 = vadd.f32 %v1103_v28, %v1054_v35 }
  0xf9   : > { %v1152_v36 = vpop.f32.mrf.mxu2  ;;  %v1125_v39 = vpop.f32.mrf.mxu0 }
  0xfa   : > { %v2528_v42 = vadd.f32 %v1152_v36, %v1104_v16  ;;  %v1126_v7 = vadd.f32 %v1125_v39, %v1077_v48 }
  0xfb   : > { %v1106_v44 = vpop.f32.mrf.mxu1 }
  0xfc   : > { %1203 = vmatmul.bf16.gmra.mxu3 %v1690_v37  ;;  %1252 = vmatmul.bf16.gmra.mxu0 %v1694_v38 }
  0xfe   : > { %1350 = vmatmul.bf16.gmra.mxu2 %v1702_v40  ;;  %1301 = vmatmul.bf16.gmra.mxu1 %v1698_v41 }
  0xff   : > { %v1057_v45 = vpop.f32.mrf.mxu3 }
 0x100   : > { %v1107_v46 = vadd.f32 %v1106_v44, %v1057_v45 }
 0x101   : > { %v1155_v22 = vpop.f32.mrf.mxu2  ;;  %v1127_v47 = vpop.f32.mrf.mxu0 }
 0x102   : > { %v2530_v49 = vadd.f32 %v1155_v22, %v1107_v46  ;;  %v1128_v50 = vadd.f32 %v1127_v47, %v1079_v55 }
 0x103   : > { %v1108_v51 = vpop.f32.mrf.mxu1 }
 0x107   : > { %v1059_v52 = vpop.f32.mrf.mxu3 }
 0x108   : > { %v1109_v53 = vadd.f32 %v1108_v51, %v1059_v52 }
 0x109   : > { %v1157_v56 = vpop.f32.mrf.mxu2  ;;  %v1218_v58 = vpop.f32.mrf.mxu0 }
 0x10a   : > { %v2532_v57 = vadd.f32 %v1157_v56, %v1109_v53 }
 0x10b   : > { %v1267_v48 = vpop.f32.mrf.mxu1 }
 0x10f   : > { %v1169_v59 = vpop.f32.mrf.mxu3 }
 0x110   : > { %v1170_v61 = vadd.f32 %v1169_v59, %v1121_v18 }
 0x111   : > { %v1316_v62 = vpop.f32.mrf.mxu2  ;;  %v1220_v63 = vpop.f32.mrf.mxu0 }
 0x112   : > { %v1219_v0 = vadd.f32 %v1218_v58, %v1170_v61 }
 0x113   : > { %v1269_v5 = vpop.f32.mrf.mxu1 }
 0x114   : > { %v1268_v6 = vadd.f32 %v1267_v48, %v1219_v0 }
 0x116   : > { %v1317_v8 = vadd.f32 %v1316_v62, %v1268_v6 }
 0x117   : > { %v1171_v9 = vpop.f32.mrf.mxu3 }
 0x118   : > { %v1172_v11 = vadd.f32 %v1171_v9, %v1123_v26 }
 0x119   : > { %v1318_v12 = vpop.f32.mrf.mxu2  ;;  %v1223_v55 = vpop.f32.mrf.mxu0 }
 0x11a   : > { %v1221_v14 = vadd.f32 %v1220_v63, %v1172_v11 }
 0x11b   : > { %v1272_v15 = vpop.f32.mrf.mxu1 }
 0x11c   : > { %v1270_v17 = vadd.f32 %v1269_v5, %v1221_v14 }
 0x11e   : > { %v1319_v1 = vadd.f32 %v1318_v12, %v1270_v17 }
 0x11f   : > { %v1174_v20 = vpop.f32.mrf.mxu3 }
 0x120   : > { %v1175_v21 = vadd.f32 %v1174_v20, %v1126_v7 }
 0x121   : > { %v1321_v23 = vpop.f32.mrf.mxu2  ;;  %v1225_v24 = vpop.f32.mrf.mxu0 }
 0x122   : > { %v1224_v28 = vadd.f32 %v1223_v55, %v1175_v21 }
 0x123   : > { %v1274_v18 = vpop.f32.mrf.mxu1 }
 0x124   : > { %v1273_v29 = vadd.f32 %v1272_v15, %v1224_v28 }
 0x126   : > { %v1322_v4 = vadd.f32 %v1321_v23, %v1273_v29 }
 0x127   : > { %v1176_v30 = vpop.f32.mrf.mxu3 }
 0x128   : > { %v1356_v31 = vmax.f32 %v1317_v8, %v1322_v4  ;;  %v1177_v32 = vadd.f32 %v1176_v30, %v1128_v50 }
 0x129   : > { %v1323_v10 = vpop.f32.mrf.mxu2  ;;  %v1228_v13 = vpop.f32.mrf.mxu0 }
 0x12a   : > { %v1226_v26 = vadd.f32 %v1225_v24, %v1177_v32 }
 0x12b   : > { %v1277_v34 = vpop.f32.mrf.mxu1 }
 0x12c   : > { %v1275_v35 = vadd.f32 %v1274_v18, %v1226_v26 }
 0x12e   : > { %v1324_v16 = vadd.f32 %v1323_v10, %v1275_v35 }
 0x12f   : > { %v1179_v36 = vpop.f32.mrf.mxu3 }
 0x130   : > { %v1357_v37 = vmax.f32 %v1319_v1, %v1324_v16  ;;  %v1180_v38 = vadd.f32 %v1179_v36, %v2470_v43 }
 0x131   : > { %v1326_v39 = vpop.f32.mrf.mxu2  ;;  %v1230_v40 = vpop.f32.mrf.mxu0 }
 0x132   : > { %v1229_v41 = vadd.f32 %v1228_v13, %v1180_v38 }
 0x133   : > { %v1279_v7 = vpop.f32.mrf.mxu1 }
 0x134   : > { %v1278_v44 = vadd.f32 %v1277_v34, %v1229_v41 }
 0x136   : > { %v1327_v45 = vadd.f32 %v1326_v39, %v1278_v44 }
 0x137   : > { %v1181_v46 = vpop.f32.mrf.mxu3 }
 0x138   : > { %v1358_v22 = vmax.f32 %v1356_v31, %v1327_v45  ;;  %v1182_v47 = vadd.f32 %v1181_v46, %v2480_v60 }
 0x139   : > { %v1328_v50 = vpop.f32.mrf.mxu2  ;;  %v1233_v51 = vpop.f32.mrf.mxu0 }
 0x13a   : > { %v1231_v52 = vadd.f32 %v1230_v40, %v1182_v47 }
 0x13b   : > { %v1282_v53 = vpop.f32.mrf.mxu1 }
 0x13c   : > { %v1280_v56 = vadd.f32 %v1279_v7, %v1231_v52 }
 0x13e   : > { %v1329_v58 = vadd.f32 %v1328_v50, %v1280_v56 }
 0x13f   : > { %v1184_v48 = vpop.f32.mrf.mxu3 }
 0x140   : > { %v1359_v59 = vmax.f32 %v1357_v37, %v1329_v58  ;;  %v1185_v43 = vadd.f32 %v1184_v48, %v2482_v3 }
 0x141   : > { %v1331_v61 = vpop.f32.mrf.mxu2  ;;  %v1235_v62 = vpop.f32.mrf.mxu0 }
 0x142   : > { %v1234_v63 = vadd.f32 %v1233_v51, %v1185_v43 }
 0x143   : > { %v1284_v0 = vpop.f32.mrf.mxu1 }
 0x144   : > { %v1283_v5 = vadd.f32 %v1282_v53, %v1234_v63 }
 0x146   : > { %v1332_v6 = vadd.f32 %v1331_v61, %v1283_v5 }
 0x147   : > { %v1186_v8 = vpop.f32.mrf.mxu3 }
 0x148   : > { %v1360_v9 = vmax.f32 %v1358_v22, %v1332_v6  ;;  %v1187_v60 = vadd.f32 %v1186_v8, %v2492_v27 }
 0x149   : > { %v1333_v11 = vpop.f32.mrf.mxu2  ;;  %v1238_v12 = vpop.f32.mrf.mxu0 }
 0x14a   : > { %v1236_v55 = vadd.f32 %v1235_v62, %v1187_v60 }
 0x14b   : > { %v1287_v14 = vpop.f32.mrf.mxu1 }
 0x14c   : > { %v1285_v15 = vadd.f32 %v1284_v0, %v1236_v55 }
 0x14e   : > { %v1334_v17 = vadd.f32 %v1333_v11, %v1285_v15 }
 0x14f   : > { %v1189_v1 = vpop.f32.mrf.mxu3 }
 0x150   : > { %v1361_v20 = vmax.f32 %v1359_v59, %v1334_v17  ;;  %v1190_v3 = vadd.f32 %v1189_v1, %v2494_v33  ;;  %v2091_v1 = vld [vmem:[%s2564_s2] ss:$0 sm:$0xff] }
 0x151   : > { %v1336_v21 = vpop.f32.mrf.mxu2  ;;  %v1240_v23 = vpop.f32.mrf.mxu0 }
 0x152   : > { %v1239_v24 = vadd.f32 %v1238_v12, %v1190_v3 }
 0x153   : > { %v1289_v28 = vpop.f32.mrf.mxu1 }
 0x154   : > { %v1288_v18 = vadd.f32 %v1287_v14, %v1239_v24 }
 0x156   : > { %v1337_v29 = vadd.f32 %v1336_v21, %v1288_v18 }
 0x157   : > { %v1191_v4 = vpop.f32.mrf.mxu3 }
 0x158   : > { %v1362_v30 = vmax.f32 %v1360_v9, %v1337_v29  ;;  %v1192_v27 = vadd.f32 %v1191_v4, %v2504_v19 }
 0x159   : > { %v1338_v31 = vpop.f32.mrf.mxu2  ;;  %v1243_v32 = vpop.f32.mrf.mxu0 }
 0x15a   : > { %v1241_v10 = vadd.f32 %v1240_v23, %v1192_v27 }
 0x15b   : > { %v1292_v13 = vpop.f32.mrf.mxu1 }
 0x15c   : > { %v1290_v26 = vadd.f32 %v1289_v28, %v1241_v10 }
 0x15e   : > { %v1339_v34 = vadd.f32 %v1338_v31, %v1290_v26 }
 0x15f   : > { %v1194_v35 = vpop.f32.mrf.mxu3 }
 0x160   : > { %v1363_v16 = vmax.f32 %v1361_v20, %v1339_v34  ;;  %v1195_v33 = vadd.f32 %v1194_v35, %v2506_v54 }
 0x161   : > { %v1341_v36 = vpop.f32.mrf.mxu2  ;;  %v1245_v37 = vpop.f32.mrf.mxu0 }
 0x162   : > { %v1244_v38 = vadd.f32 %v1243_v32, %v1195_v33 }
 0x163   : > { %v1294_v39 = vpop.f32.mrf.mxu1 }
 0x164   : > { %v1293_v40 = vadd.f32 %v1292_v13, %v1244_v38 }
 0x166   : > { %v1342_v41 = vadd.f32 %v1341_v36, %v1293_v40 }
 0x167   : > { %v1196_v7 = vpop.f32.mrf.mxu3 }
 0x168   : > { %v1364_v44 = vmax.f32 %v1362_v30, %v1342_v41  ;;  %v1197_v19 = vadd.f32 %v1196_v7, %v2516_v2 }
 0x169   : > { %v1343_v45 = vpop.f32.mrf.mxu2  ;;  %v1248_v22 = vpop.f32.mrf.mxu0 }
 0x16a   : > { %v1246_v46 = vadd.f32 %v1245_v37, %v1197_v19 }
 0x16b   : > { %v1297_v50 = vpop.f32.mrf.mxu1 }
 0x16c   : > { %v1295_v47 = vadd.f32 %v1294_v39, %v1246_v46 }
 0x16e   : > { %v1344_v51 = vadd.f32 %v1343_v45, %v1295_v47 }
 0x16f   : > { %v1199_v52 = vpop.f32.mrf.mxu3 }
 0x170   : > { %v1365_v53 = vmax.f32 %v1363_v16, %v1344_v51  ;;  %v1200_v54 = vadd.f32 %v1199_v52, %v2518_v25 }
 0x171   : > { %v1346_v56 = vpop.f32.mrf.mxu2  ;;  %v1250_v59 = vpop.f32.mrf.mxu0 }
 0x172   : > { %v1249_v58 = vadd.f32 %v1248_v22, %v1200_v54 }
 0x173   : > { %v1299_v61 = vpop.f32.mrf.mxu1 }
 0x174   : > { %v1298_v48 = vadd.f32 %v1297_v50, %v1249_v58 }
 0x176   : > { %v1347_v43 = vadd.f32 %v1346_v56, %v1298_v48 }
 0x177   : > { %v1201_v62 = vpop.f32.mrf.mxu3 }
 0x178   : > { %v1366_v63 = vmax.f32 %v1364_v44, %v1347_v43  ;;  %v1202_v2 = vadd.f32 %v1201_v62, %v2528_v42 }
 0x179   : > { %v1348_v0 = vpop.f32.mrf.mxu2  ;;  %v1253_v9 = vpop.f32.mrf.mxu0 }
 0x17a   : > { %v1251_v5 = vadd.f32 %v1250_v59, %v1202_v2 }
 0x17b   : > { %v1302_v12 = vpop.f32.mrf.mxu1 }
 0x17c   : > { %v1300_v6 = vadd.f32 %v1299_v61, %v1251_v5 }
 0x17e   : > { %v1349_v8 = vadd.f32 %v1348_v0, %v1300_v6 }
 0x17f   : > { %v1204_v60 = vpop.f32.mrf.mxu3 }
 0x180   : > { %v1367_v11 = vmax.f32 %v1365_v53, %v1349_v8  ;;  %v1205_v25 = vadd.f32 %v1204_v60, %v2530_v49 }
 0x181   : > { %v1351_v14 = vpop.f32.mrf.mxu2  ;;  %v1255_v21 = vpop.f32.mrf.mxu0 }
 0x182   : > { %v1254_v55 = vadd.f32 %v1253_v9, %v1205_v25 }
 0x183   : > { %v1304_v49 = vpop.f32.mrf.mxu1 }
 0x184   : > { %v1303_v15 = vadd.f32 %v1302_v12, %v1254_v55 }
 0x186   : > { %v1352_v17 = vadd.f32 %v1351_v14, %v1303_v15 }
 0x187   : > { %v1206_v42 = vpop.f32.mrf.mxu3 }
 0x188   : > { %v1368_v20 = vmax.f32 %v1366_v63, %v1352_v17  ;;  %v1207_v3 = vadd.f32 %v1206_v42, %v2532_v57 }
 0x189   : > { %v1353_v29 = vpop.f32.mrf.mxu2 }
 0x18a   : > { %v1374_v23 = vadd.f32 %v2091_v1, %v1368_v20  ;;  %v1256_v24 = vadd.f32 %v1255_v21, %v1207_v3 }
 0x18c   : > { %v1376_v28 = vmax.f32 %v1374_v23, 0.0  ;;  %v1305_v18 = vadd.f32 %v1304_v49, %v1256_v24 }
 0x18e   : > { %1379 = vst.msk [vmem:[%s211_s24] sm:$0xff] %vm1378_vm0, %v1376_v28  ;;  %v1354_v4 = vadd.f32 %v1353_v29, %v1305_v18 }
 0x190   : > { %v1369_v30 = vmax.f32 %v1367_v11, %v1354_v4 }
 0x192   : > { %v1375_v27 = vadd.f32 %v2091_v1, %v1369_v30 }
 0x194   : > { %v1377_v31 = vmax.f32 %v1375_v27, 0.0 }
 0x196   : > { %1380 = vst.msk [vmem:[%s211_s24 + $0x8] sm:$0xff] %vm1378_vm0, %v1377_v31 }
 0x197 PF: > { %s13_s14 = sadd.s32 1, %s2114_s14   ;;  %s2566_s12 = smov %s2110_s13 }
 0x198   : > { %p10_p5 = scmp.ge.s32.totalorder %s13_s14, 4   ;;  %s2567_s13 = smov %s2569_s15 }
 0x19a   :  { %12 = sbr.rel (!%p10_p5) target bundleno = 2 (0x2), region = 62 }

</bundles_post_ra>
